<compile_context>
chip_gen: v7x
topology: tpu7x:2x2x1
jax: 0.10.0
libtpu: 0.0.40
codegen_flags: <defaults>
</compile_context>

<pallas_src>
import functools

import jax
import jax.numpy as jnp
from jax.experimental import pallas as pl
from jax.experimental.pallas import tpu as pltpu


MATMUL_DTYPE = jnp.bfloat16            # MXU-native operand dtype; accumulation stays f32
MAX_T_CHUNK = 64                       # timesteps resident in VMEM per grid step
VMEM_LIMIT_BYTES = 48 * 1024 * 1024    # explicit budget: <= v7x 64 MiB physical,
                                       # > the 16/32 MiB default scoped limits on v5e/v6e


def _round_up(n, m):
    return ((n + m - 1) // m) * m


def _largest_divisor_leq(n, cap):
    for c in range(min(n, cap), 0, -1):
        if n % c == 0:
            return c
    return n


def _pick_lane_tile(full, cap=512):
    """Largest divisor of `full` that is a multiple of 128 and <= cap, else `full`."""
    if full <= cap:
        return full
    for c in range(cap, 127, -128):
        if full % c == 0:
            return c
    return full


# ----------------------------------------------------------------------------
# Pallas kernel: one bidirectional LSTM layer.
# grid = (2 directions, num_time_chunks); whole time chunk processed in-kernel.
# ----------------------------------------------------------------------------
def _bilstm_kernel(x_ref, wih_ref, whh_ref, b_ref, out_ref,
                   h_sc, c_sc, gx_sc, *, hidden, chunk):
    d = pl.program_id(0)     # 0 = forward, 1 = backward
    c = pl.program_id(1)     # chunk index (innermost, sequential)
    H = hidden
    Tc, B, Din = x_ref.shape

    @pl.when(c == 0)
    def _():
        h_sc[...] = jnp.zeros_like(h_sc)
        c_sc[...] = jnp.zeros_like(c_sc)

    # ---- hoisted input projection: one big MXU matmul per chunk --------------
    # (Tc*B, Din) @ (Din, 4H) + bias  ->  gx_sc (Tc, B, 4H) f32.
    # B is padded to a multiple of 8 by the wrapper, so these reshapes are
    # sublane-contiguous (no relayout).
    x2d = x_ref[...].reshape(Tc * B, Din)
    gx = jnp.dot(x2d, wih_ref[...], preferred_element_type=jnp.float32)
    gx_sc[...] = gx.reshape(Tc, B, 4 * H) + b_ref[...]

    whh = whh_ref[...]                               # (H, 4H) bf16, loop-invariant

    def step(i, carry):
        # forward walks local time 0..Tc-1, backward walks Tc-1..0
        t = d * (chunk - 1 - i) + (1 - d) * i
        # only the recurrent matmul remains on the serial path
        gates = jnp.dot(h_sc[...], whh,
                        preferred_element_type=jnp.float32) + gx_sc[t]
        ifo = jax.nn.sigmoid(gates[:, :3 * H])       # gate columns are [i, f, o, g]
        g = jnp.tanh(gates[:, 3 * H:])
        c_new = ifo[:, H:2 * H] * c_sc[...] + ifo[:, :H] * g
        h_new = (ifo[:, 2 * H:3 * H] * jnp.tanh(c_new)).astype(out_ref.dtype)
        c_sc[...] = c_new
        h_sc[...] = h_new                            # bf16: next step's matmul operand
        out_ref[t] = h_new
        return carry

    unroll = True if chunk <= 16 else 8
    jax.lax.fori_loop(0, chunk, step, 0, unroll=unroll)


def bilstm_layer(x_tbd, w_ih, w_hh, b):
    """One bidirectional LSTM layer.

    x_tbd : (T, B, Din) time-major (B already padded to a multiple of 8)
    w_ih  : (2, Din, 4H) bf16, gate-permuted [i,f,o,g]
    w_hh  : (2, H,   4H) bf16, gate-permuted
    b     : (2, 1,   4H) f32  (b_ih + b_hh, gate-permuted)
    returns (T, B, 2H) bf16  (forward | backward features)
    """
    T, B, Din = x_tbd.shape
    H = w_hh.shape[1]
    x_tbd = x_tbd.astype(MATMUL_DTYPE)

    Tc = _largest_divisor_leq(T, MAX_T_CHUNK)
    NC = T // Tc

    def chunk_idx(d, c):
        # backward direction consumes chunks (and timesteps within a chunk) in reverse
        return d * (NC - 1 - c) + (1 - d) * c

    kernel = functools.partial(_bilstm_kernel, hidden=H, chunk=Tc)

    in_specs = [
        # x chunk, shared by both directions
        pl.BlockSpec((Tc, B, Din), lambda d, c: (chunk_idx(d, c), 0, 0)),
        # per-direction input-projection / recurrent weights (gate-permuted)
        pl.BlockSpec((None, Din, 4 * H), lambda d, c: (d, 0, 0)),
        pl.BlockSpec((None, H, 4 * H), lambda d, c: (d, 0, 0)),
        # per-direction fused bias
        pl.BlockSpec((None, 1, 4 * H), lambda d, c: (d, 0, 0)),
    ]
    scratch = [
        pltpu.VMEM((B, H), MATMUL_DTYPE),            # h state (bf16 matmul operand)
        pltpu.VMEM((B, H), jnp.float32),             # c state
        pltpu.VMEM((Tc, B, 4 * H), jnp.float32),     # hoisted input projection
    ]
    # TODO(synk): pipeline_mode=pl.Buffered(1) on the weight specs (they only change
    # with the direction axis) and pltpu.CORE_PARALLEL on the direction axis for
    # v7x's 2 TensorCores, once validated on the target jax/libtpu version.
    cparams = pltpu.CompilerParams(
        dimension_semantics=("parallel", "arbitrary"),
        vmem_limit_bytes=VMEM_LIMIT_BYTES)

    if H % 128 == 0:
        # Lane-dense path: both directions write straight into one (T, B, 2H) slab.
        return pl.pallas_call(
            kernel,
            out_shape=jax.ShapeDtypeStruct((T, B, 2 * H), MATMUL_DTYPE),
            grid_spec=pltpu.PrefetchScalarGridSpec(
                num_scalar_prefetch=0,
                grid=(2, NC),
                in_specs=in_specs,
                out_specs=pl.BlockSpec((Tc, B, H),
                                       lambda d, c: (chunk_idx(d, c), 0, d)),
                scratch_shapes=scratch),
            compiler_params=cparams,
        )(x_tbd, w_ih, w_hh, b)

    # Fallback for H not lane-aligned: per-direction slabs + one concat (still bf16).
    out = pl.pallas_call(
        kernel,
        out_shape=jax.ShapeDtypeStruct((2, T, B, H), MATMUL_DTYPE),
        grid_spec=pltpu.PrefetchScalarGridSpec(
            num_scalar_prefetch=0,
            grid=(2, NC),
            in_specs=in_specs,
            out_specs=pl.BlockSpec((None, Tc, B, H),
                                   lambda d, c: (d, chunk_idx(d, c), 0, 0)),
            scratch_shapes=scratch),
        compiler_params=cparams,
    )(x_tbd, w_ih, w_hh, b)
    return jnp.concatenate([out[0], out[1]], axis=-1)           # (T, B, 2H) bf16


# ----------------------------------------------------------------------------
# Pallas kernel: fused lin1 -> ReLU -> lin2 head.
# grid = (batch tiles, hidden tiles, feat tiles); feat is the lin1 reduction.
# ----------------------------------------------------------------------------
def _mlp_kernel(x_ref, w1_ref, b1_ref, w2_ref, b2_ref, out_ref, h_sc, acc_sc):
    j = pl.program_id(1)              # hidden tile (lin1 output / lin2 input)
    k = pl.program_id(2)              # feat tile (lin1 reduction)
    nh = pl.num_programs(1)
    nk = pl.num_programs(2)
    last_k = k == nk - 1

    @pl.when(k == 0)
    def _():
        h_sc[...] = jnp.zeros_like(h_sc)

    h_sc[...] += jnp.dot(x_ref[...], w1_ref[...],
                         preferred_element_type=jnp.float32)

    @pl.when(jnp.logical_and(last_k, j == 0))
    def _():
        acc_sc[...] = jnp.zeros_like(acc_sc)

    @pl.when(last_k)
    def _():
        hid = jnp.maximum(h_sc[...] + b1_ref[...], 0.0)          # bias + ReLU
        acc_sc[...] += jnp.dot(hid.astype(w2_ref.dtype), w2_ref[...],
                               preferred_element_type=jnp.float32)

    @pl.when(jnp.logical_and(last_k, j == nh - 1))
    def _():
        out_ref[...] = acc_sc[...] + b2_ref[...]                 # single lane-dense store


def mlp_head(x, w1, b1, w2, b2):
    """x: (B, feat) bf16/f32.  w1: (feat, hidden) bf16.  b1: (1, hidden) f32.
    w2: (hidden, out) bf16.  b2: (1, out) f32.  Returns (B, out) f32."""
    B, feat = x.shape
    hidden = w1.shape[1]
    out_dim = w2.shape[1]

    x = x.astype(MATMUL_DTYPE)        # single cast (LSTM output is already bf16)

    # sublane-aligned batch tiling, lane-aligned output padding
    bm = min(128, _round_up(B, 8))
    B_pad = _round_up(B, bm)
    if B_pad != B:
        x = jnp.pad(x, ((0, B_pad - B), (0, 0)))
    out_pad = _round_up(out_dim, 128)
    if out_pad != out_dim:
        w2 = jnp.pad(w2, ((0, 0), (0, out_pad - out_dim)))
        b2 = jnp.pad(b2, ((0, 0), (0, out_pad - out_dim)))

    th = _pick_lane_tile(hidden, 512)
    tk = _pick_lane_tile(feat, 512)
    nb, nh, nk = B_pad // bm, hidden // th, feat // tk

    out = pl.pallas_call(
        _mlp_kernel,
        out_shape=jax.ShapeDtypeStruct((B_pad, out_pad), jnp.float32),
        grid_spec=pltpu.PrefetchScalarGridSpec(
            num_scalar_prefetch=0,
            grid=(nb, nh, nk),
            in_specs=[
                pl.BlockSpec((bm, tk), lambda i, j, k: (i, k)),
                pl.BlockSpec((tk, th), lambda i, j, k: (k, j)),
                pl.BlockSpec((1, th), lambda i, j, k: (0, j)),
                pl.BlockSpec((th, out_pad), lambda i, j, k: (j, 0)),
                pl.BlockSpec((1, out_pad), lambda i, j, k: (0, 0)),
            ],
            out_specs=pl.BlockSpec((bm, out_pad), lambda i, j, k: (i, 0)),
            scratch_shapes=[pltpu.VMEM((bm, th), jnp.float32),
                            pltpu.VMEM((bm, out_pad), jnp.float32)]),
        compiler_params=pltpu.CompilerParams(
            dimension_semantics=("parallel", "arbitrary", "arbitrary"),
            vmem_limit_bytes=VMEM_LIMIT_BYTES),
    )(x, w1, b1, w2, b2)
    return out[:B, :out_dim]


# ----------------------------------------------------------------------------
# Parameter init (deterministic, mirrors module __init__ shapes) + weight prep.
# ----------------------------------------------------------------------------
def init_params(key, word_emb_dim, vocab_word_size, tag_emb_dim, vocab_tag_size,
                nr_feats, lstm_dim, hidden_dim, output_dim):
    ks = iter(jax.random.split(key, 64))
    H = lstm_dim
    p = {}
    p["word_emb"] = 0.01 * jax.random.normal(next(ks), (vocab_word_size, word_emb_dim),
                                             jnp.float32)
    p["tag_emb"] = 0.01 * jax.random.normal(next(ks), (vocab_tag_size, tag_emb_dim),
                                            jnp.float32)

    def raw_dir(kin, in_dim):
        bound = 1.0 / float(H) ** 0.5
        k1, k2, k3, k4 = jax.random.split(kin, 4)
        w_ih = jax.random.uniform(k1, (4 * H, in_dim), jnp.float32, -bound, bound)
        w_hh = jax.random.uniform(k2, (4 * H, H), jnp.float32, -bound, bound)
        b_ih = jax.random.uniform(k3, (4 * H,), jnp.float32, -bound, bound)
        b_hh = jax.random.uniform(k4, (4 * H,), jnp.float32, -bound, bound)
        return w_ih, w_hh, b_ih, b_hh

    def permute_gates(m):
        # PyTorch gate order [i,f,g,o] along the 4H axis -> [i,f,o,g]:
        # one contiguous sigmoid slab (3H) + one tanh slab (H).
        return jnp.concatenate([m[..., :2 * H], m[..., 3 * H:], m[..., 2 * H:3 * H]],
                               axis=-1)

    def prep_dir(w_ih, w_hh, b_ih, b_hh):
        wih = permute_gates(w_ih.T).astype(MATMUL_DTYPE)      # (Din, 4H)
        whh = permute_gates(w_hh.T).astype(MATMUL_DTYPE)      # (H,   4H)
        bias = permute_gates(b_ih + b_hh).astype(jnp.float32)  # (4H,)
        return wih, whh, bias

    layer_in_dims = [word_emb_dim + tag_emb_dim, 2 * H]
    p["lstm"] = []
    for d_in in layer_in_dims:
        fwd = prep_dir(*raw_dir(next(ks), d_in))
        bwd = prep_dir(*raw_dir(next(ks), d_in))
        p["lstm"].append({
            "w_ih": jnp.stack([fwd[0], bwd[0]], axis=0),               # (2, Din, 4H)
            "w_hh": jnp.stack([fwd[1], bwd[1]], axis=0),               # (2, H,   4H)
            "b": jnp.stack([fwd[2], bwd[2]], axis=0)[:, None, :],      # (2, 1,   4H)
        })

    feat_dim = 2 * H * nr_feats
    b1 = 1.0 / float(feat_dim) ** 0.5
    p["w1"] = jax.random.uniform(next(ks), (feat_dim, hidden_dim), jnp.float32,
                                 -b1, b1).astype(MATMUL_DTYPE)
    p["b1"] = jax.random.uniform(next(ks), (hidden_dim,), jnp.float32, -b1, b1).reshape(1, -1)
    b2 = 1.0 / float(hidden_dim) ** 0.5
    p["w2"] = jax.random.uniform(next(ks), (hidden_dim, output_dim), jnp.float32,
                                 -b2, b2).astype(MATMUL_DTYPE)
    p["b2"] = jax.random.uniform(next(ks), (output_dim,), jnp.float32, -b2, b2).reshape(1, -1)
    return p


# ----------------------------------------------------------------------------
# Forward pass matching LSTMParserModel.forward.
# ----------------------------------------------------------------------------
def forward(params, word_ids, tag_ids, feature_ids):
    word_embs = params["word_emb"][word_ids]                    # (B, T, Dw)
    tag_embs = params["tag_emb"][tag_ids]                       # (B, T, Dt)
    x = jnp.concatenate([word_embs, tag_embs], axis=-1)         # (B, T, Dw+Dt)
    x = jnp.transpose(x, (1, 0, 2))                             # (T, B, D) time-major

    B = word_ids.shape[0]
    B_pad = _round_up(B, 8)                                     # sublane alignment
    if B_pad != B:
        x = jnp.pad(x, ((0, 0), (0, B_pad - B), (0, 0)))

    h = x
    for layer in params["lstm"]:
        # TODO(synk): nn.LSTM inter-layer dropout is skipped (eval-mode semantics).
        h = bilstm_layer(h, layer["w_ih"], layer["w_hh"], layer["b"])   # (T, B_pad, 2H) bf16

    # feature gather directly from the time-major slab (no full (B,T,2H) transpose)
    F = feature_ids.shape[1]
    two_h = h.shape[-1]
    safe_idx = jnp.where(feature_ids >= 0, feature_ids, 0)      # (B, F)
    gathered = h[safe_idx.T, jnp.arange(B)[None, :], :]         # (F, B, 2H)
    gathered = jnp.transpose(gathered, (1, 0, 2))               # (B, F, 2H)
    # positions with feature_id == -1 are zeroed, exactly as in the torch code
    gathered = jnp.where((feature_ids == -1)[:, :, None], 0.0, gathered)
    flat = gathered.reshape(B, F * two_h)                       # (B, F*2H) bf16
    # TODO(synk): the per-batch-row feature gather could be fused into the MLP kernel
    # via scalar prefetch + manual DMA row gather; kept in XLA here.

    return mlp_head(flat, params["w1"], params["b1"], params["w2"], params["b2"])


if __name__ == "__main__":
    # small shapes consistent with the module; lstm/hidden = 128 exercises the
    # lane-dense (T,B,2H) output path (fallback covers non-128-multiple H).
    B, T = 2, 8
    word_emb_dim, tag_emb_dim = 16, 16
    vocab_word_size, vocab_tag_size = 50, 20
    nr_feats = 4
    lstm_dim, hidden_dim, output_dim = 128, 128, 8

    key = jax.random.PRNGKey(0)
    kp, kw, kt, kf = jax.random.split(key, 4)

    params = init_params(kp, word_emb_dim, vocab_word_size, tag_emb_dim,
                         vocab_tag_size, nr_feats, lstm_dim, hidden_dim, output_dim)

    word_ids = jax.random.randint(kw, (B, T), 0, vocab_word_size, dtype=jnp.int32)
    tag_ids = jax.random.randint(kt, (B, T), 0, vocab_tag_size, dtype=jnp.int32)
    feature_ids = jax.random.randint(kf, (B, nr_feats), 0, T, dtype=jnp.int32)
    feature_ids = feature_ids.at[0, -1].set(-1)   # include a "-1" padded feature

    res = jax.jit(forward)(params, word_ids, tag_ids, feature_ids)
    jax.block_until_ready(res)
    assert res.shape == (B, output_dim)
    print("KERNEL_OK")
</pallas_src>

<mosaic_0001>
module attributes {stable_mosaic.version = 11 : i64} {
  func.func @_bilstm_kernel(%arg0: i32, %arg1: i32, %arg2: memref<8x8x256xbf16, #tpu.memory_space<vmem>>, %arg3: memref<1x256x512xbf16, #tpu.memory_space<vmem>>, %arg4: memref<1x128x512xbf16, #tpu.memory_space<vmem>>, %arg5: memref<1x1x512xf32, #tpu.memory_space<vmem>>, %arg6: memref<8x8x128xbf16, #tpu.memory_space<vmem>>, %arg7: memref<8x128xbf16, #tpu.memory_space<vmem>>, %arg8: memref<8x128xf32, #tpu.memory_space<vmem>>, %arg9: memref<8x8x512xf32, #tpu.memory_space<vmem>>) attributes {dimension_semantics = [#tpu.dimension_semantics<parallel>, #tpu.dimension_semantics<arbitrary>], iteration_bounds = array<i64: 2, 1>, scalar_prefetch = 0 : i64, scratch_operands = 3 : i64, tpu.core_type = #tpu.core_type<tc>, window_params = [{transform_indices = @transform_0, window_bounds = array<i64: 8, 8, 256>}, {transform_indices = @transform_1, window_bounds = array<i64: 1, 256, 512>}, {transform_indices = @transform_2, window_bounds = array<i64: 1, 128, 512>}, {transform_indices = @transform_3, window_bounds = array<i64: 1, 1, 512>}, {transform_indices = @transform_4, window_bounds = array<i64: 8, 8, 128>}]} {
    %c0_i32 = arith.constant 0 : i32
    %0 = arith.cmpi eq, %arg1, %c0_i32 : i32
    %1 = arith.extui %0 : i1 to i32
    %c0_i32_0 = arith.constant 0 : i32
    %2 = arith.cmpi ne, %1, %c0_i32_0 : i32
    scf.if %2 {
      %cst_144 = arith.constant 0.000000e+00 : bf16
      %297 = vector.broadcast %cst_144 : bf16 to vector<8x128xbf16>
      %c0_145 = arith.constant 0 : index
      %c0_146 = arith.constant 0 : index
      %298 = vector.load %arg7[%c0_145, %c0_146] : memref<8x128xbf16, #tpu.memory_space<vmem>>, vector<8x128xbf16>
      tpu.vector_store %arg7[%c0_145, %c0_146], %297 {strides = array<i32>} : memref<8x128xbf16, #tpu.memory_space<vmem>>, vector<8x128xbf16>,
      %cst_147 = arith.constant 0.000000e+00 : f32
      %299 = vector.broadcast %cst_147 : f32 to vector<8x128xf32>
      %c0_148 = arith.constant 0 : index
      %c0_149 = arith.constant 0 : index
      %300 = vector.load %arg8[%c0_148, %c0_149] : memref<8x128xf32, #tpu.memory_space<vmem>>, vector<8x128xf32>
      tpu.vector_store %arg8[%c0_148, %c0_149], %299 {strides = array<i32>} : memref<8x128xf32, #tpu.memory_space<vmem>>, vector<8x128xf32>,
    } else {
    }
    %c0 = arith.constant 0 : index
    %c0_1 = arith.constant 0 : index
    %c0_2 = arith.constant 0 : index
    %3 = vector.load %arg2[%c0, %c0_1, %c0_2] : memref<8x8x256xbf16, #tpu.memory_space<vmem>>, vector<8x8x256xbf16>
    %4 = vector.shape_cast %3 : vector<8x8x256xbf16> to vector<64x256xbf16>
    %c0_3 = arith.constant 0 : index
    %c0_4 = arith.constant 0 : index
    %c0_5 = arith.constant 0 : index
    %5 = vector.load %arg3[%c0_3, %c0_4, %c0_5] : memref<1x256x512xbf16, #tpu.memory_space<vmem>>, vector<1x256x512xbf16>
    %6 = vector.shape_cast %5 : vector<1x256x512xbf16> to vector<256x512xbf16>
    %cst = arith.constant dense<0.000000e+00> : vector<64x512xf32>
    %7 = tpu.matmul %4, %6, %cst {dimension_numbers = #tpu.dot_dimension_numbers<[1], [0], [0], [1], [0, 0, 1, 1], [], []>} : vector<64x256xbf16>, vector<256x512xbf16>, vector<64x512xf32> -> vector<64x512xf32>
    %8 = vector.shape_cast %7 : vector<64x512xf32> to vector<8x8x512xf32>
    %c0_6 = arith.constant 0 : index
    %c0_7 = arith.constant 0 : index
    %c0_8 = arith.constant 0 : index
    %9 = vector.load %arg5[%c0_6, %c0_7, %c0_8] : memref<1x1x512xf32, #tpu.memory_space<vmem>>, vector<1x1x512xf32>
    %10 = vector.shape_cast %9 : vector<1x1x512xf32> to vector<1x512xf32>
    %11 = vector.shape_cast %10 : vector<1x512xf32> to vector<1x1x512xf32>
    %12 = vector.broadcast %11 : vector<1x1x512xf32> to vector<8x8x512xf32>
    %13 = arith.addf %8, %12 : vector<8x8x512xf32>
    %c0_9 = arith.constant 0 : index
    %c0_10 = arith.constant 0 : index
    %c0_11 = arith.constant 0 : index
    %14 = vector.load %arg9[%c0_9, %c0_10, %c0_11] : memref<8x8x512xf32, #tpu.memory_space<vmem>>, vector<8x8x512xf32>
    tpu.vector_store %arg9[%c0_9, %c0_10, %c0_11], %13 {strides = array<i32>} : memref<8x8x512xf32, #tpu.memory_space<vmem>>, vector<8x8x512xf32>,
    %c0_12 = arith.constant 0 : index
    %c0_13 = arith.constant 0 : index
    %c0_14 = arith.constant 0 : index
    %15 = vector.load %arg4[%c0_12, %c0_13, %c0_14] : memref<1x128x512xbf16, #tpu.memory_space<vmem>>, vector<1x128x512xbf16>
    %16 = vector.shape_cast %15 : vector<1x128x512xbf16> to vector<128x512xbf16>
    %c0_i32_15 = arith.constant 0 : i32
    %c7_i32 = arith.constant 7 : i32
    %17 = arith.subi %c7_i32, %c0_i32_15 : i32
    %18 = arith.muli %arg0, %17 : i32
    %c1_i32 = arith.constant 1 : i32
    %19 = arith.subi %c1_i32, %arg0 : i32
    %20 = arith.muli %19, %c0_i32_15 : i32
    %21 = arith.addi %18, %20 : i32
    %c0_16 = arith.constant 0 : index
    %c0_17 = arith.constant 0 : index
    %22 = vector.load %arg7[%c0_16, %c0_17] : memref<8x128xbf16, #tpu.memory_space<vmem>>, vector<8x128xbf16>
    %cst_18 = arith.constant dense<0.000000e+00> : vector<8x512xf32>
    %23 = tpu.matmul %22, %16, %cst_18 {dimension_numbers = #tpu.dot_dimension_numbers<[1], [0], [0], [1], [0, 0, 1, 1], [], []>} : vector<8x128xbf16>, vector<128x512xbf16>, vector<8x512xf32> -> vector<8x512xf32>
    %24 = arith.index_cast %21 : i32 to index
    %c0_19 = arith.constant 0 : index
    %c0_20 = arith.constant 0 : index
    %25 = vector.load %arg9[%24, %c0_19, %c0_20] : memref<8x8x512xf32, #tpu.memory_space<vmem>>, vector<1x8x512xf32>
    %26 = vector.shape_cast %25 : vector<1x8x512xf32> to vector<8x512xf32>
    %27 = arith.addf %23, %26 : vector<8x512xf32>
    %28 = vector.extract_strided_slice %27 {offsets = [0, 0], sizes = [8, 384], strides = [1, 1]} : vector<8x512xf32> to vector<8x384xf32>
    %29 = arith.negf %28 : vector<8x384xf32>
    %30 = math.exp %29 : vector<8x384xf32>
    %cst_21 = arith.constant 1.000000e+00 : f32
    %31 = vector.broadcast %cst_21 : f32 to vector<8x384xf32>
    %32 = arith.addf %31, %30 : vector<8x384xf32>
    %33 = arith.divf %31, %32 : vector<8x384xf32>
    %34 = vector.extract_strided_slice %27 {offsets = [0, 384], sizes = [8, 128], strides = [1, 1]} : vector<8x512xf32> to vector<8x128xf32>
    %35 = math.tanh %34 : vector<8x128xf32>
    %36 = vector.extract_strided_slice %33 {offsets = [0, 128], sizes = [8, 128], strides = [1, 1]} : vector<8x384xf32> to vector<8x128xf32>
    %c0_22 = arith.constant 0 : index
    %c0_23 = arith.constant 0 : index
    %37 = vector.load %arg8[%c0_22, %c0_23] : memref<8x128xf32, #tpu.memory_space<vmem>>, vector<8x128xf32>
    %38 = arith.mulf %36, %37 : vector<8x128xf32>
    %39 = vector.extract_strided_slice %33 {offsets = [0, 0], sizes = [8, 128], strides = [1, 1]} : vector<8x384xf32> to vector<8x128xf32>
    %40 = arith.mulf %39, %35 : vector<8x128xf32>
    %41 = arith.addf %38, %40 : vector<8x128xf32>
    %42 = vector.extract_strided_slice %33 {offsets = [0, 256], sizes = [8, 128], strides = [1, 1]} : vector<8x384xf32> to vector<8x128xf32>
    %43 = math.tanh %41 : vector<8x128xf32>
    %44 = arith.mulf %42, %43 : vector<8x128xf32>
    %45 = arith.truncf %44 : vector<8x128xf32> to vector<8x128xbf16>
    %c0_24 = arith.constant 0 : index
    %c0_25 = arith.constant 0 : index
    %46 = vector.load %arg8[%c0_24, %c0_25] : memref<8x128xf32, #tpu.memory_space<vmem>>, vector<8x128xf32>
    tpu.vector_store %arg8[%c0_24, %c0_25], %41 {strides = array<i32>} : memref<8x128xf32, #tpu.memory_space<vmem>>, vector<8x128xf32>,
    %c0_26 = arith.constant 0 : index
    %c0_27 = arith.constant 0 : index
    %47 = vector.load %arg7[%c0_26, %c0_27] : memref<8x128xbf16, #tpu.memory_space<vmem>>, vector<8x128xbf16>
    tpu.vector_store %arg7[%c0_26, %c0_27], %45 {strides = array<i32>} : memref<8x128xbf16, #tpu.memory_space<vmem>>, vector<8x128xbf16>,
    %48 = arith.index_cast %21 : i32 to index
    %c0_28 = arith.constant 0 : index
    %c0_29 = arith.constant 0 : index
    %49 = vector.load %arg6[%48, %c0_28, %c0_29] : memref<8x8x128xbf16, #tpu.memory_space<vmem>>, vector<1x8x128xbf16>
    %50 = vector.shape_cast %49 : vector<1x8x128xbf16> to vector<8x128xbf16>
    %51 = vector.shape_cast %45 : vector<8x128xbf16> to vector<1x8x128xbf16>
    tpu.vector_store %arg6[%48, %c0_28, %c0_29], %51 {strides = array<i32>} : memref<8x8x128xbf16, #tpu.memory_space<vmem>>, vector<1x8x128xbf16>,
    %c1_i32_30 = arith.constant 1 : i32
    %c7_i32_31 = arith.constant 7 : i32
    %52 = arith.subi %c7_i32_31, %c1_i32_30 : i32
    %53 = arith.muli %arg0, %52 : i32
    %c1_i32_32 = arith.constant 1 : i32
    %54 = arith.subi %c1_i32_32, %arg0 : i32
    %55 = arith.muli %54, %c1_i32_30 : i32
    %56 = arith.addi %53, %55 : i32
    %c0_33 = arith.constant 0 : index
    %c0_34 = arith.constant 0 : index
    %57 = vector.load %arg7[%c0_33, %c0_34] : memref<8x128xbf16, #tpu.memory_space<vmem>>, vector<8x128xbf16>
    %cst_35 = arith.constant dense<0.000000e+00> : vector<8x512xf32>
    %58 = tpu.matmul %57, %16, %cst_35 {dimension_numbers = #tpu.dot_dimension_numbers<[1], [0], [0], [1], [0, 0, 1, 1], [], []>} : vector<8x128xbf16>, vector<128x512xbf16>, vector<8x512xf32> -> vector<8x512xf32>
    %59 = arith.index_cast %56 : i32 to index
    %c0_36 = arith.constant 0 : index
    %c0_37 = arith.constant 0 : index
    %60 = vector.load %arg9[%59, %c0_36, %c0_37] : memref<8x8x512xf32, #tpu.memory_space<vmem>>, vector<1x8x512xf32>
    %61 = vector.shape_cast %60 : vector<1x8x512xf32> to vector<8x512xf32>
    %62 = arith.addf %58, %61 : vector<8x512xf32>
    %63 = vector.extract_strided_slice %62 {offsets = [0, 0], sizes = [8, 384], strides = [1, 1]} : vector<8x512xf32> to vector<8x384xf32>
    %64 = arith.negf %63 : vector<8x384xf32>
    %65 = math.exp %64 : vector<8x384xf32>
    %cst_38 = arith.constant 1.000000e+00 : f32
    %66 = vector.broadcast %cst_38 : f32 to vector<8x384xf32>
    %67 = arith.addf %66, %65 : vector<8x384xf32>
    %68 = arith.divf %66, %67 : vector<8x384xf32>
    %69 = vector.extract_strided_slice %62 {offsets = [0, 384], sizes = [8, 128], strides = [1, 1]} : vector<8x512xf32> to vector<8x128xf32>
    %70 = math.tanh %69 : vector<8x128xf32>
    %71 = vector.extract_strided_slice %68 {offsets = [0, 128], sizes = [8, 128], strides = [1, 1]} : vector<8x384xf32> to vector<8x128xf32>
    %c0_39 = arith.constant 0 : index
    %c0_40 = arith.constant 0 : index
    %72 = vector.load %arg8[%c0_39, %c0_40] : memref<8x128xf32, #tpu.memory_space<vmem>>, vector<8x128xf32>
    %73 = arith.mulf %71, %72 : vector<8x128xf32>
    %74 = vector.extract_strided_slice %68 {offsets = [0, 0], sizes = [8, 128], strides = [1, 1]} : vector<8x384xf32> to vector<8x128xf32>
    %75 = arith.mulf %74, %70 : vector<8x128xf32>
    %76 = arith.addf %73, %75 : vector<8x128xf32>
    %77 = vector.extract_strided_slice %68 {offsets = [0, 256], sizes = [8, 128], strides = [1, 1]} : vector<8x384xf32> to vector<8x128xf32>
    %78 = math.tanh %76 : vector<8x128xf32>
    %79 = arith.mulf %77, %78 : vector<8x128xf32>
    %80 = arith.truncf %79 : vector<8x128xf32> to vector<8x128xbf16>
    %c0_41 = arith.constant 0 : index
    %c0_42 = arith.constant 0 : index
    %81 = vector.load %arg8[%c0_41, %c0_42] : memref<8x128xf32, #tpu.memory_space<vmem>>, vector<8x128xf32>
    tpu.vector_store %arg8[%c0_41, %c0_42], %76 {strides = array<i32>} : memref<8x128xf32, #tpu.memory_space<vmem>>, vector<8x128xf32>,
    %c0_43 = arith.constant 0 : index
    %c0_44 = arith.constant 0 : index
    %82 = vector.load %arg7[%c0_43, %c0_44] : memref<8x128xbf16, #tpu.memory_space<vmem>>, vector<8x128xbf16>
    tpu.vector_store %arg7[%c0_43, %c0_44], %80 {strides = array<i32>} : memref<8x128xbf16, #tpu.memory_space<vmem>>, vector<8x128xbf16>,
    %83 = arith.index_cast %56 : i32 to index
    %c0_45 = arith.constant 0 : index
    %c0_46 = arith.constant 0 : index
    %84 = vector.load %arg6[%83, %c0_45, %c0_46] : memref<8x8x128xbf16, #tpu.memory_space<vmem>>, vector<1x8x128xbf16>
    %85 = vector.shape_cast %84 : vector<1x8x128xbf16> to vector<8x128xbf16>
    %86 = vector.shape_cast %80 : vector<8x128xbf16> to vector<1x8x128xbf16>
    tpu.vector_store %arg6[%83, %c0_45, %c0_46], %86 {strides = array<i32>} : memref<8x8x128xbf16, #tpu.memory_space<vmem>>, vector<1x8x128xbf16>,
    %c2_i32 = arith.constant 2 : i32
    %c7_i32_47 = arith.constant 7 : i32
    %87 = arith.subi %c7_i32_47, %c2_i32 : i32
    %88 = arith.muli %arg0, %87 : i32
    %c1_i32_48 = arith.constant 1 : i32
    %89 = arith.subi %c1_i32_48, %arg0 : i32
    %90 = arith.muli %89, %c2_i32 : i32
    %91 = arith.addi %88, %90 : i32
    %c0_49 = arith.constant 0 : index
    %c0_50 = arith.constant 0 : index
    %92 = vector.load %arg7[%c0_49, %c0_50] : memref<8x128xbf16, #tpu.memory_space<vmem>>, vector<8x128xbf16>
    %cst_51 = arith.constant dense<0.000000e+00> : vector<8x512xf32>
    %93 = tpu.matmul %92, %16, %cst_51 {dimension_numbers = #tpu.dot_dimension_numbers<[1], [0], [0], [1], [0, 0, 1, 1], [], []>} : vector<8x128xbf16>, vector<128x512xbf16>, vector<8x512xf32> -> vector<8x512xf32>
    %94 = arith.index_cast %91 : i32 to index
    %c0_52 = arith.constant 0 : index
    %c0_53 = arith.constant 0 : index
    %95 = vector.load %arg9[%94, %c0_52, %c0_53] : memref<8x8x512xf32, #tpu.memory_space<vmem>>, vector<1x8x512xf32>
    %96 = vector.shape_cast %95 : vector<1x8x512xf32> to vector<8x512xf32>
    %97 = arith.addf %93, %96 : vector<8x512xf32>
    %98 = vector.extract_strided_slice %97 {offsets = [0, 0], sizes = [8, 384], strides = [1, 1]} : vector<8x512xf32> to vector<8x384xf32>
    %99 = arith.negf %98 : vector<8x384xf32>
    %100 = math.exp %99 : vector<8x384xf32>
    %cst_54 = arith.constant 1.000000e+00 : f32
    %101 = vector.broadcast %cst_54 : f32 to vector<8x384xf32>
    %102 = arith.addf %101, %100 : vector<8x384xf32>
    %103 = arith.divf %101, %102 : vector<8x384xf32>
    %104 = vector.extract_strided_slice %97 {offsets = [0, 384], sizes = [8, 128], strides = [1, 1]} : vector<8x512xf32> to vector<8x128xf32>
    %105 = math.tanh %104 : vector<8x128xf32>
    %106 = vector.extract_strided_slice %103 {offsets = [0, 128], sizes = [8, 128], strides = [1, 1]} : vector<8x384xf32> to vector<8x128xf32>
    %c0_55 = arith.constant 0 : index
    %c0_56 = arith.constant 0 : index
    %107 = vector.load %arg8[%c0_55, %c0_56] : memref<8x128xf32, #tpu.memory_space<vmem>>, vector<8x128xf32>
    %108 = arith.mulf %106, %107 : vector<8x128xf32>
    %109 = vector.extract_strided_slice %103 {offsets = [0, 0], sizes = [8, 128], strides = [1, 1]} : vector<8x384xf32> to vector<8x128xf32>
    %110 = arith.mulf %109, %105 : vector<8x128xf32>
    %111 = arith.addf %108, %110 : vector<8x128xf32>
    %112 = vector.extract_strided_slice %103 {offsets = [0, 256], sizes = [8, 128], strides = [1, 1]} : vector<8x384xf32> to vector<8x128xf32>
    %113 = math.tanh %111 : vector<8x128xf32>
    %114 = arith.mulf %112, %113 : vector<8x128xf32>
    %115 = arith.truncf %114 : vector<8x128xf32> to vector<8x128xbf16>
    %c0_57 = arith.constant 0 : index
    %c0_58 = arith.constant 0 : index
    %116 = vector.load %arg8[%c0_57, %c0_58] : memref<8x128xf32, #tpu.memory_space<vmem>>, vector<8x128xf32>
    tpu.vector_store %arg8[%c0_57, %c0_58], %111 {strides = array<i32>} : memref<8x128xf32, #tpu.memory_space<vmem>>, vector<8x128xf32>,
    %c0_59 = arith.constant 0 : index
    %c0_60 = arith.constant 0 : index
    %117 = vector.load %arg7[%c0_59, %c0_60] : memref<8x128xbf16, #tpu.memory_space<vmem>>, vector<8x128xbf16>
    tpu.vector_store %arg7[%c0_59, %c0_60], %115 {strides = array<i32>} : memref<8x128xbf16, #tpu.memory_space<vmem>>, vector<8x128xbf16>,
    %118 = arith.index_cast %91 : i32 to index
    %c0_61 = arith.constant 0 : index
    %c0_62 = arith.constant 0 : index
    %119 = vector.load %arg6[%118, %c0_61, %c0_62] : memref<8x8x128xbf16, #tpu.memory_space<vmem>>, vector<1x8x128xbf16>
    %120 = vector.shape_cast %119 : vector<1x8x128xbf16> to vector<8x128xbf16>
    %121 = vector.shape_cast %115 : vector<8x128xbf16> to vector<1x8x128xbf16>
    tpu.vector_store %arg6[%118, %c0_61, %c0_62], %121 {strides = array<i32>} : memref<8x8x128xbf16, #tpu.memory_space<vmem>>, vector<1x8x128xbf16>,
    %c3_i32 = arith.constant 3 : i32
    %c7_i32_63 = arith.constant 7 : i32
    %122 = arith.subi %c7_i32_63, %c3_i32 : i32
    %123 = arith.muli %arg0, %122 : i32
    %c1_i32_64 = arith.constant 1 : i32
    %124 = arith.subi %c1_i32_64, %arg0 : i32
    %125 = arith.muli %124, %c3_i32 : i32
    %126 = arith.addi %123, %125 : i32
    %c0_65 = arith.constant 0 : index
    %c0_66 = arith.constant 0 : index
    %127 = vector.load %arg7[%c0_65, %c0_66] : memref<8x128xbf16, #tpu.memory_space<vmem>>, vector<8x128xbf16>
    %cst_67 = arith.constant dense<0.000000e+00> : vector<8x512xf32>
    %128 = tpu.matmul %127, %16, %cst_67 {dimension_numbers = #tpu.dot_dimension_numbers<[1], [0], [0], [1], [0, 0, 1, 1], [], []>} : vector<8x128xbf16>, vector<128x512xbf16>, vector<8x512xf32> -> vector<8x512xf32>
    %129 = arith.index_cast %126 : i32 to index
    %c0_68 = arith.constant 0 : index
    %c0_69 = arith.constant 0 : index
    %130 = vector.load %arg9[%129, %c0_68, %c0_69] : memref<8x8x512xf32, #tpu.memory_space<vmem>>, vector<1x8x512xf32>
    %131 = vector.shape_cast %130 : vector<1x8x512xf32> to vector<8x512xf32>
    %132 = arith.addf %128, %131 : vector<8x512xf32>
    %133 = vector.extract_strided_slice %132 {offsets = [0, 0], sizes = [8, 384], strides = [1, 1]} : vector<8x512xf32> to vector<8x384xf32>
    %134 = arith.negf %133 : vector<8x384xf32>
    %135 = math.exp %134 : vector<8x384xf32>
    %cst_70 = arith.constant 1.000000e+00 : f32
    %136 = vector.broadcast %cst_70 : f32 to vector<8x384xf32>
    %137 = arith.addf %136, %135 : vector<8x384xf32>
    %138 = arith.divf %136, %137 : vector<8x384xf32>
    %139 = vector.extract_strided_slice %132 {offsets = [0, 384], sizes = [8, 128], strides = [1, 1]} : vector<8x512xf32> to vector<8x128xf32>
    %140 = math.tanh %139 : vector<8x128xf32>
    %141 = vector.extract_strided_slice %138 {offsets = [0, 128], sizes = [8, 128], strides = [1, 1]} : vector<8x384xf32> to vector<8x128xf32>
    %c0_71 = arith.constant 0 : index
    %c0_72 = arith.constant 0 : index
    %142 = vector.load %arg8[%c0_71, %c0_72] : memref<8x128xf32, #tpu.memory_space<vmem>>, vector<8x128xf32>
    %143 = arith.mulf %141, %142 : vector<8x128xf32>
    %144 = vector.extract_strided_slice %138 {offsets = [0, 0], sizes = [8, 128], strides = [1, 1]} : vector<8x384xf32> to vector<8x128xf32>
    %145 = arith.mulf %144, %140 : vector<8x128xf32>
    %146 = arith.addf %143, %145 : vector<8x128xf32>
    %147 = vector.extract_strided_slice %138 {offsets = [0, 256], sizes = [8, 128], strides = [1, 1]} : vector<8x384xf32> to vector<8x128xf32>
    %148 = math.tanh %146 : vector<8x128xf32>
    %149 = arith.mulf %147, %148 : vector<8x128xf32>
    %150 = arith.truncf %149 : vector<8x128xf32> to vector<8x128xbf16>
    %c0_73 = arith.constant 0 : index
    %c0_74 = arith.constant 0 : index
    %151 = vector.load %arg8[%c0_73, %c0_74] : memref<8x128xf32, #tpu.memory_space<vmem>>, vector<8x128xf32>
    tpu.vector_store %arg8[%c0_73, %c0_74], %146 {strides = array<i32>} : memref<8x128xf32, #tpu.memory_space<vmem>>, vector<8x128xf32>,
    %c0_75 = arith.constant 0 : index
    %c0_76 = arith.constant 0 : index
    %152 = vector.load %arg7[%c0_75, %c0_76] : memref<8x128xbf16, #tpu.memory_space<vmem>>, vector<8x128xbf16>
    tpu.vector_store %arg7[%c0_75, %c0_76], %150 {strides = array<i32>} : memref<8x128xbf16, #tpu.memory_space<vmem>>, vector<8x128xbf16>,
    %153 = arith.index_cast %126 : i32 to index
    %c0_77 = arith.constant 0 : index
    %c0_78 = arith.constant 0 : index
    %154 = vector.load %arg6[%153, %c0_77, %c0_78] : memref<8x8x128xbf16, #tpu.memory_space<vmem>>, vector<1x8x128xbf16>
    %155 = vector.shape_cast %154 : vector<1x8x128xbf16> to vector<8x128xbf16>
    %156 = vector.shape_cast %150 : vector<8x128xbf16> to vector<1x8x128xbf16>
    tpu.vector_store %arg6[%153, %c0_77, %c0_78], %156 {strides = array<i32>} : memref<8x8x128xbf16, #tpu.memory_space<vmem>>, vector<1x8x128xbf16>,
    %c4_i32 = arith.constant 4 : i32
    %c7_i32_79 = arith.constant 7 : i32
    %157 = arith.subi %c7_i32_79, %c4_i32 : i32
    %158 = arith.muli %arg0, %157 : i32
    %c1_i32_80 = arith.constant 1 : i32
    %159 = arith.subi %c1_i32_80, %arg0 : i32
    %160 = arith.muli %159, %c4_i32 : i32
    %161 = arith.addi %158, %160 : i32
    %c0_81 = arith.constant 0 : index
    %c0_82 = arith.constant 0 : index
    %162 = vector.load %arg7[%c0_81, %c0_82] : memref<8x128xbf16, #tpu.memory_space<vmem>>, vector<8x128xbf16>
    %cst_83 = arith.constant dense<0.000000e+00> : vector<8x512xf32>
    %163 = tpu.matmul %162, %16, %cst_83 {dimension_numbers = #tpu.dot_dimension_numbers<[1], [0], [0], [1], [0, 0, 1, 1], [], []>} : vector<8x128xbf16>, vector<128x512xbf16>, vector<8x512xf32> -> vector<8x512xf32>
    %164 = arith.index_cast %161 : i32 to index
    %c0_84 = arith.constant 0 : index
    %c0_85 = arith.constant 0 : index
    %165 = vector.load %arg9[%164, %c0_84, %c0_85] : memref<8x8x512xf32, #tpu.memory_space<vmem>>, vector<1x8x512xf32>
    %166 = vector.shape_cast %165 : vector<1x8x512xf32> to vector<8x512xf32>
    %167 = arith.addf %163, %166 : vector<8x512xf32>
    %168 = vector.extract_strided_slice %167 {offsets = [0, 0], sizes = [8, 384], strides = [1, 1]} : vector<8x512xf32> to vector<8x384xf32>
    %169 = arith.negf %168 : vector<8x384xf32>
    %170 = math.exp %169 : vector<8x384xf32>
    %cst_86 = arith.constant 1.000000e+00 : f32
    %171 = vector.broadcast %cst_86 : f32 to vector<8x384xf32>
    %172 = arith.addf %171, %170 : vector<8x384xf32>
    %173 = arith.divf %171, %172 : vector<8x384xf32>
    %174 = vector.extract_strided_slice %167 {offsets = [0, 384], sizes = [8, 128], strides = [1, 1]} : vector<8x512xf32> to vector<8x128xf32>
    %175 = math.tanh %174 : vector<8x128xf32>
    %176 = vector.extract_strided_slice %173 {offsets = [0, 128], sizes = [8, 128], strides = [1, 1]} : vector<8x384xf32> to vector<8x128xf32>
    %c0_87 = arith.constant 0 : index
    %c0_88 = arith.constant 0 : index
    %177 = vector.load %arg8[%c0_87, %c0_88] : memref<8x128xf32, #tpu.memory_space<vmem>>, vector<8x128xf32>
    %178 = arith.mulf %176, %177 : vector<8x128xf32>
    %179 = vector.extract_strided_slice %173 {offsets = [0, 0], sizes = [8, 128], strides = [1, 1]} : vector<8x384xf32> to vector<8x128xf32>
    %180 = arith.mulf %179, %175 : vector<8x128xf32>
    %181 = arith.addf %178, %180 : vector<8x128xf32>
    %182 = vector.extract_strided_slice %173 {offsets = [0, 256], sizes = [8, 128], strides = [1, 1]} : vector<8x384xf32> to vector<8x128xf32>
    %183 = math.tanh %181 : vector<8x128xf32>
    %184 = arith.mulf %182, %183 : vector<8x128xf32>
    %185 = arith.truncf %184 : vector<8x128xf32> to vector<8x128xbf16>
    %c0_89 = arith.constant 0 : index
    %c0_90 = arith.constant 0 : index
    %186 = vector.load %arg8[%c0_89, %c0_90] : memref<8x128xf32, #tpu.memory_space<vmem>>, vector<8x128xf32>
    tpu.vector_store %arg8[%c0_89, %c0_90], %181 {strides = array<i32>} : memref<8x128xf32, #tpu.memory_space<vmem>>, vector<8x128xf32>,
    %c0_91 = arith.constant 0 : index
    %c0_92 = arith.constant 0 : index
    %187 = vector.load %arg7[%c0_91, %c0_92] : memref<8x128xbf16, #tpu.memory_space<vmem>>, vector<8x128xbf16>
    tpu.vector_store %arg7[%c0_91, %c0_92], %185 {strides = array<i32>} : memref<8x128xbf16, #tpu.memory_space<vmem>>, vector<8x128xbf16>,
    %188 = arith.index_cast %161 : i32 to index
    %c0_93 = arith.constant 0 : index
    %c0_94 = arith.constant 0 : index
    %189 = vector.load %arg6[%188, %c0_93, %c0_94] : memref<8x8x128xbf16, #tpu.memory_space<vmem>>, vector<1x8x128xbf16>
    %190 = vector.shape_cast %189 : vector<1x8x128xbf16> to vector<8x128xbf16>
    %191 = vector.shape_cast %185 : vector<8x128xbf16> to vector<1x8x128xbf16>
    tpu.vector_store %arg6[%188, %c0_93, %c0_94], %191 {strides = array<i32>} : memref<8x8x128xbf16, #tpu.memory_space<vmem>>, vector<1x8x128xbf16>,
    %c5_i32 = arith.constant 5 : i32
    %c7_i32_95 = arith.constant 7 : i32
    %192 = arith.subi %c7_i32_95, %c5_i32 : i32
    %193 = arith.muli %arg0, %192 : i32
    %c1_i32_96 = arith.constant 1 : i32
    %194 = arith.subi %c1_i32_96, %arg0 : i32
    %195 = arith.muli %194, %c5_i32 : i32
    %196 = arith.addi %193, %195 : i32
    %c0_97 = arith.constant 0 : index
    %c0_98 = arith.constant 0 : index
    %197 = vector.load %arg7[%c0_97, %c0_98] : memref<8x128xbf16, #tpu.memory_space<vmem>>, vector<8x128xbf16>
    %cst_99 = arith.constant dense<0.000000e+00> : vector<8x512xf32>
    %198 = tpu.matmul %197, %16, %cst_99 {dimension_numbers = #tpu.dot_dimension_numbers<[1], [0], [0], [1], [0, 0, 1, 1], [], []>} : vector<8x128xbf16>, vector<128x512xbf16>, vector<8x512xf32> -> vector<8x512xf32>
    %199 = arith.index_cast %196 : i32 to index
    %c0_100 = arith.constant 0 : index
    %c0_101 = arith.constant 0 : index
    %200 = vector.load %arg9[%199, %c0_100, %c0_101] : memref<8x8x512xf32, #tpu.memory_space<vmem>>, vector<1x8x512xf32>
    %201 = vector.shape_cast %200 : vector<1x8x512xf32> to vector<8x512xf32>
    %202 = arith.addf %198, %201 : vector<8x512xf32>
    %203 = vector.extract_strided_slice %202 {offsets = [0, 0], sizes = [8, 384], strides = [1, 1]} : vector<8x512xf32> to vector<8x384xf32>
    %204 = arith.negf %203 : vector<8x384xf32>
    %205 = math.exp %204 : vector<8x384xf32>
    %cst_102 = arith.constant 1.000000e+00 : f32
    %206 = vector.broadcast %cst_102 : f32 to vector<8x384xf32>
    %207 = arith.addf %206, %205 : vector<8x384xf32>
    %208 = arith.divf %206, %207 : vector<8x384xf32>
    %209 = vector.extract_strided_slice %202 {offsets = [0, 384], sizes = [8, 128], strides = [1, 1]} : vector<8x512xf32> to vector<8x128xf32>
    %210 = math.tanh %209 : vector<8x128xf32>
    %211 = vector.extract_strided_slice %208 {offsets = [0, 128], sizes = [8, 128], strides = [1, 1]} : vector<8x384xf32> to vector<8x128xf32>
    %c0_103 = arith.constant 0 : index
    %c0_104 = arith.constant 0 : index
    %212 = vector.load %arg8[%c0_103, %c0_104] : memref<8x128xf32, #tpu.memory_space<vmem>>, vector<8x128xf32>
    %213 = arith.mulf %211, %212 : vector<8x128xf32>
    %214 = vector.extract_strided_slice %208 {offsets = [0, 0], sizes = [8, 128], strides = [1, 1]} : vector<8x384xf32> to vector<8x128xf32>
    %215 = arith.mulf %214, %210 : vector<8x128xf32>
    %216 = arith.addf %213, %215 : vector<8x128xf32>
    %217 = vector.extract_strided_slice %208 {offsets = [0, 256], sizes = [8, 128], strides = [1, 1]} : vector<8x384xf32> to vector<8x128xf32>
    %218 = math.tanh %216 : vector<8x128xf32>
    %219 = arith.mulf %217, %218 : vector<8x128xf32>
    %220 = arith.truncf %219 : vector<8x128xf32> to vector<8x128xbf16>
    %c0_105 = arith.constant 0 : index
    %c0_106 = arith.constant 0 : index
    %221 = vector.load %arg8[%c0_105, %c0_106] : memref<8x128xf32, #tpu.memory_space<vmem>>, vector<8x128xf32>
    tpu.vector_store %arg8[%c0_105, %c0_106], %216 {strides = array<i32>} : memref<8x128xf32, #tpu.memory_space<vmem>>, vector<8x128xf32>,
    %c0_107 = arith.constant 0 : index
    %c0_108 = arith.constant 0 : index
    %222 = vector.load %arg7[%c0_107, %c0_108] : memref<8x128xbf16, #tpu.memory_space<vmem>>, vector<8x128xbf16>
    tpu.vector_store %arg7[%c0_107, %c0_108], %220 {strides = array<i32>} : memref<8x128xbf16, #tpu.memory_space<vmem>>, vector<8x128xbf16>,
    %223 = arith.index_cast %196 : i32 to index
    %c0_109 = arith.constant 0 : index
    %c0_110 = arith.constant 0 : index
    %224 = vector.load %arg6[%223, %c0_109, %c0_110] : memref<8x8x128xbf16, #tpu.memory_space<vmem>>, vector<1x8x128xbf16>
    %225 = vector.shape_cast %224 : vector<1x8x128xbf16> to vector<8x128xbf16>
    %226 = vector.shape_cast %220 : vector<8x128xbf16> to vector<1x8x128xbf16>
    tpu.vector_store %arg6[%223, %c0_109, %c0_110], %226 {strides = array<i32>} : memref<8x8x128xbf16, #tpu.memory_space<vmem>>, vector<1x8x128xbf16>,
    %c6_i32 = arith.constant 6 : i32
    %c7_i32_111 = arith.constant 7 : i32
    %227 = arith.subi %c7_i32_111, %c6_i32 : i32
    %228 = arith.muli %arg0, %227 : i32
    %c1_i32_112 = arith.constant 1 : i32
    %229 = arith.subi %c1_i32_112, %arg0 : i32
    %230 = arith.muli %229, %c6_i32 : i32
    %231 = arith.addi %228, %230 : i32
    %c0_113 = arith.constant 0 : index
    %c0_114 = arith.constant 0 : index
    %232 = vector.load %arg7[%c0_113, %c0_114] : memref<8x128xbf16, #tpu.memory_space<vmem>>, vector<8x128xbf16>
    %cst_115 = arith.constant dense<0.000000e+00> : vector<8x512xf32>
    %233 = tpu.matmul %232, %16, %cst_115 {dimension_numbers = #tpu.dot_dimension_numbers<[1], [0], [0], [1], [0, 0, 1, 1], [], []>} : vector<8x128xbf16>, vector<128x512xbf16>, vector<8x512xf32> -> vector<8x512xf32>
    %234 = arith.index_cast %231 : i32 to index
    %c0_116 = arith.constant 0 : index
    %c0_117 = arith.constant 0 : index
    %235 = vector.load %arg9[%234, %c0_116, %c0_117] : memref<8x8x512xf32, #tpu.memory_space<vmem>>, vector<1x8x512xf32>
    %236 = vector.shape_cast %235 : vector<1x8x512xf32> to vector<8x512xf32>
    %237 = arith.addf %233, %236 : vector<8x512xf32>
    %238 = vector.extract_strided_slice %237 {offsets = [0, 0], sizes = [8, 384], strides = [1, 1]} : vector<8x512xf32> to vector<8x384xf32>
    %239 = arith.negf %238 : vector<8x384xf32>
    %240 = math.exp %239 : vector<8x384xf32>
    %cst_118 = arith.constant 1.000000e+00 : f32
    %241 = vector.broadcast %cst_118 : f32 to vector<8x384xf32>
    %242 = arith.addf %241, %240 : vector<8x384xf32>
    %243 = arith.divf %241, %242 : vector<8x384xf32>
    %244 = vector.extract_strided_slice %237 {offsets = [0, 384], sizes = [8, 128], strides = [1, 1]} : vector<8x512xf32> to vector<8x128xf32>
    %245 = math.tanh %244 : vector<8x128xf32>
    %246 = vector.extract_strided_slice %243 {offsets = [0, 128], sizes = [8, 128], strides = [1, 1]} : vector<8x384xf32> to vector<8x128xf32>
    %c0_119 = arith.constant 0 : index
    %c0_120 = arith.constant 0 : index
    %247 = vector.load %arg8[%c0_119, %c0_120] : memref<8x128xf32, #tpu.memory_space<vmem>>, vector<8x128xf32>
    %248 = arith.mulf %246, %247 : vector<8x128xf32>
    %249 = vector.extract_strided_slice %243 {offsets = [0, 0], sizes = [8, 128], strides = [1, 1]} : vector<8x384xf32> to vector<8x128xf32>
    %250 = arith.mulf %249, %245 : vector<8x128xf32>
    %251 = arith.addf %248, %250 : vector<8x128xf32>
    %252 = vector.extract_strided_slice %243 {offsets = [0, 256], sizes = [8, 128], strides = [1, 1]} : vector<8x384xf32> to vector<8x128xf32>
    %253 = math.tanh %251 : vector<8x128xf32>
    %254 = arith.mulf %252, %253 : vector<8x128xf32>
    %255 = arith.truncf %254 : vector<8x128xf32> to vector<8x128xbf16>
    %c0_121 = arith.constant 0 : index
    %c0_122 = arith.constant 0 : index
    %256 = vector.load %arg8[%c0_121, %c0_122] : memref<8x128xf32, #tpu.memory_space<vmem>>, vector<8x128xf32>
    tpu.vector_store %arg8[%c0_121, %c0_122], %251 {strides = array<i32>} : memref<8x128xf32, #tpu.memory_space<vmem>>, vector<8x128xf32>,
    %c0_123 = arith.constant 0 : index
    %c0_124 = arith.constant 0 : index
    %257 = vector.load %arg7[%c0_123, %c0_124] : memref<8x128xbf16, #tpu.memory_space<vmem>>, vector<8x128xbf16>
    tpu.vector_store %arg7[%c0_123, %c0_124], %255 {strides = array<i32>} : memref<8x128xbf16, #tpu.memory_space<vmem>>, vector<8x128xbf16>,
    %258 = arith.index_cast %231 : i32 to index
    %c0_125 = arith.constant 0 : index
    %c0_126 = arith.constant 0 : index
    %259 = vector.load %arg6[%258, %c0_125, %c0_126] : memref<8x8x128xbf16, #tpu.memory_space<vmem>>, vector<1x8x128xbf16>
    %260 = vector.shape_cast %259 : vector<1x8x128xbf16> to vector<8x128xbf16>
    %261 = vector.shape_cast %255 : vector<8x128xbf16> to vector<1x8x128xbf16>
    tpu.vector_store %arg6[%258, %c0_125, %c0_126], %261 {strides = array<i32>} : memref<8x8x128xbf16, #tpu.memory_space<vmem>>, vector<1x8x128xbf16>,
    %c7_i32_127 = arith.constant 7 : i32
    %c7_i32_128 = arith.constant 7 : i32
    %262 = arith.subi %c7_i32_128, %c7_i32_127 : i32
    %263 = arith.muli %arg0, %262 : i32
    %c1_i32_129 = arith.constant 1 : i32
    %264 = arith.subi %c1_i32_129, %arg0 : i32
    %265 = arith.muli %264, %c7_i32_127 : i32
    %266 = arith.addi %263, %265 : i32
    %c0_130 = arith.constant 0 : index
    %c0_131 = arith.constant 0 : index
    %267 = vector.load %arg7[%c0_130, %c0_131] : memref<8x128xbf16, #tpu.memory_space<vmem>>, vector<8x128xbf16>
    %cst_132 = arith.constant dense<0.000000e+00> : vector<8x512xf32>
    %268 = tpu.matmul %267, %16, %cst_132 {dimension_numbers = #tpu.dot_dimension_numbers<[1], [0], [0], [1], [0, 0, 1, 1], [], []>} : vector<8x128xbf16>, vector<128x512xbf16>, vector<8x512xf32> -> vector<8x512xf32>
    %269 = arith.index_cast %266 : i32 to index
    %c0_133 = arith.constant 0 : index
    %c0_134 = arith.constant 0 : index
    %270 = vector.load %arg9[%269, %c0_133, %c0_134] : memref<8x8x512xf32, #tpu.memory_space<vmem>>, vector<1x8x512xf32>
    %271 = vector.shape_cast %270 : vector<1x8x512xf32> to vector<8x512xf32>
    %272 = arith.addf %268, %271 : vector<8x512xf32>
    %273 = vector.extract_strided_slice %272 {offsets = [0, 0], sizes = [8, 384], strides = [1, 1]} : vector<8x512xf32> to vector<8x384xf32>
    %274 = arith.negf %273 : vector<8x384xf32>
    %275 = math.exp %274 : vector<8x384xf32>
    %cst_135 = arith.constant 1.000000e+00 : f32
    %276 = vector.broadcast %cst_135 : f32 to vector<8x384xf32>
    %277 = arith.addf %276, %275 : vector<8x384xf32>
    %278 = arith.divf %276, %277 : vector<8x384xf32>
    %279 = vector.extract_strided_slice %272 {offsets = [0, 384], sizes = [8, 128], strides = [1, 1]} : vector<8x512xf32> to vector<8x128xf32>
    %280 = math.tanh %279 : vector<8x128xf32>
    %281 = vector.extract_strided_slice %278 {offsets = [0, 128], sizes = [8, 128], strides = [1, 1]} : vector<8x384xf32> to vector<8x128xf32>
    %c0_136 = arith.constant 0 : index
    %c0_137 = arith.constant 0 : index
    %282 = vector.load %arg8[%c0_136, %c0_137] : memref<8x128xf32, #tpu.memory_space<vmem>>, vector<8x128xf32>
    %283 = arith.mulf %281, %282 : vector<8x128xf32>
    %284 = vector.extract_strided_slice %278 {offsets = [0, 0], sizes = [8, 128], strides = [1, 1]} : vector<8x384xf32> to vector<8x128xf32>
    %285 = arith.mulf %284, %280 : vector<8x128xf32>
    %286 = arith.addf %283, %285 : vector<8x128xf32>
    %287 = vector.extract_strided_slice %278 {offsets = [0, 256], sizes = [8, 128], strides = [1, 1]} : vector<8x384xf32> to vector<8x128xf32>
    %288 = math.tanh %286 : vector<8x128xf32>
    %289 = arith.mulf %287, %288 : vector<8x128xf32>
    %290 = arith.truncf %289 : vector<8x128xf32> to vector<8x128xbf16>
    %c0_138 = arith.constant 0 : index
    %c0_139 = arith.constant 0 : index
    %291 = vector.load %arg8[%c0_138, %c0_139] : memref<8x128xf32, #tpu.memory_space<vmem>>, vector<8x128xf32>
    tpu.vector_store %arg8[%c0_138, %c0_139], %286 {strides = array<i32>} : memref<8x128xf32, #tpu.memory_space<vmem>>, vector<8x128xf32>,
    %c0_140 = arith.constant 0 : index
    %c0_141 = arith.constant 0 : index
    %292 = vector.load %arg7[%c0_140, %c0_141] : memref<8x128xbf16, #tpu.memory_space<vmem>>, vector<8x128xbf16>
    tpu.vector_store %arg7[%c0_140, %c0_141], %290 {strides = array<i32>} : memref<8x128xbf16, #tpu.memory_space<vmem>>, vector<8x128xbf16>,
    %293 = arith.index_cast %266 : i32 to index
    %c0_142 = arith.constant 0 : index
    %c0_143 = arith.constant 0 : index
    %294 = vector.load %arg6[%293, %c0_142, %c0_143] : memref<8x8x128xbf16, #tpu.memory_space<vmem>>, vector<1x8x128xbf16>
    %295 = vector.shape_cast %294 : vector<1x8x128xbf16> to vector<8x128xbf16>
    %296 = vector.shape_cast %290 : vector<8x128xbf16> to vector<1x8x128xbf16>
    tpu.vector_store %arg6[%293, %c0_142, %c0_143], %296 {strides = array<i32>} : memref<8x8x128xbf16, #tpu.memory_space<vmem>>, vector<1x8x128xbf16>,
    %c8_i32 = arith.constant 8 : i32
    return
  }
  func.func @transform_0(%arg0: i32, %arg1: i32) -> (i32, i32, i32) {
    %c0_i32 = arith.constant 0 : i32
    %0 = arith.subi %c0_i32, %arg1 : i32
    %1 = arith.muli %arg0, %0 : i32
    %c1_i32 = arith.constant 1 : i32
    %2 = arith.subi %c1_i32, %arg0 : i32
    %3 = arith.muli %2, %arg1 : i32
    %4 = arith.addi %1, %3 : i32
    %c0_i32_0 = arith.constant 0 : i32
    %c0_i32_1 = arith.constant 0 : i32
    %c0_i32_2 = arith.constant 0 : i32
    return %4, %c0_i32_0, %c0_i32_1 : i32, i32, i32
  }
  func.func @transform_1(%arg0: i32, %arg1: i32) -> (i32, i32, i32) {
    %c0_i32 = arith.constant 0 : i32
    %c0_i32_0 = arith.constant 0 : i32
    %c0_i32_1 = arith.constant 0 : i32
    return %arg0, %c0_i32, %c0_i32_0 : i32, i32, i32
  }
  func.func @transform_2(%arg0: i32, %arg1: i32) -> (i32, i32, i32) {
    %c0_i32 = arith.constant 0 : i32
    %c0_i32_0 = arith.constant 0 : i32
    %c0_i32_1 = arith.constant 0 : i32
    return %arg0, %c0_i32, %c0_i32_0 : i32, i32, i32
  }
  func.func @transform_3(%arg0: i32, %arg1: i32) -> (i32, i32, i32) {
    %c0_i32 = arith.constant 0 : i32
    %c0_i32_0 = arith.constant 0 : i32
    %c0_i32_1 = arith.constant 0 : i32
    return %arg0, %c0_i32, %c0_i32_0 : i32, i32, i32
  }
  func.func @transform_4(%arg0: i32, %arg1: i32) -> (i32, i32, i32) {
    %c0_i32 = arith.constant 0 : i32
    %0 = arith.subi %c0_i32, %arg1 : i32
    %1 = arith.muli %arg0, %0 : i32
    %c1_i32 = arith.constant 1 : i32
    %2 = arith.subi %c1_i32, %arg0 : i32
    %3 = arith.muli %2, %arg1 : i32
    %4 = arith.addi %1, %3 : i32
    %c0_i32_0 = arith.constant 0 : i32
    %c0_i32_1 = arith.constant 0 : i32
    return %4, %c0_i32_0, %arg0 : i32, i32, i32
  }
}

module attributes {stable_mosaic.version = 11 : i64} {
  func.func @_bilstm_kernel(%arg0: i32, %arg1: i32, %arg2: memref<8x8x32xbf16, #tpu.memory_space<vmem>>, %arg3: memref<1x32x512xbf16, #tpu.memory_space<vmem>>, %arg4: memref<1x128x512xbf16, #tpu.memory_space<vmem>>, %arg5: memref<1x1x512xf32, #tpu.memory_space<vmem>>, %arg6: memref<8x8x128xbf16, #tpu.memory_space<vmem>>, %arg7: memref<8x128xbf16, #tpu.memory_space<vmem>>, %arg8: memref<8x128xf32, #tpu.memory_space<vmem>>, %arg9: memref<8x8x512xf32, #tpu.memory_space<vmem>>) attributes {dimension_semantics = [#tpu.dimension_semantics<parallel>, #tpu.dimension_semantics<arbitrary>], iteration_bounds = array<i64: 2, 1>, scalar_prefetch = 0 : i64, scratch_operands = 3 : i64, tpu.core_type = #tpu.core_type<tc>, window_params = [{transform_indices = @transform_0, window_bounds = array<i64: 8, 8, 32>}, {transform_indices = @transform_1, window_bounds = array<i64: 1, 32, 512>}, {transform_indices = @transform_2, window_bounds = array<i64: 1, 128, 512>}, {transform_indices = @transform_3, window_bounds = array<i64: 1, 1, 512>}, {transform_indices = @transform_4, window_bounds = array<i64: 8, 8, 128>}]} {
    %c0_i32 = arith.constant 0 : i32
    %0 = arith.cmpi eq, %arg1, %c0_i32 : i32
    %1 = arith.extui %0 : i1 to i32
    %c0_i32_0 = arith.constant 0 : i32
    %2 = arith.cmpi ne, %1, %c0_i32_0 : i32
    scf.if %2 {
      %cst_144 = arith.constant 0.000000e+00 : bf16
      %297 = vector.broadcast %cst_144 : bf16 to vector<8x128xbf16>
      %c0_145 = arith.constant 0 : index
      %c0_146 = arith.constant 0 : index
      %298 = vector.load %arg7[%c0_145, %c0_146] : memref<8x128xbf16, #tpu.memory_space<vmem>>, vector<8x128xbf16>
      tpu.vector_store %arg7[%c0_145, %c0_146], %297 {strides = array<i32>} : memref<8x128xbf16, #tpu.memory_space<vmem>>, vector<8x128xbf16>,
      %cst_147 = arith.constant 0.000000e+00 : f32
      %299 = vector.broadcast %cst_147 : f32 to vector<8x128xf32>
      %c0_148 = arith.constant 0 : index
      %c0_149 = arith.constant 0 : index
      %300 = vector.load %arg8[%c0_148, %c0_149] : memref<8x128xf32, #tpu.memory_space<vmem>>, vector<8x128xf32>
      tpu.vector_store %arg8[%c0_148, %c0_149], %299 {strides = array<i32>} : memref<8x128xf32, #tpu.memory_space<vmem>>, vector<8x128xf32>,
    } else {
    }
    %c0 = arith.constant 0 : index
    %c0_1 = arith.constant 0 : index
    %c0_2 = arith.constant 0 : index
    %3 = vector.load %arg2[%c0, %c0_1, %c0_2] : memref<8x8x32xbf16, #tpu.memory_space<vmem>>, vector<8x8x32xbf16>
    %4 = vector.shape_cast %3 : vector<8x8x32xbf16> to vector<64x32xbf16>
    %c0_3 = arith.constant 0 : index
    %c0_4 = arith.constant 0 : index
    %c0_5 = arith.constant 0 : index
    %5 = vector.load %arg3[%c0_3, %c0_4, %c0_5] : memref<1x32x512xbf16, #tpu.memory_space<vmem>>, vector<1x32x512xbf16>
    %6 = vector.shape_cast %5 : vector<1x32x512xbf16> to vector<32x512xbf16>
    %cst = arith.constant dense<0.000000e+00> : vector<64x512xf32>
    %7 = tpu.matmul %4, %6, %cst {dimension_numbers = #tpu.dot_dimension_numbers<[1], [0], [0], [1], [0, 0, 1, 1], [], []>} : vector<64x32xbf16>, vector<32x512xbf16>, vector<64x512xf32> -> vector<64x512xf32>
    %8 = vector.shape_cast %7 : vector<64x512xf32> to vector<8x8x512xf32>
    %c0_6 = arith.constant 0 : index
    %c0_7 = arith.constant 0 : index
    %c0_8 = arith.constant 0 : index
    %9 = vector.load %arg5[%c0_6, %c0_7, %c0_8] : memref<1x1x512xf32, #tpu.memory_space<vmem>>, vector<1x1x512xf32>
    %10 = vector.shape_cast %9 : vector<1x1x512xf32> to vector<1x512xf32>
    %11 = vector.shape_cast %10 : vector<1x512xf32> to vector<1x1x512xf32>
    %12 = vector.broadcast %11 : vector<1x1x512xf32> to vector<8x8x512xf32>
    %13 = arith.addf %8, %12 : vector<8x8x512xf32>
    %c0_9 = arith.constant 0 : index
    %c0_10 = arith.constant 0 : index
    %c0_11 = arith.constant 0 : index
    %14 = vector.load %arg9[%c0_9, %c0_10, %c0_11] : memref<8x8x512xf32, #tpu.memory_space<vmem>>, vector<8x8x512xf32>
    tpu.vector_store %arg9[%c0_9, %c0_10, %c0_11], %13 {strides = array<i32>} : memref<8x8x512xf32, #tpu.memory_space<vmem>>, vector<8x8x512xf32>,
    %c0_12 = arith.constant 0 : index
    %c0_13 = arith.constant 0 : index
    %c0_14 = arith.constant 0 : index
    %15 = vector.load %arg4[%c0_12, %c0_13, %c0_14] : memref<1x128x512xbf16, #tpu.memory_space<vmem>>, vector<1x128x512xbf16>
    %16 = vector.shape_cast %15 : vector<1x128x512xbf16> to vector<128x512xbf16>
    %c0_i32_15 = arith.constant 0 : i32
    %c7_i32 = arith.constant 7 : i32
    %17 = arith.subi %c7_i32, %c0_i32_15 : i32
    %18 = arith.muli %arg0, %17 : i32
    %c1_i32 = arith.constant 1 : i32
    %19 = arith.subi %c1_i32, %arg0 : i32
    %20 = arith.muli %19, %c0_i32_15 : i32
    %21 = arith.addi %18, %20 : i32
    %c0_16 = arith.constant 0 : index
    %c0_17 = arith.constant 0 : index
    %22 = vector.load %arg7[%c0_16, %c0_17] : memref<8x128xbf16, #tpu.memory_space<vmem>>, vector<8x128xbf16>
    %cst_18 = arith.constant dense<0.000000e+00> : vector<8x512xf32>
    %23 = tpu.matmul %22, %16, %cst_18 {dimension_numbers = #tpu.dot_dimension_numbers<[1], [0], [0], [1], [0, 0, 1, 1], [], []>} : vector<8x128xbf16>, vector<128x512xbf16>, vector<8x512xf32> -> vector<8x512xf32>
    %24 = arith.index_cast %21 : i32 to index
    %c0_19 = arith.constant 0 : index
    %c0_20 = arith.constant 0 : index
    %25 = vector.load %arg9[%24, %c0_19, %c0_20] : memref<8x8x512xf32, #tpu.memory_space<vmem>>, vector<1x8x512xf32>
    %26 = vector.shape_cast %25 : vector<1x8x512xf32> to vector<8x512xf32>
    %27 = arith.addf %23, %26 : vector<8x512xf32>
    %28 = vector.extract_strided_slice %27 {offsets = [0, 0], sizes = [8, 384], strides = [1, 1]} : vector<8x512xf32> to vector<8x384xf32>
    %29 = arith.negf %28 : vector<8x384xf32>
    %30 = math.exp %29 : vector<8x384xf32>
    %cst_21 = arith.constant 1.000000e+00 : f32
    %31 = vector.broadcast %cst_21 : f32 to vector<8x384xf32>
    %32 = arith.addf %31, %30 : vector<8x384xf32>
    %33 = arith.divf %31, %32 : vector<8x384xf32>
    %34 = vector.extract_strided_slice %27 {offsets = [0, 384], sizes = [8, 128], strides = [1, 1]} : vector<8x512xf32> to vector<8x128xf32>
    %35 = math.tanh %34 : vector<8x128xf32>
    %36 = vector.extract_strided_slice %33 {offsets = [0, 128], sizes = [8, 128], strides = [1, 1]} : vector<8x384xf32> to vector<8x128xf32>
    %c0_22 = arith.constant 0 : index
    %c0_23 = arith.constant 0 : index
    %37 = vector.load %arg8[%c0_22, %c0_23] : memref<8x128xf32, #tpu.memory_space<vmem>>, vector<8x128xf32>
    %38 = arith.mulf %36, %37 : vector<8x128xf32>
    %39 = vector.extract_strided_slice %33 {offsets = [0, 0], sizes = [8, 128], strides = [1, 1]} : vector<8x384xf32> to vector<8x128xf32>
    %40 = arith.mulf %39, %35 : vector<8x128xf32>
    %41 = arith.addf %38, %40 : vector<8x128xf32>
    %42 = vector.extract_strided_slice %33 {offsets = [0, 256], sizes = [8, 128], strides = [1, 1]} : vector<8x384xf32> to vector<8x128xf32>
    %43 = math.tanh %41 : vector<8x128xf32>
    %44 = arith.mulf %42, %43 : vector<8x128xf32>
    %45 = arith.truncf %44 : vector<8x128xf32> to vector<8x128xbf16>
    %c0_24 = arith.constant 0 : index
    %c0_25 = arith.constant 0 : index
    %46 = vector.load %arg8[%c0_24, %c0_25] : memref<8x128xf32, #tpu.memory_space<vmem>>, vector<8x128xf32>
    tpu.vector_store %arg8[%c0_24, %c0_25], %41 {strides = array<i32>} : memref<8x128xf32, #tpu.memory_space<vmem>>, vector<8x128xf32>,
    %c0_26 = arith.constant 0 : index
    %c0_27 = arith.constant 0 : index
    %47 = vector.load %arg7[%c0_26, %c0_27] : memref<8x128xbf16, #tpu.memory_space<vmem>>, vector<8x128xbf16>
    tpu.vector_store %arg7[%c0_26, %c0_27], %45 {strides = array<i32>} : memref<8x128xbf16, #tpu.memory_space<vmem>>, vector<8x128xbf16>,
    %48 = arith.index_cast %21 : i32 to index
    %c0_28 = arith.constant 0 : index
    %c0_29 = arith.constant 0 : index
    %49 = vector.load %arg6[%48, %c0_28, %c0_29] : memref<8x8x128xbf16, #tpu.memory_space<vmem>>, vector<1x8x128xbf16>
    %50 = vector.shape_cast %49 : vector<1x8x128xbf16> to vector<8x128xbf16>
    %51 = vector.shape_cast %45 : vector<8x128xbf16> to vector<1x8x128xbf16>
    tpu.vector_store %arg6[%48, %c0_28, %c0_29], %51 {strides = array<i32>} : memref<8x8x128xbf16, #tpu.memory_space<vmem>>, vector<1x8x128xbf16>,
    %c1_i32_30 = arith.constant 1 : i32
    %c7_i32_31 = arith.constant 7 : i32
    %52 = arith.subi %c7_i32_31, %c1_i32_30 : i32
    %53 = arith.muli %arg0, %52 : i32
    %c1_i32_32 = arith.constant 1 : i32
    %54 = arith.subi %c1_i32_32, %arg0 : i32
    %55 = arith.muli %54, %c1_i32_30 : i32
    %56 = arith.addi %53, %55 : i32
    %c0_33 = arith.constant 0 : index
    %c0_34 = arith.constant 0 : index
    %57 = vector.load %arg7[%c0_33, %c0_34] : memref<8x128xbf16, #tpu.memory_space<vmem>>, vector<8x128xbf16>
    %cst_35 = arith.constant dense<0.000000e+00> : vector<8x512xf32>
    %58 = tpu.matmul %57, %16, %cst_35 {dimension_numbers = #tpu.dot_dimension_numbers<[1], [0], [0], [1], [0, 0, 1, 1], [], []>} : vector<8x128xbf16>, vector<128x512xbf16>, vector<8x512xf32> -> vector<8x512xf32>
    %59 = arith.index_cast %56 : i32 to index
    %c0_36 = arith.constant 0 : index
    %c0_37 = arith.constant 0 : index
    %60 = vector.load %arg9[%59, %c0_36, %c0_37] : memref<8x8x512xf32, #tpu.memory_space<vmem>>, vector<1x8x512xf32>
    %61 = vector.shape_cast %60 : vector<1x8x512xf32> to vector<8x512xf32>
    %62 = arith.addf %58, %61 : vector<8x512xf32>
    %63 = vector.extract_strided_slice %62 {offsets = [0, 0], sizes = [8, 384], strides = [1, 1]} : vector<8x512xf32> to vector<8x384xf32>
    %64 = arith.negf %63 : vector<8x384xf32>
    %65 = math.exp %64 : vector<8x384xf32>
    %cst_38 = arith.constant 1.000000e+00 : f32
    %66 = vector.broadcast %cst_38 : f32 to vector<8x384xf32>
    %67 = arith.addf %66, %65 : vector<8x384xf32>
    %68 = arith.divf %66, %67 : vector<8x384xf32>
    %69 = vector.extract_strided_slice %62 {offsets = [0, 384], sizes = [8, 128], strides = [1, 1]} : vector<8x512xf32> to vector<8x128xf32>
    %70 = math.tanh %69 : vector<8x128xf32>
    %71 = vector.extract_strided_slice %68 {offsets = [0, 128], sizes = [8, 128], strides = [1, 1]} : vector<8x384xf32> to vector<8x128xf32>
    %c0_39 = arith.constant 0 : index
    %c0_40 = arith.constant 0 : index
    %72 = vector.load %arg8[%c0_39, %c0_40] : memref<8x128xf32, #tpu.memory_space<vmem>>, vector<8x128xf32>
    %73 = arith.mulf %71, %72 : vector<8x128xf32>
    %74 = vector.extract_strided_slice %68 {offsets = [0, 0], sizes = [8, 128], strides = [1, 1]} : vector<8x384xf32> to vector<8x128xf32>
    %75 = arith.mulf %74, %70 : vector<8x128xf32>
    %76 = arith.addf %73, %75 : vector<8x128xf32>
    %77 = vector.extract_strided_slice %68 {offsets = [0, 256], sizes = [8, 128], strides = [1, 1]} : vector<8x384xf32> to vector<8x128xf32>
    %78 = math.tanh %76 : vector<8x128xf32>
    %79 = arith.mulf %77, %78 : vector<8x128xf32>
    %80 = arith.truncf %79 : vector<8x128xf32> to vector<8x128xbf16>
    %c0_41 = arith.constant 0 : index
    %c0_42 = arith.constant 0 : index
    %81 = vector.load %arg8[%c0_41, %c0_42] : memref<8x128xf32, #tpu.memory_space<vmem>>, vector<8x128xf32>
    tpu.vector_store %arg8[%c0_41, %c0_42], %76 {strides = array<i32>} : memref<8x128xf32, #tpu.memory_space<vmem>>, vector<8x128xf32>,
    %c0_43 = arith.constant 0 : index
    %c0_44 = arith.constant 0 : index
    %82 = vector.load %arg7[%c0_43, %c0_44] : memref<8x128xbf16, #tpu.memory_space<vmem>>, vector<8x128xbf16>
    tpu.vector_store %arg7[%c0_43, %c0_44], %80 {strides = array<i32>} : memref<8x128xbf16, #tpu.memory_space<vmem>>, vector<8x128xbf16>,
    %83 = arith.index_cast %56 : i32 to index
    %c0_45 = arith.constant 0 : index
    %c0_46 = arith.constant 0 : index
    %84 = vector.load %arg6[%83, %c0_45, %c0_46] : memref<8x8x128xbf16, #tpu.memory_space<vmem>>, vector<1x8x128xbf16>
    %85 = vector.shape_cast %84 : vector<1x8x128xbf16> to vector<8x128xbf16>
    %86 = vector.shape_cast %80 : vector<8x128xbf16> to vector<1x8x128xbf16>
    tpu.vector_store %arg6[%83, %c0_45, %c0_46], %86 {strides = array<i32>} : memref<8x8x128xbf16, #tpu.memory_space<vmem>>, vector<1x8x128xbf16>,
    %c2_i32 = arith.constant 2 : i32
    %c7_i32_47 = arith.constant 7 : i32
    %87 = arith.subi %c7_i32_47, %c2_i32 : i32
    %88 = arith.muli %arg0, %87 : i32
    %c1_i32_48 = arith.constant 1 : i32
    %89 = arith.subi %c1_i32_48, %arg0 : i32
    %90 = arith.muli %89, %c2_i32 : i32
    %91 = arith.addi %88, %90 : i32
    %c0_49 = arith.constant 0 : index
    %c0_50 = arith.constant 0 : index
    %92 = vector.load %arg7[%c0_49, %c0_50] : memref<8x128xbf16, #tpu.memory_space<vmem>>, vector<8x128xbf16>
    %cst_51 = arith.constant dense<0.000000e+00> : vector<8x512xf32>
    %93 = tpu.matmul %92, %16, %cst_51 {dimension_numbers = #tpu.dot_dimension_numbers<[1], [0], [0], [1], [0, 0, 1, 1], [], []>} : vector<8x128xbf16>, vector<128x512xbf16>, vector<8x512xf32> -> vector<8x512xf32>
    %94 = arith.index_cast %91 : i32 to index
    %c0_52 = arith.constant 0 : index
    %c0_53 = arith.constant 0 : index
    %95 = vector.load %arg9[%94, %c0_52, %c0_53] : memref<8x8x512xf32, #tpu.memory_space<vmem>>, vector<1x8x512xf32>
    %96 = vector.shape_cast %95 : vector<1x8x512xf32> to vector<8x512xf32>
    %97 = arith.addf %93, %96 : vector<8x512xf32>
    %98 = vector.extract_strided_slice %97 {offsets = [0, 0], sizes = [8, 384], strides = [1, 1]} : vector<8x512xf32> to vector<8x384xf32>
    %99 = arith.negf %98 : vector<8x384xf32>
    %100 = math.exp %99 : vector<8x384xf32>
    %cst_54 = arith.constant 1.000000e+00 : f32
    %101 = vector.broadcast %cst_54 : f32 to vector<8x384xf32>
    %102 = arith.addf %101, %100 : vector<8x384xf32>
    %103 = arith.divf %101, %102 : vector<8x384xf32>
    %104 = vector.extract_strided_slice %97 {offsets = [0, 384], sizes = [8, 128], strides = [1, 1]} : vector<8x512xf32> to vector<8x128xf32>
    %105 = math.tanh %104 : vector<8x128xf32>
    %106 = vector.extract_strided_slice %103 {offsets = [0, 128], sizes = [8, 128], strides = [1, 1]} : vector<8x384xf32> to vector<8x128xf32>
    %c0_55 = arith.constant 0 : index
    %c0_56 = arith.constant 0 : index
    %107 = vector.load %arg8[%c0_55, %c0_56] : memref<8x128xf32, #tpu.memory_space<vmem>>, vector<8x128xf32>
    %108 = arith.mulf %106, %107 : vector<8x128xf32>
    %109 = vector.extract_strided_slice %103 {offsets = [0, 0], sizes = [8, 128], strides = [1, 1]} : vector<8x384xf32> to vector<8x128xf32>
    %110 = arith.mulf %109, %105 : vector<8x128xf32>
    %111 = arith.addf %108, %110 : vector<8x128xf32>
    %112 = vector.extract_strided_slice %103 {offsets = [0, 256], sizes = [8, 128], strides = [1, 1]} : vector<8x384xf32> to vector<8x128xf32>
    %113 = math.tanh %111 : vector<8x128xf32>
    %114 = arith.mulf %112, %113 : vector<8x128xf32>
    %115 = arith.truncf %114 : vector<8x128xf32> to vector<8x128xbf16>
    %c0_57 = arith.constant 0 : index
    %c0_58 = arith.constant 0 : index
    %116 = vector.load %arg8[%c0_57, %c0_58] : memref<8x128xf32, #tpu.memory_space<vmem>>, vector<8x128xf32>
    tpu.vector_store %arg8[%c0_57, %c0_58], %111 {strides = array<i32>} : memref<8x128xf32, #tpu.memory_space<vmem>>, vector<8x128xf32>,
    %c0_59 = arith.constant 0 : index
    %c0_60 = arith.constant 0 : index
    %117 = vector.load %arg7[%c0_59, %c0_60] : memref<8x128xbf16, #tpu.memory_space<vmem>>, vector<8x128xbf16>
    tpu.vector_store %arg7[%c0_59, %c0_60], %115 {strides = array<i32>} : memref<8x128xbf16, #tpu.memory_space<vmem>>, vector<8x128xbf16>,
    %118 = arith.index_cast %91 : i32 to index
    %c0_61 = arith.constant 0 : index
    %c0_62 = arith.constant 0 : index
    %119 = vector.load %arg6[%118, %c0_61, %c0_62] : memref<8x8x128xbf16, #tpu.memory_space<vmem>>, vector<1x8x128xbf16>
    %120 = vector.shape_cast %119 : vector<1x8x128xbf16> to vector<8x128xbf16>
    %121 = vector.shape_cast %115 : vector<8x128xbf16> to vector<1x8x128xbf16>
    tpu.vector_store %arg6[%118, %c0_61, %c0_62], %121 {strides = array<i32>} : memref<8x8x128xbf16, #tpu.memory_space<vmem>>, vector<1x8x128xbf16>,
    %c3_i32 = arith.constant 3 : i32
    %c7_i32_63 = arith.constant 7 : i32
    %122 = arith.subi %c7_i32_63, %c3_i32 : i32
    %123 = arith.muli %arg0, %122 : i32
    %c1_i32_64 = arith.constant 1 : i32
    %124 = arith.subi %c1_i32_64, %arg0 : i32
    %125 = arith.muli %124, %c3_i32 : i32
    %126 = arith.addi %123, %125 : i32
    %c0_65 = arith.constant 0 : index
    %c0_66 = arith.constant 0 : index
    %127 = vector.load %arg7[%c0_65, %c0_66] : memref<8x128xbf16, #tpu.memory_space<vmem>>, vector<8x128xbf16>
    %cst_67 = arith.constant dense<0.000000e+00> : vector<8x512xf32>
    %128 = tpu.matmul %127, %16, %cst_67 {dimension_numbers = #tpu.dot_dimension_numbers<[1], [0], [0], [1], [0, 0, 1, 1], [], []>} : vector<8x128xbf16>, vector<128x512xbf16>, vector<8x512xf32> -> vector<8x512xf32>
    %129 = arith.index_cast %126 : i32 to index
    %c0_68 = arith.constant 0 : index
    %c0_69 = arith.constant 0 : index
    %130 = vector.load %arg9[%129, %c0_68, %c0_69] : memref<8x8x512xf32, #tpu.memory_space<vmem>>, vector<1x8x512xf32>
    %131 = vector.shape_cast %130 : vector<1x8x512xf32> to vector<8x512xf32>
    %132 = arith.addf %128, %131 : vector<8x512xf32>
    %133 = vector.extract_strided_slice %132 {offsets = [0, 0], sizes = [8, 384], strides = [1, 1]} : vector<8x512xf32> to vector<8x384xf32>
    %134 = arith.negf %133 : vector<8x384xf32>
    %135 = math.exp %134 : vector<8x384xf32>
    %cst_70 = arith.constant 1.000000e+00 : f32
    %136 = vector.broadcast %cst_70 : f32 to vector<8x384xf32>
    %137 = arith.addf %136, %135 : vector<8x384xf32>
    %138 = arith.divf %136, %137 : vector<8x384xf32>
    %139 = vector.extract_strided_slice %132 {offsets = [0, 384], sizes = [8, 128], strides = [1, 1]} : vector<8x512xf32> to vector<8x128xf32>
    %140 = math.tanh %139 : vector<8x128xf32>
    %141 = vector.extract_strided_slice %138 {offsets = [0, 128], sizes = [8, 128], strides = [1, 1]} : vector<8x384xf32> to vector<8x128xf32>
    %c0_71 = arith.constant 0 : index
    %c0_72 = arith.constant 0 : index
    %142 = vector.load %arg8[%c0_71, %c0_72] : memref<8x128xf32, #tpu.memory_space<vmem>>, vector<8x128xf32>
    %143 = arith.mulf %141, %142 : vector<8x128xf32>
    %144 = vector.extract_strided_slice %138 {offsets = [0, 0], sizes = [8, 128], strides = [1, 1]} : vector<8x384xf32> to vector<8x128xf32>
    %145 = arith.mulf %144, %140 : vector<8x128xf32>
    %146 = arith.addf %143, %145 : vector<8x128xf32>
    %147 = vector.extract_strided_slice %138 {offsets = [0, 256], sizes = [8, 128], strides = [1, 1]} : vector<8x384xf32> to vector<8x128xf32>
    %148 = math.tanh %146 : vector<8x128xf32>
    %149 = arith.mulf %147, %148 : vector<8x128xf32>
    %150 = arith.truncf %149 : vector<8x128xf32> to vector<8x128xbf16>
    %c0_73 = arith.constant 0 : index
    %c0_74 = arith.constant 0 : index
    %151 = vector.load %arg8[%c0_73, %c0_74] : memref<8x128xf32, #tpu.memory_space<vmem>>, vector<8x128xf32>
    tpu.vector_store %arg8[%c0_73, %c0_74], %146 {strides = array<i32>} : memref<8x128xf32, #tpu.memory_space<vmem>>, vector<8x128xf32>,
    %c0_75 = arith.constant 0 : index
    %c0_76 = arith.constant 0 : index
    %152 = vector.load %arg7[%c0_75, %c0_76] : memref<8x128xbf16, #tpu.memory_space<vmem>>, vector<8x128xbf16>
    tpu.vector_store %arg7[%c0_75, %c0_76], %150 {strides = array<i32>} : memref<8x128xbf16, #tpu.memory_space<vmem>>, vector<8x128xbf16>,
    %153 = arith.index_cast %126 : i32 to index
    %c0_77 = arith.constant 0 : index
    %c0_78 = arith.constant 0 : index
    %154 = vector.load %arg6[%153, %c0_77, %c0_78] : memref<8x8x128xbf16, #tpu.memory_space<vmem>>, vector<1x8x128xbf16>
    %155 = vector.shape_cast %154 : vector<1x8x128xbf16> to vector<8x128xbf16>
    %156 = vector.shape_cast %150 : vector<8x128xbf16> to vector<1x8x128xbf16>
    tpu.vector_store %arg6[%153, %c0_77, %c0_78], %156 {strides = array<i32>} : memref<8x8x128xbf16, #tpu.memory_space<vmem>>, vector<1x8x128xbf16>,
    %c4_i32 = arith.constant 4 : i32
    %c7_i32_79 = arith.constant 7 : i32
    %157 = arith.subi %c7_i32_79, %c4_i32 : i32
    %158 = arith.muli %arg0, %157 : i32
    %c1_i32_80 = arith.constant 1 : i32
    %159 = arith.subi %c1_i32_80, %arg0 : i32
    %160 = arith.muli %159, %c4_i32 : i32
    %161 = arith.addi %158, %160 : i32
    %c0_81 = arith.constant 0 : index
    %c0_82 = arith.constant 0 : index
    %162 = vector.load %arg7[%c0_81, %c0_82] : memref<8x128xbf16, #tpu.memory_space<vmem>>, vector<8x128xbf16>
    %cst_83 = arith.constant dense<0.000000e+00> : vector<8x512xf32>
    %163 = tpu.matmul %162, %16, %cst_83 {dimension_numbers = #tpu.dot_dimension_numbers<[1], [0], [0], [1], [0, 0, 1, 1], [], []>} : vector<8x128xbf16>, vector<128x512xbf16>, vector<8x512xf32> -> vector<8x512xf32>
    %164 = arith.index_cast %161 : i32 to index
    %c0_84 = arith.constant 0 : index
    %c0_85 = arith.constant 0 : index
    %165 = vector.load %arg9[%164, %c0_84, %c0_85] : memref<8x8x512xf32, #tpu.memory_space<vmem>>, vector<1x8x512xf32>
    %166 = vector.shape_cast %165 : vector<1x8x512xf32> to vector<8x512xf32>
    %167 = arith.addf %163, %166 : vector<8x512xf32>
    %168 = vector.extract_strided_slice %167 {offsets = [0, 0], sizes = [8, 384], strides = [1, 1]} : vector<8x512xf32> to vector<8x384xf32>
    %169 = arith.negf %168 : vector<8x384xf32>
    %170 = math.exp %169 : vector<8x384xf32>
    %cst_86 = arith.constant 1.000000e+00 : f32
    %171 = vector.broadcast %cst_86 : f32 to vector<8x384xf32>
    %172 = arith.addf %171, %170 : vector<8x384xf32>
    %173 = arith.divf %171, %172 : vector<8x384xf32>
    %174 = vector.extract_strided_slice %167 {offsets = [0, 384], sizes = [8, 128], strides = [1, 1]} : vector<8x512xf32> to vector<8x128xf32>
    %175 = math.tanh %174 : vector<8x128xf32>
    %176 = vector.extract_strided_slice %173 {offsets = [0, 128], sizes = [8, 128], strides = [1, 1]} : vector<8x384xf32> to vector<8x128xf32>
    %c0_87 = arith.constant 0 : index
    %c0_88 = arith.constant 0 : index
    %177 = vector.load %arg8[%c0_87, %c0_88] : memref<8x128xf32, #tpu.memory_space<vmem>>, vector<8x128xf32>
    %178 = arith.mulf %176, %177 : vector<8x128xf32>
    %179 = vector.extract_strided_slice %173 {offsets = [0, 0], sizes = [8, 128], strides = [1, 1]} : vector<8x384xf32> to vector<8x128xf32>
    %180 = arith.mulf %179, %175 : vector<8x128xf32>
    %181 = arith.addf %178, %180 : vector<8x128xf32>
    %182 = vector.extract_strided_slice %173 {offsets = [0, 256], sizes = [8, 128], strides = [1, 1]} : vector<8x384xf32> to vector<8x128xf32>
    %183 = math.tanh %181 : vector<8x128xf32>
    %184 = arith.mulf %182, %183 : vector<8x128xf32>
    %185 = arith.truncf %184 : vector<8x128xf32> to vector<8x128xbf16>
    %c0_89 = arith.constant 0 : index
    %c0_90 = arith.constant 0 : index
    %186 = vector.load %arg8[%c0_89, %c0_90] : memref<8x128xf32, #tpu.memory_space<vmem>>, vector<8x128xf32>
    tpu.vector_store %arg8[%c0_89, %c0_90], %181 {strides = array<i32>} : memref<8x128xf32, #tpu.memory_space<vmem>>, vector<8x128xf32>,
    %c0_91 = arith.constant 0 : index
    %c0_92 = arith.constant 0 : index
    %187 = vector.load %arg7[%c0_91, %c0_92] : memref<8x128xbf16, #tpu.memory_space<vmem>>, vector<8x128xbf16>
    tpu.vector_store %arg7[%c0_91, %c0_92], %185 {strides = array<i32>} : memref<8x128xbf16, #tpu.memory_space<vmem>>, vector<8x128xbf16>,
    %188 = arith.index_cast %161 : i32 to index
    %c0_93 = arith.constant 0 : index
    %c0_94 = arith.constant 0 : index
    %189 = vector.load %arg6[%188, %c0_93, %c0_94] : memref<8x8x128xbf16, #tpu.memory_space<vmem>>, vector<1x8x128xbf16>
    %190 = vector.shape_cast %189 : vector<1x8x128xbf16> to vector<8x128xbf16>
    %191 = vector.shape_cast %185 : vector<8x128xbf16> to vector<1x8x128xbf16>
    tpu.vector_store %arg6[%188, %c0_93, %c0_94], %191 {strides = array<i32>} : memref<8x8x128xbf16, #tpu.memory_space<vmem>>, vector<1x8x128xbf16>,
    %c5_i32 = arith.constant 5 : i32
    %c7_i32_95 = arith.constant 7 : i32
    %192 = arith.subi %c7_i32_95, %c5_i32 : i32
    %193 = arith.muli %arg0, %192 : i32
    %c1_i32_96 = arith.constant 1 : i32
    %194 = arith.subi %c1_i32_96, %arg0 : i32
    %195 = arith.muli %194, %c5_i32 : i32
    %196 = arith.addi %193, %195 : i32
    %c0_97 = arith.constant 0 : index
    %c0_98 = arith.constant 0 : index
    %197 = vector.load %arg7[%c0_97, %c0_98] : memref<8x128xbf16, #tpu.memory_space<vmem>>, vector<8x128xbf16>
    %cst_99 = arith.constant dense<0.000000e+00> : vector<8x512xf32>
    %198 = tpu.matmul %197, %16, %cst_99 {dimension_numbers = #tpu.dot_dimension_numbers<[1], [0], [0], [1], [0, 0, 1, 1], [], []>} : vector<8x128xbf16>, vector<128x512xbf16>, vector<8x512xf32> -> vector<8x512xf32>
    %199 = arith.index_cast %196 : i32 to index
    %c0_100 = arith.constant 0 : index
    %c0_101 = arith.constant 0 : index
    %200 = vector.load %arg9[%199, %c0_100, %c0_101] : memref<8x8x512xf32, #tpu.memory_space<vmem>>, vector<1x8x512xf32>
    %201 = vector.shape_cast %200 : vector<1x8x512xf32> to vector<8x512xf32>
    %202 = arith.addf %198, %201 : vector<8x512xf32>
    %203 = vector.extract_strided_slice %202 {offsets = [0, 0], sizes = [8, 384], strides = [1, 1]} : vector<8x512xf32> to vector<8x384xf32>
    %204 = arith.negf %203 : vector<8x384xf32>
    %205 = math.exp %204 : vector<8x384xf32>
    %cst_102 = arith.constant 1.000000e+00 : f32
    %206 = vector.broadcast %cst_102 : f32 to vector<8x384xf32>
    %207 = arith.addf %206, %205 : vector<8x384xf32>
    %208 = arith.divf %206, %207 : vector<8x384xf32>
    %209 = vector.extract_strided_slice %202 {offsets = [0, 384], sizes = [8, 128], strides = [1, 1]} : vector<8x512xf32> to vector<8x128xf32>
    %210 = math.tanh %209 : vector<8x128xf32>
    %211 = vector.extract_strided_slice %208 {offsets = [0, 128], sizes = [8, 128], strides = [1, 1]} : vector<8x384xf32> to vector<8x128xf32>
    %c0_103 = arith.constant 0 : index
    %c0_104 = arith.constant 0 : index
    %212 = vector.load %arg8[%c0_103, %c0_104] : memref<8x128xf32, #tpu.memory_space<vmem>>, vector<8x128xf32>
    %213 = arith.mulf %211, %212 : vector<8x128xf32>
    %214 = vector.extract_strided_slice %208 {offsets = [0, 0], sizes = [8, 128], strides = [1, 1]} : vector<8x384xf32> to vector<8x128xf32>
    %215 = arith.mulf %214, %210 : vector<8x128xf32>
    %216 = arith.addf %213, %215 : vector<8x128xf32>
    %217 = vector.extract_strided_slice %208 {offsets = [0, 256], sizes = [8, 128], strides = [1, 1]} : vector<8x384xf32> to vector<8x128xf32>
    %218 = math.tanh %216 : vector<8x128xf32>
    %219 = arith.mulf %217, %218 : vector<8x128xf32>
    %220 = arith.truncf %219 : vector<8x128xf32> to vector<8x128xbf16>
    %c0_105 = arith.constant 0 : index
    %c0_106 = arith.constant 0 : index
    %221 = vector.load %arg8[%c0_105, %c0_106] : memref<8x128xf32, #tpu.memory_space<vmem>>, vector<8x128xf32>
    tpu.vector_store %arg8[%c0_105, %c0_106], %216 {strides = array<i32>} : memref<8x128xf32, #tpu.memory_space<vmem>>, vector<8x128xf32>,
    %c0_107 = arith.constant 0 : index
    %c0_108 = arith.constant 0 : index
    %222 = vector.load %arg7[%c0_107, %c0_108] : memref<8x128xbf16, #tpu.memory_space<vmem>>, vector<8x128xbf16>
    tpu.vector_store %arg7[%c0_107, %c0_108], %220 {strides = array<i32>} : memref<8x128xbf16, #tpu.memory_space<vmem>>, vector<8x128xbf16>,
    %223 = arith.index_cast %196 : i32 to index
    %c0_109 = arith.constant 0 : index
    %c0_110 = arith.constant 0 : index
    %224 = vector.load %arg6[%223, %c0_109, %c0_110] : memref<8x8x128xbf16, #tpu.memory_space<vmem>>, vector<1x8x128xbf16>
    %225 = vector.shape_cast %224 : vector<1x8x128xbf16> to vector<8x128xbf16>
    %226 = vector.shape_cast %220 : vector<8x128xbf16> to vector<1x8x128xbf16>
    tpu.vector_store %arg6[%223, %c0_109, %c0_110], %226 {strides = array<i32>} : memref<8x8x128xbf16, #tpu.memory_space<vmem>>, vector<1x8x128xbf16>,
    %c6_i32 = arith.constant 6 : i32
    %c7_i32_111 = arith.constant 7 : i32
    %227 = arith.subi %c7_i32_111, %c6_i32 : i32
    %228 = arith.muli %arg0, %227 : i32
    %c1_i32_112 = arith.constant 1 : i32
    %229 = arith.subi %c1_i32_112, %arg0 : i32
    %230 = arith.muli %229, %c6_i32 : i32
    %231 = arith.addi %228, %230 : i32
    %c0_113 = arith.constant 0 : index
    %c0_114 = arith.constant 0 : index
    %232 = vector.load %arg7[%c0_113, %c0_114] : memref<8x128xbf16, #tpu.memory_space<vmem>>, vector<8x128xbf16>
    %cst_115 = arith.constant dense<0.000000e+00> : vector<8x512xf32>
    %233 = tpu.matmul %232, %16, %cst_115 {dimension_numbers = #tpu.dot_dimension_numbers<[1], [0], [0], [1], [0, 0, 1, 1], [], []>} : vector<8x128xbf16>, vector<128x512xbf16>, vector<8x512xf32> -> vector<8x512xf32>
    %234 = arith.index_cast %231 : i32 to index
    %c0_116 = arith.constant 0 : index
    %c0_117 = arith.constant 0 : index
    %235 = vector.load %arg9[%234, %c0_116, %c0_117] : memref<8x8x512xf32, #tpu.memory_space<vmem>>, vector<1x8x512xf32>
    %236 = vector.shape_cast %235 : vector<1x8x512xf32> to vector<8x512xf32>
    %237 = arith.addf %233, %236 : vector<8x512xf32>
    %238 = vector.extract_strided_slice %237 {offsets = [0, 0], sizes = [8, 384], strides = [1, 1]} : vector<8x512xf32> to vector<8x384xf32>
    %239 = arith.negf %238 : vector<8x384xf32>
    %240 = math.exp %239 : vector<8x384xf32>
    %cst_118 = arith.constant 1.000000e+00 : f32
    %241 = vector.broadcast %cst_118 : f32 to vector<8x384xf32>
    %242 = arith.addf %241, %240 : vector<8x384xf32>
    %243 = arith.divf %241, %242 : vector<8x384xf32>
    %244 = vector.extract_strided_slice %237 {offsets = [0, 384], sizes = [8, 128], strides = [1, 1]} : vector<8x512xf32> to vector<8x128xf32>
    %245 = math.tanh %244 : vector<8x128xf32>
    %246 = vector.extract_strided_slice %243 {offsets = [0, 128], sizes = [8, 128], strides = [1, 1]} : vector<8x384xf32> to vector<8x128xf32>
    %c0_119 = arith.constant 0 : index
    %c0_120 = arith.constant 0 : index
    %247 = vector.load %arg8[%c0_119, %c0_120] : memref<8x128xf32, #tpu.memory_space<vmem>>, vector<8x128xf32>
    %248 = arith.mulf %246, %247 : vector<8x128xf32>
    %249 = vector.extract_strided_slice %243 {offsets = [0, 0], sizes = [8, 128], strides = [1, 1]} : vector<8x384xf32> to vector<8x128xf32>
    %250 = arith.mulf %249, %245 : vector<8x128xf32>
    %251 = arith.addf %248, %250 : vector<8x128xf32>
    %252 = vector.extract_strided_slice %243 {offsets = [0, 256], sizes = [8, 128], strides = [1, 1]} : vector<8x384xf32> to vector<8x128xf32>
    %253 = math.tanh %251 : vector<8x128xf32>
    %254 = arith.mulf %252, %253 : vector<8x128xf32>
    %255 = arith.truncf %254 : vector<8x128xf32> to vector<8x128xbf16>
    %c0_121 = arith.constant 0 : index
    %c0_122 = arith.constant 0 : index
    %256 = vector.load %arg8[%c0_121, %c0_122] : memref<8x128xf32, #tpu.memory_space<vmem>>, vector<8x128xf32>
    tpu.vector_store %arg8[%c0_121, %c0_122], %251 {strides = array<i32>} : memref<8x128xf32, #tpu.memory_space<vmem>>, vector<8x128xf32>,
    %c0_123 = arith.constant 0 : index
    %c0_124 = arith.constant 0 : index
    %257 = vector.load %arg7[%c0_123, %c0_124] : memref<8x128xbf16, #tpu.memory_space<vmem>>, vector<8x128xbf16>
    tpu.vector_store %arg7[%c0_123, %c0_124], %255 {strides = array<i32>} : memref<8x128xbf16, #tpu.memory_space<vmem>>, vector<8x128xbf16>,
    %258 = arith.index_cast %231 : i32 to index
    %c0_125 = arith.constant 0 : index
    %c0_126 = arith.constant 0 : index
    %259 = vector.load %arg6[%258, %c0_125, %c0_126] : memref<8x8x128xbf16, #tpu.memory_space<vmem>>, vector<1x8x128xbf16>
    %260 = vector.shape_cast %259 : vector<1x8x128xbf16> to vector<8x128xbf16>
    %261 = vector.shape_cast %255 : vector<8x128xbf16> to vector<1x8x128xbf16>
    tpu.vector_store %arg6[%258, %c0_125, %c0_126], %261 {strides = array<i32>} : memref<8x8x128xbf16, #tpu.memory_space<vmem>>, vector<1x8x128xbf16>,
    %c7_i32_127 = arith.constant 7 : i32
    %c7_i32_128 = arith.constant 7 : i32
    %262 = arith.subi %c7_i32_128, %c7_i32_127 : i32
    %263 = arith.muli %arg0, %262 : i32
    %c1_i32_129 = arith.constant 1 : i32
    %264 = arith.subi %c1_i32_129, %arg0 : i32
    %265 = arith.muli %264, %c7_i32_127 : i32
    %266 = arith.addi %263, %265 : i32
    %c0_130 = arith.constant 0 : index
    %c0_131 = arith.constant 0 : index
    %267 = vector.load %arg7[%c0_130, %c0_131] : memref<8x128xbf16, #tpu.memory_space<vmem>>, vector<8x128xbf16>
    %cst_132 = arith.constant dense<0.000000e+00> : vector<8x512xf32>
    %268 = tpu.matmul %267, %16, %cst_132 {dimension_numbers = #tpu.dot_dimension_numbers<[1], [0], [0], [1], [0, 0, 1, 1], [], []>} : vector<8x128xbf16>, vector<128x512xbf16>, vector<8x512xf32> -> vector<8x512xf32>
    %269 = arith.index_cast %266 : i32 to index
    %c0_133 = arith.constant 0 : index
    %c0_134 = arith.constant 0 : index
    %270 = vector.load %arg9[%269, %c0_133, %c0_134] : memref<8x8x512xf32, #tpu.memory_space<vmem>>, vector<1x8x512xf32>
    %271 = vector.shape_cast %270 : vector<1x8x512xf32> to vector<8x512xf32>
    %272 = arith.addf %268, %271 : vector<8x512xf32>
    %273 = vector.extract_strided_slice %272 {offsets = [0, 0], sizes = [8, 384], strides = [1, 1]} : vector<8x512xf32> to vector<8x384xf32>
    %274 = arith.negf %273 : vector<8x384xf32>
    %275 = math.exp %274 : vector<8x384xf32>
    %cst_135 = arith.constant 1.000000e+00 : f32
    %276 = vector.broadcast %cst_135 : f32 to vector<8x384xf32>
    %277 = arith.addf %276, %275 : vector<8x384xf32>
    %278 = arith.divf %276, %277 : vector<8x384xf32>
    %279 = vector.extract_strided_slice %272 {offsets = [0, 384], sizes = [8, 128], strides = [1, 1]} : vector<8x512xf32> to vector<8x128xf32>
    %280 = math.tanh %279 : vector<8x128xf32>
    %281 = vector.extract_strided_slice %278 {offsets = [0, 128], sizes = [8, 128], strides = [1, 1]} : vector<8x384xf32> to vector<8x128xf32>
    %c0_136 = arith.constant 0 : index
    %c0_137 = arith.constant 0 : index
    %282 = vector.load %arg8[%c0_136, %c0_137] : memref<8x128xf32, #tpu.memory_space<vmem>>, vector<8x128xf32>
    %283 = arith.mulf %281, %282 : vector<8x128xf32>
    %284 = vector.extract_strided_slice %278 {offsets = [0, 0], sizes = [8, 128], strides = [1, 1]} : vector<8x384xf32> to vector<8x128xf32>
    %285 = arith.mulf %284, %280 : vector<8x128xf32>
    %286 = arith.addf %283, %285 : vector<8x128xf32>
    %287 = vector.extract_strided_slice %278 {offsets = [0, 256], sizes = [8, 128], strides = [1, 1]} : vector<8x384xf32> to vector<8x128xf32>
    %288 = math.tanh %286 : vector<8x128xf32>
    %289 = arith.mulf %287, %288 : vector<8x128xf32>
    %290 = arith.truncf %289 : vector<8x128xf32> to vector<8x128xbf16>
    %c0_138 = arith.constant 0 : index
    %c0_139 = arith.constant 0 : index
    %291 = vector.load %arg8[%c0_138, %c0_139] : memref<8x128xf32, #tpu.memory_space<vmem>>, vector<8x128xf32>
    tpu.vector_store %arg8[%c0_138, %c0_139], %286 {strides = array<i32>} : memref<8x128xf32, #tpu.memory_space<vmem>>, vector<8x128xf32>,
    %c0_140 = arith.constant 0 : index
    %c0_141 = arith.constant 0 : index
    %292 = vector.load %arg7[%c0_140, %c0_141] : memref<8x128xbf16, #tpu.memory_space<vmem>>, vector<8x128xbf16>
    tpu.vector_store %arg7[%c0_140, %c0_141], %290 {strides = array<i32>} : memref<8x128xbf16, #tpu.memory_space<vmem>>, vector<8x128xbf16>,
    %293 = arith.index_cast %266 : i32 to index
    %c0_142 = arith.constant 0 : index
    %c0_143 = arith.constant 0 : index
    %294 = vector.load %arg6[%293, %c0_142, %c0_143] : memref<8x8x128xbf16, #tpu.memory_space<vmem>>, vector<1x8x128xbf16>
    %295 = vector.shape_cast %294 : vector<1x8x128xbf16> to vector<8x128xbf16>
    %296 = vector.shape_cast %290 : vector<8x128xbf16> to vector<1x8x128xbf16>
    tpu.vector_store %arg6[%293, %c0_142, %c0_143], %296 {strides = array<i32>} : memref<8x8x128xbf16, #tpu.memory_space<vmem>>, vector<1x8x128xbf16>,
    %c8_i32 = arith.constant 8 : i32
    return
  }
  func.func @transform_0(%arg0: i32, %arg1: i32) -> (i32, i32, i32) {
    %c0_i32 = arith.constant 0 : i32
    %0 = arith.subi %c0_i32, %arg1 : i32
    %1 = arith.muli %arg0, %0 : i32
    %c1_i32 = arith.constant 1 : i32
    %2 = arith.subi %c1_i32, %arg0 : i32
    %3 = arith.muli %2, %arg1 : i32
    %4 = arith.addi %1, %3 : i32
    %c0_i32_0 = arith.constant 0 : i32
    %c0_i32_1 = arith.constant 0 : i32
    %c0_i32_2 = arith.constant 0 : i32
    return %4, %c0_i32_0, %c0_i32_1 : i32, i32, i32
  }
  func.func @transform_1(%arg0: i32, %arg1: i32) -> (i32, i32, i32) {
    %c0_i32 = arith.constant 0 : i32
    %c0_i32_0 = arith.constant 0 : i32
    %c0_i32_1 = arith.constant 0 : i32
    return %arg0, %c0_i32, %c0_i32_0 : i32, i32, i32
  }
  func.func @transform_2(%arg0: i32, %arg1: i32) -> (i32, i32, i32) {
    %c0_i32 = arith.constant 0 : i32
    %c0_i32_0 = arith.constant 0 : i32
    %c0_i32_1 = arith.constant 0 : i32
    return %arg0, %c0_i32, %c0_i32_0 : i32, i32, i32
  }
  func.func @transform_3(%arg0: i32, %arg1: i32) -> (i32, i32, i32) {
    %c0_i32 = arith.constant 0 : i32
    %c0_i32_0 = arith.constant 0 : i32
    %c0_i32_1 = arith.constant 0 : i32
    return %arg0, %c0_i32, %c0_i32_0 : i32, i32, i32
  }
  func.func @transform_4(%arg0: i32, %arg1: i32) -> (i32, i32, i32) {
    %c0_i32 = arith.constant 0 : i32
    %0 = arith.subi %c0_i32, %arg1 : i32
    %1 = arith.muli %arg0, %0 : i32
    %c1_i32 = arith.constant 1 : i32
    %2 = arith.subi %c1_i32, %arg0 : i32
    %3 = arith.muli %2, %arg1 : i32
    %4 = arith.addi %1, %3 : i32
    %c0_i32_0 = arith.constant 0 : i32
    %c0_i32_1 = arith.constant 0 : i32
    return %4, %c0_i32_0, %arg0 : i32, i32, i32
  }
}

module attributes {stable_mosaic.version = 11 : i64} {
  func.func @_mlp_kernel(%arg0: i32, %arg1: i32, %arg2: i32, %arg3: memref<8x512xbf16, #tpu.memory_space<vmem>>, %arg4: memref<512x128xbf16, #tpu.memory_space<vmem>>, %arg5: memref<1x128xf32, #tpu.memory_space<vmem>>, %arg6: memref<128x128xbf16, #tpu.memory_space<vmem>>, %arg7: memref<1x128xf32, #tpu.memory_space<vmem>>, %arg8: memref<8x128xf32, #tpu.memory_space<vmem>>, %arg9: memref<8x128xf32, #tpu.memory_space<vmem>>, %arg10: memref<8x128xf32, #tpu.memory_space<vmem>>) attributes {dimension_semantics = [#tpu.dimension_semantics<parallel>, #tpu.dimension_semantics<arbitrary>, #tpu.dimension_semantics<arbitrary>], iteration_bounds = array<i64: 1, 1, 2>, scalar_prefetch = 0 : i64, scratch_operands = 2 : i64, tpu.core_type = #tpu.core_type<tc>, window_params = [{transform_indices = @transform_0, window_bounds = array<i64: 8, 512>}, {transform_indices = @transform_1, window_bounds = array<i64: 512, 128>}, {transform_indices = @transform_2, window_bounds = array<i64: 1, 128>}, {transform_indices = @transform_3, window_bounds = array<i64: 128, 128>}, {pipeline_mode = #tpu.pipeline_mode<synchronous>, transform_indices = @transform_4, window_bounds = array<i64: 1, 128>}, {transform_indices = @transform_5, window_bounds = array<i64: 8, 128>}]} {
    %c1_i32 = arith.constant 1 : i32
    %0 = arith.cmpi eq, %arg2, %c1_i32 : i32
    %c0_i32 = arith.constant 0 : i32
    %1 = arith.cmpi eq, %arg2, %c0_i32 : i32
    %2 = arith.extui %1 : i1 to i32
    %c0_i32_0 = arith.constant 0 : i32
    %3 = arith.cmpi ne, %2, %c0_i32_0 : i32
    scf.if %3 {
      %cst_13 = arith.constant 0.000000e+00 : f32
      %20 = vector.broadcast %cst_13 : f32 to vector<8x128xf32>
      %c0_14 = arith.constant 0 : index
      %c0_15 = arith.constant 0 : index
      %21 = vector.load %arg9[%c0_14, %c0_15] : memref<8x128xf32, #tpu.memory_space<vmem>>, vector<8x128xf32>
      tpu.vector_store %arg9[%c0_14, %c0_15], %20 {strides = array<i32>} : memref<8x128xf32, #tpu.memory_space<vmem>>, vector<8x128xf32>,
    } else {
    }
    %c0 = arith.constant 0 : index
    %c0_1 = arith.constant 0 : index
    %4 = vector.load %arg9[%c0, %c0_1] : memref<8x128xf32, #tpu.memory_space<vmem>>, vector<8x128xf32>
    %c0_2 = arith.constant 0 : index
    %c0_3 = arith.constant 0 : index
    %5 = vector.load %arg3[%c0_2, %c0_3] : memref<8x512xbf16, #tpu.memory_space<vmem>>, vector<8x512xbf16>
    %c0_4 = arith.constant 0 : index
    %c0_5 = arith.constant 0 : index
    %6 = vector.load %arg4[%c0_4, %c0_5] : memref<512x128xbf16, #tpu.memory_space<vmem>>, vector<512x128xbf16>
    %cst = arith.constant dense<0.000000e+00> : vector<8x128xf32>
    %7 = tpu.matmul %5, %6, %cst {dimension_numbers = #tpu.dot_dimension_numbers<[1], [0], [0], [1], [0, 0, 1, 1], [], []>} : vector<8x512xbf16>, vector<512x128xbf16>, vector<8x128xf32> -> vector<8x128xf32>
    %8 = arith.addf %4, %7 : vector<8x128xf32>
    %c0_6 = arith.constant 0 : index
    %c0_7 = arith.constant 0 : index
    %9 = vector.load %arg9[%c0_6, %c0_7] : memref<8x128xf32, #tpu.memory_space<vmem>>, vector<8x128xf32>
    tpu.vector_store %arg9[%c0_6, %c0_7], %8 {strides = array<i32>} : memref<8x128xf32, #tpu.memory_space<vmem>>, vector<8x128xf32>,
    %c0_i32_8 = arith.constant 0 : i32
    %10 = arith.cmpi eq, %arg1, %c0_i32_8 : i32
    %11 = arith.andi %0, %10 : i1
    %12 = arith.extui %11 : i1 to i32
    %c0_i32_9 = arith.constant 0 : i32
    %13 = arith.cmpi ne, %12, %c0_i32_9 : i32
    scf.if %13 {
      %cst_13 = arith.constant 0.000000e+00 : f32
      %20 = vector.broadcast %cst_13 : f32 to vector<8x128xf32>
      %c0_14 = arith.constant 0 : index
      %c0_15 = arith.constant 0 : index
      %21 = vector.load %arg10[%c0_14, %c0_15] : memref<8x128xf32, #tpu.memory_space<vmem>>, vector<8x128xf32>
      tpu.vector_store %arg10[%c0_14, %c0_15], %20 {strides = array<i32>} : memref<8x128xf32, #tpu.memory_space<vmem>>, vector<8x128xf32>,
    } else {
    }
    %14 = arith.extui %0 : i1 to i32
    %c0_i32_10 = arith.constant 0 : i32
    %15 = arith.cmpi ne, %14, %c0_i32_10 : i32
    scf.if %15 {
      %c0_13 = arith.constant 0 : index
      %c0_14 = arith.constant 0 : index
      %20 = vector.load %arg9[%c0_13, %c0_14] : memref<8x128xf32, #tpu.memory_space<vmem>>, vector<8x128xf32>
      %c0_15 = arith.constant 0 : index
      %c0_16 = arith.constant 0 : index
      %21 = vector.load %arg5[%c0_15, %c0_16] : memref<1x128xf32, #tpu.memory_space<vmem>>, vector<1x128xf32>
      %22 = vector.broadcast %21 : vector<1x128xf32> to vector<8x128xf32>
      %23 = arith.addf %20, %22 : vector<8x128xf32>
      %cst_17 = arith.constant 0.000000e+00 : f32
      %24 = vector.broadcast %cst_17 : f32 to vector<8x128xf32>
      %25 = arith.maximumf %23, %24 : vector<8x128xf32>
      %c0_18 = arith.constant 0 : index
      %c0_19 = arith.constant 0 : index
      %26 = vector.load %arg10[%c0_18, %c0_19] : memref<8x128xf32, #tpu.memory_space<vmem>>, vector<8x128xf32>
      %27 = arith.truncf %25 : vector<8x128xf32> to vector<8x128xbf16>
      %c0_20 = arith.constant 0 : index
      %c0_21 = arith.constant 0 : index
      %28 = vector.load %arg6[%c0_20, %c0_21] : memref<128x128xbf16, #tpu.memory_space<vmem>>, vector<128x128xbf16>
      %cst_22 = arith.constant dense<0.000000e+00> : vector<8x128xf32>
      %29 = tpu.matmul %27, %28, %cst_22 {dimension_numbers = #tpu.dot_dimension_numbers<[1], [0], [0], [1], [0, 0, 1, 1], [], []>} : vector<8x128xbf16>, vector<128x128xbf16>, vector<8x128xf32> -> vector<8x128xf32>
      %30 = arith.addf %26, %29 : vector<8x128xf32>
      %c0_23 = arith.constant 0 : index
      %c0_24 = arith.constant 0 : index
      %31 = vector.load %arg10[%c0_23, %c0_24] : memref<8x128xf32, #tpu.memory_space<vmem>>, vector<8x128xf32>
      tpu.vector_store %arg10[%c0_23, %c0_24], %30 {strides = array<i32>} : memref<8x128xf32, #tpu.memory_space<vmem>>, vector<8x128xf32>,
    } else {
    }
    %c0_i32_11 = arith.constant 0 : i32
    %16 = arith.cmpi eq, %arg1, %c0_i32_11 : i32
    %17 = arith.andi %0, %16 : i1
    %18 = arith.extui %17 : i1 to i32
    %c0_i32_12 = arith.constant 0 : i32
    %19 = arith.cmpi ne, %18, %c0_i32_12 : i32
    scf.if %19 {
      %c0_13 = arith.constant 0 : index
      %c0_14 = arith.constant 0 : index
      %20 = vector.load %arg10[%c0_13, %c0_14] : memref<8x128xf32, #tpu.memory_space<vmem>>, vector<8x128xf32>
      %c0_15 = arith.constant 0 : index
      %c0_16 = arith.constant 0 : index
      %21 = vector.load %arg7[%c0_15, %c0_16] : memref<1x128xf32, #tpu.memory_space<vmem>>, vector<1x128xf32>
      %22 = vector.broadcast %21 : vector<1x128xf32> to vector<8x128xf32>
      %23 = arith.addf %20, %22 : vector<8x128xf32>
      %c0_17 = arith.constant 0 : index
      %c0_18 = arith.constant 0 : index
      %24 = vector.load %arg8[%c0_17, %c0_18] : memref<8x128xf32, #tpu.memory_space<vmem>>, vector<8x128xf32>
      tpu.vector_store %arg8[%c0_17, %c0_18], %23 {strides = array<i32>} : memref<8x128xf32, #tpu.memory_space<vmem>>, vector<8x128xf32>,
    } else {
    }
    return
  }
  func.func @transform_0(%arg0: i32, %arg1: i32, %arg2: i32) -> (i32, i32) {
    %c0_i32 = arith.constant 0 : i32
    return %arg0, %arg2 : i32, i32
  }
  func.func @transform_1(%arg0: i32, %arg1: i32, %arg2: i32) -> (i32, i32) {
    %c0_i32 = arith.constant 0 : i32
    return %arg2, %arg1 : i32, i32
  }
  func.func @transform_2(%arg0: i32, %arg1: i32, %arg2: i32) -> (i32, i32) {
    %c0_i32 = arith.constant 0 : i32
    %c0_i32_0 = arith.constant 0 : i32
    return %c0_i32, %arg1 : i32, i32
  }
  func.func @transform_3(%arg0: i32, %arg1: i32, %arg2: i32) -> (i32, i32) {
    %c0_i32 = arith.constant 0 : i32
    %c0_i32_0 = arith.constant 0 : i32
    return %arg1, %c0_i32 : i32, i32
  }
  func.func @transform_4(%arg0: i32, %arg1: i32, %arg2: i32) -> (i32, i32) {
    %c0_i32 = arith.constant 0 : i32
    %c0_i32_0 = arith.constant 0 : i32
    %c0_i32_1 = arith.constant 0 : i32
    return %c0_i32, %c0_i32_0 : i32, i32
  }
  func.func @transform_5(%arg0: i32, %arg1: i32, %arg2: i32) -> (i32, i32) {
    %c0_i32 = arith.constant 0 : i32
    %c0_i32_0 = arith.constant 0 : i32
    return %arg0, %c0_i32 : i32, i32
  }
}

</mosaic_0001>

<bundles_post_ra>
// kernel: forward.5
= control target key start
LH: loop header
LB: loop body
LE: loop exit
PB: predicated region body
PF: predicated region fallthrough
CT: control target
= control target key end

     0   :  { %s1204_s18 = smov 0   ;;  %s1206_s19 = smov 0   ;;  %s1319_s0 = inlined_call_operand.vmem [shape: bf16[8,1024], index: 0, kind: input, shape index: {}]   ;;  %s1320_s1 = inlined_call_operand.vmem [shape: bf16[1024,128], index: 1, kind: input, shape index: {}]   ;;  %s1321_s2 = inlined_call_operand.vmem [shape: f32[1,128], index: 2, kind: input, shape index: {}]   ;;  %s1322_s3 = inlined_call_operand.vmem [shape: bf16[128,128], index: 3, kind: input, shape index: {}]   ;;  %s1323_s4 = inlined_call_operand.vmem [shape: f32[1,128], index: 4, kind: input, shape index: {}]   ;;  %s1324_s5 = inlined_call_operand.vmem [shape: f32[8,128], index: 5, kind: output, shape index: {}]  }
   0x1   :  { %s1208_s20 = smov 0  }
   0x2 LB: > { %s27_s21 = sadd.s32 1, %s1164_s19  ;;  %p943_p0 = scmp.ge.s32.totalorder %s1168_s20, 1  ;;  %s1168_s20 = sphi %s1208_s20, %s15_s20   ;;  %s1164_s19 = sphi %s1206_s19, %s1326_s19   ;;  %s1160_s18 = sphi %s1204_s18, %s1325_s18  }
   0x3   : > { %p28_p1 = scmp.ge.s32.totalorder %s27_s21, 2  ;;  %p248_p2 = scmp.lt.s32.totalorder %s1168_s20, 3 }
   0x5   : > { %s1328_s21 = smov (%p28_p1, %s27_s21), 0  ;;  %p249_p3 = pnand %p943_p0, %p248_p2 }
   0x6   : > { %s944_s22 = sshll.u32 (!%p249_p3), %s1160_s18, 2  ;;  %s946_s23 = sshll.u32 (!%p249_p3), %s1160_s18, 6 }
   0x7   : > { %252 = sbr.rel (%p249_p3) target bundleno = 538 (0x21a), region = 40  ;;  %p298_p4 = scmp.lt.s32.totalorder (!%p249_p3), %s944_s22, 7 }
   0x8   : > { %p306_p5 = scmp.lt.s32.totalorder (!%p249_p3), %s946_s23, 127  ;;  %p328_p6 = scmp.eq.s32.totalorder (!%p249_p3), %s1160_s18, 1 }
   0x9   : > { %p948_p7 = scmp.ne.s32.totalorder (!%p249_p3), %s1160_s18, 0 }
   0xe   : > { %s1330_s22 = smov (!%p298_p4, %s944_s22), 7  ;;  %s1332_s23 = smov (!%p306_p5, %s946_s23), 127 }
   0xf   : > { %s945_s24 = sshll.u32 %s1330_s22, 2  ;;  %s947_s28 = sshll.u32 %s1332_s23, 2  ;;  %v1170_v0 = vmov (!%p948_p7), 0.0  }
  0x10   : > { %s1230_s27 = scalar_lea.vmem %s1319_s0, %s945_s24  ;;  %s1235_s6 = scalar_lea.vmem %s1320_s1, %s947_s28  ;;  %333 = vst [vmem:[#allocation2] sm:$0xff] (!%p948_p7), %v1170_v0 }
  0x11   : > { %332 = sbr.rel (%p948_p7) target bundleno = 24 (0x18), region = 44 }
  0x18 PF: > { %v1102_v1 = vld [vmem:[%s1235_s6 + $0x40] sm:$0xff]   ;;  %v1106_v5 = vld [vmem:[%s1235_s6 + $0x48] sm:$0xff]   ;;  %v1110_v9 = vld [vmem:[%s1235_s6 + $0x50] sm:$0xff]   ;;  %v1171_v52 = vmov (%p328_p6), 0.0  }
  0x19   : > { %v1103_v2 = vld [vmem:[%s1235_s6 + $0xc0] sm:$0xff]   ;;  %1001 = vmatprep.subr.bf16.mxu0 %v1102_v1  ;;  %v1107_v6 = vld [vmem:[%s1235_s6 + $0xc8] sm:$0xff]   ;;  %v1111_v10 = vld [vmem:[%s1235_s6 + $0xd0] sm:$0xff]   ;;  %694 = vst [vmem:[#allocation3] sm:$0xff] (%p328_p6), %v1171_v52 }
  0x1a   : > { %v1104_v3 = vld [vmem:[%s1235_s6] sm:$0xff]   ;;  %1023 = vmatprep.subr.bf16.mxu1 %v1103_v2  ;;  %v1108_v7 = vld [vmem:[%s1235_s6 + $0x8] sm:$0xff]   ;;  %v1112_v11 = vld [vmem:[%s1235_s6 + $0x10] sm:$0xff]  }
  0x1b   : > { %v1105_v4 = vld [vmem:[%s1235_s6 + $0x80] sm:$0xff]   ;;  %1002 = vmatpush3.bf16.msra.mxu0 %v1104_v3  ;;  %v1109_v8 = vld [vmem:[%s1235_s6 + $0x88] sm:$0xff]   ;;  %v1113_v12 = vld [vmem:[%s1235_s6 + $0x90] sm:$0xff]  }
  0x1c   : > { %1024 = vmatpush3.bf16.msra.mxu1 %v1105_v4  ;;  %1003 = vmatprep.subr.bf16.mxu0 %v1106_v5  ;;  %v1114_v13 = vld [vmem:[%s1235_s6 + $0x58] sm:$0xff]   ;;  %v1118_v17 = vld [vmem:[%s1235_s6 + $0x60] sm:$0xff]   ;;  %v1122_v21 = vld [vmem:[%s1235_s6 + $0x68] sm:$0xff]  }
  0x1d   : > { %1025 = vmatprep.subr.bf16.mxu1 %v1107_v6  ;;  %v1115_v14 = vld [vmem:[%s1235_s6 + $0xd8] sm:$0xff]   ;;  %v1119_v18 = vld [vmem:[%s1235_s6 + $0xe0] sm:$0xff]   ;;  %v1123_v22 = vld [vmem:[%s1235_s6 + $0xe8] sm:$0xff]  }
  0x1e   : > { %v1116_v15 = vld [vmem:[%s1235_s6 + $0x18] sm:$0xff]   ;;  %v1120_v19 = vld [vmem:[%s1235_s6 + $0x20] sm:$0xff]   ;;  %v1124_v23 = vld [vmem:[%s1235_s6 + $0x28] sm:$0xff]  }
  0x1f   : > { %1004 = vmatpush3.bf16.msra.mxu0 %v1108_v7  ;;  %v1117_v16 = vld [vmem:[%s1235_s6 + $0x98] sm:$0xff]   ;;  %v1121_v20 = vld [vmem:[%s1235_s6 + $0xa0] sm:$0xff]   ;;  %v1125_v24 = vld [vmem:[%s1235_s6 + $0xa8] sm:$0xff]  }
  0x20   : > { %1026 = vmatpush3.bf16.msra.mxu1 %v1109_v8  ;;  %1005 = vmatprep.subr.bf16.mxu0 %v1110_v9  ;;  %v1126_v25 = vld [vmem:[%s1235_s6 + $0x70] sm:$0xff]   ;;  %v1130_v29 = vld [vmem:[%s1235_s6 + $0x78] sm:$0xff]   ;;  %v335_v33 = vld [vmem:[%s1230_s27] sm:$0xff] }
  0x21   : > { %1027 = vmatprep.subr.bf16.mxu1 %v1111_v10  ;;  %v1127_v26 = vld [vmem:[%s1235_s6 + $0xf0] sm:$0xff]   ;;  %v1131_v30 = vld [vmem:[%s1235_s6 + $0xf8] sm:$0xff]   ;;  %v336_v34 = vld [vmem:[%s1230_s27 + $0x8] sm:$0xff]  ;;  %v949_v35 = vcombine.low %v335_v33, %v335_v33  ;;  %v950_v36 = vcombine.high %v335_v33, %v335_v33 }
  0x22   : > { %v1128_v27 = vld [vmem:[%s1235_s6 + $0x30] sm:$0xff]   ;;  %v1132_v31 = vld [vmem:[%s1235_s6 + $0x38] sm:$0xff]   ;;  %v951_v37 = vcombine.low %v336_v34, %v336_v34  ;;  %v952_v38 = vcombine.high %v336_v34, %v336_v34  ;;  %v334_v47 = vld [vmem:[#allocation2] sm:$0xff] }
  0x23   : > { %1006 = vmatpush3.bf16.msra.mxu0 %v1112_v11  ;;  %v1129_v28 = vld [vmem:[%s1235_s6 + $0xb0] sm:$0xff]   ;;  %v1133_v32 = vld [vmem:[%s1235_s6 + $0xb8] sm:$0xff]   ;;  %639 = vmatprep.mubr.bf16.mxu0 %v950_v36 }
  0x24   : > { %1028 = vmatpush3.bf16.msra.mxu1 %v1113_v12  ;;  %1007 = vmatprep.subr.bf16.mxu0 %v1114_v13 }
  0x25   : > { %1029 = vmatprep.subr.bf16.mxu1 %v1115_v14  ;;  %679 = vmatprep.mubr.bf16.mxu1 %v952_v38 }
  0x27   : > { %1008 = vmatpush3.bf16.msra.mxu0 %v1116_v15 }
  0x28   : > { %1030 = vmatpush3.bf16.msra.mxu1 %v1117_v16  ;;  %1009 = vmatprep.subr.bf16.mxu0 %v1118_v17 }
  0x29   : > { %1031 = vmatprep.subr.bf16.mxu1 %v1119_v18 }
  0x2b   : > { %1010 = vmatpush3.bf16.msra.mxu0 %v1120_v19 }
  0x2c   : > { %1032 = vmatpush3.bf16.msra.mxu1 %v1121_v20  ;;  %1011 = vmatprep.subr.bf16.mxu0 %v1122_v21 }
  0x2d   : > { %1033 = vmatprep.subr.bf16.mxu1 %v1123_v22 }
  0x2f   : > { %1012 = vmatpush3.bf16.msra.mxu0 %v1124_v23 }
  0x30   : > { %1034 = vmatpush3.bf16.msra.mxu1 %v1125_v24  ;;  %1013 = vmatprep.subr.bf16.mxu0 %v1126_v25 }
  0x31   : > { %1035 = vmatprep.subr.bf16.mxu1 %v1127_v26 }
  0x33   : > { %1014 = vmatpush3.bf16.msra.mxu0 %v1128_v27 }
  0x34   : > { %1036 = vmatpush3.bf16.msra.mxu1 %v1129_v28  ;;  %1015 = vmatprep.subr.bf16.mxu0 %v1130_v29 }
  0x35   : > { %1037 = vmatprep.subr.bf16.mxu1 %v1131_v30 }
  0x37   : > { %1016 = vmatpush3.bf16.msra.mxu0 %v1132_v31 }
  0x38   : > { %1038 = vmatpush3.bf16.msra.mxu1 %v1133_v32 }
  0x3a   : > { %640 = vmatmul.mubr.bf16.vlgmr.msra.gmra.mrb[0].mxu0 %v949_v35 }
  0x3b   : > { %680 = vmatmul.mubr.bf16.vlgmr.msra.gmra.mrb[0].mxu1 %v951_v37 }
 0x10d   : > { %v1017_v39 = vpop.f32.mrb[0].mxu0 }
 0x10e   : > { %v1039_v40 = vpop.f32.mrb[0].mxu1  ;;  %v1018_v41 = vpop.f32.mrb[1].mxu0 }
 0x10f   : > { %v1040_v42 = vpop.f32.mrb[1].mxu1  ;;  %v1019_v43 = vadd.f32 %v1018_v41, %v1017_v39  ;;  %v1020_v45 = vpop.f32.mrb[2].mxu0 }
 0x110   : > { %v1041_v44 = vadd.f32 %v1040_v42, %v1039_v40  ;;  %v1042_v46 = vpop.f32.mrb[2].mxu1  ;;  %v1021_v48 = vpop.f32.mrb[3].mxu0  ;;  %693 = sbr.rel (!%p328_p6) target bundleno = 279 (0x117), region = 48 }
 0x111   : > { %v1043_v49 = vpop.f32.mrb[3].mxu1 }
 0x112   : > { %v682_v50 = vadd.f32 %v1041_v44, %v1019_v43 }
 0x114   : > { %v687_v51 = vadd.f32 %v682_v50, %v334_v47 }
 0x116   : > { %688 = vst [vmem:[#allocation2] sm:$0xff] %v687_v51 }
 0x117 PF: > { %p986_p8 = scmp.ne.s32.totalorder %s1160_s18, 1 }
 0x118   : > { %v1138_v53 = vld [vmem:[%s1322_s3] sm:$0xff] (!%p986_p8)   ;;  %v1172_v54 = vmov (!%p986_p8), 0.0   ;;  %v1139_v55 = vld [vmem:[%s1322_s3 + $0x8] sm:$0xff] (!%p986_p8)   ;;  %vm1173_vm0 = vmmov (!%p986_p8), 0   ;;  %v1140_v56 = vld [vmem:[%s1322_s3 + $0x10] sm:$0xff] (!%p986_p8)  }
 0x119   : > { %697 = sbr.rel (%p986_p8) target bundleno = 528 (0x210), region = 52  ;;  %1054 = vmatprep.subr.bf16.mxu0 (!%p986_p8), %v1172_v54  ;;  %1070 = vmatprep.mubr.msk.bf16.mxu0 (!%p986_p8), %vm1173_vm0, %v1172_v54  ;;  %v1141_v57 = vld [vmem:[%s1322_s3 + $0x18] sm:$0xff] (!%p986_p8)   ;;  %v1142_v58 = vld [vmem:[%s1322_s3 + $0x20] sm:$0xff] (!%p986_p8)   ;;  %v1143_v59 = vld [vmem:[%s1322_s3 + $0x28] sm:$0xff] (!%p986_p8)  }
 0x11a   : > { %1055 = vmatpush3.bf16.msra.mxu0 (!%p986_p8), %v1138_v53  ;;  %v987_v61 = vld [vmem:[%s1321_s2] ss:$0 sm:$0xff] (!%p986_p8)  ;;  %v1144_v63 = vld [vmem:[%s1322_s3 + $0x30] sm:$0xff] (!%p986_p8)   ;;  %v1145_v1 = vld [vmem:[%s1322_s3 + $0x38] sm:$0xff] (!%p986_p8)  }
 0x11b   : > { %1056 = vmatprep.subr.bf16.mxu0 (!%p986_p8), %v1172_v54  ;;  %v708_v3 = vld [vmem:[#allocation3] sm:$0xff] (!%p986_p8) }
 0x11d   : > { %v698_v60 = vld [vmem:[#allocation2] sm:$0xff] (!%p986_p8) }
 0x11e   : > { %1057 = vmatpush3.bf16.msra.mxu0 (!%p986_p8), %v1139_v55  ;;  %v706_v62 = vadd.f32 (!%p986_p8), %v987_v61, %v698_v60 }
 0x11f   : > { %1058 = vmatprep.subr.bf16.mxu0 (!%p986_p8), %v1172_v54 }
 0x120   : > { %v707_v0 = vmax.f32 %v706_v62, 0.0 }
 0x122   : > { %1059 = vmatpush3.bf16.msra.mxu0 %v1140_v56  ;;  %v709_v2 = vpack.c.bf16 %v707_v0, %v707_v0 }
 0x123   : > { %1060 = vmatprep.subr.bf16.mxu0 %v1172_v54 }
 0x126   : > { %1061 = vmatpush3.bf16.msra.mxu0 %v1141_v57 }
 0x127   : > { %1062 = vmatprep.subr.bf16.mxu0 %v1172_v54 }
 0x12a   : > { %1063 = vmatpush3.bf16.msra.mxu0 %v1142_v58 }
 0x12b   : > { %1064 = vmatprep.subr.bf16.mxu0 %v1172_v54 }
 0x12e   : > { %1065 = vmatpush3.bf16.msra.mxu0 %v1143_v59 }
 0x12f   : > { %1066 = vmatprep.subr.bf16.mxu0 %v1172_v54 }
 0x132   : > { %1067 = vmatpush3.bf16.msra.mxu0 %v1144_v63 }
 0x133   : > { %1068 = vmatprep.subr.bf16.mxu0 %v1172_v54 }
 0x136   : > { %1069 = vmatpush3.bf16.msra.mxu0 %v1145_v1 }
 0x139   : > { %1071 = vmatmul.mubr.bf16.vlgmr.msra.gmra.mrb[0].mxu0 %v709_v2 }
 0x20c   : > { %v808_v4 = vpop.f32.mrb[0].mxu0 }
 0x20d   : > { %v814_v5 = vadd.f32 %v808_v4, %v708_v3  ;;  %v1072_v6 = vpop.f32.mrb[1].mxu0 }
 0x20e   : > { %v811_v7 = vpop.f32.mrb[2].mxu0 }
 0x20f   : > { %815 = vst [vmem:[#allocation3] sm:$0xff] %v814_v5  ;;  %v1073_v8 = vpop.f32.mrb[3].mxu0 }
 0x210 PF: > { %817 = sbr.rel (!%p328_p6) target bundleno = 538 (0x21a), region = 56  ;;  %v996_v10 = vld [vmem:[%s1323_s4] ss:$0 sm:$0xff] (%p328_p6) }
 0x216   : > { %v818_v9 = vld [vmem:[#allocation3] sm:$0xff] (%p328_p6) }
 0x217   : > { %v826_v11 = vadd.f32 %v996_v10, %v818_v9 }
 0x219   : > { %827 = vst [vmem:[%s1324_s5] sm:$0xff] %v826_v11 }
 0x21a PF: > { %s15_s20 = sadd.s32 1, %s1168_s20   ;;  %s1325_s18 = smov %s1164_s19 }
 0x21b   : > { %p12_p9 = scmp.ge.s32.totalorder %s15_s20, 4   ;;  %s1326_s19 = smov %s1328_s21 }
 0x21d   :  { %14 = sbr.rel (!%p12_p9) target bundleno = 2 (0x2), region = 95 }

// kernel: forward.3
= control target key start
LH: loop header
LB: loop body
LE: loop exit
PB: predicated region body
PF: predicated region fallthrough
CT: control target
= control target key end

     0   :  { %9 = vsyncpa [#allocation6], 0  ;;  %s3518_s0 = inlined_call_operand.vmem [shape: bf16[8,8,32], index: 0, kind: input, shape index: {}]   ;;  %s3519_s1 = inlined_call_operand.hbm [shape: bf16[2,32,512], index: 1, kind: input, shape index: {}]   ;;  %s3520_s2 = inlined_call_operand.hbm [shape: bf16[2,128,512], index: 2, kind: input, shape index: {}]   ;;  %s3521_s3 = inlined_call_operand.vmem [shape: f32[2,1,512], index: 3, kind: input, shape index: {}]   ;;  %s3522_s4 = inlined_call_operand.vmem [shape: bf16[8,8,256], index: 4, kind: output, shape index: {}]  }
   0x1   :  { %11 = vsyncpa [#allocation6 + $0x1], 0 }
   0x2   :  { %12 = vsyncpa [#allocation8], 0 }
   0x3   :  { %14 = vsyncpa [#allocation8 + $0x1], 0  ;;  %s2700_s15 = smov 0   ;;  %s2702_s16 = smov 0  }
   0x4   :  { %s2704_s17 = smov 0   ;;  %s2706_s18 = smov 0  }
   0x5   :  { %s2708_s19 = smov 0   ;;  %s2710_s20 = smov 0  }
   0x6 LB: > { %s2131_s21 = sadd.s32 4294967295, %s2668_s20   ;;  %s32_s22 = sadd.s32 1, %s2664_s19  ;;  %s2668_s20 = sphi %s2710_s20, %s20_s20   ;;  %s2664_s19 = sphi %s2708_s19, %s3535_s19   ;;  %s2660_s18 = sphi %s2706_s18, %s3534_s18   ;;  %s2656_s17 = sphi %s2704_s17, %s3533_s17   ;;  %s2652_s16 = sphi %s2702_s16, %s3532_s16   ;;  %s2648_s15 = sphi %s2700_s15, %s3531_s15  }
   0x7   : > { %p34_p0 = scmp.ge.s32.totalorder %s32_s22, 2  ;;  %s75_s23 = sadd.s32 1, %s2656_s17 }
   0x8   : > { %p82_p1 = scmp.ne.s32.totalorder %s2656_s17, %s2652_s16  ;;  %p83_p2 = scmp.eq.s32.totalorder %s2668_s20, 0 }
   0x9   : > { %s3537_s22 = smov (%p34_p0, %s32_s22), 0  ;;  %p88_p4 = scmp.ne.s32.totalorder %s2652_s16, %s2648_s15 }
   0xa   : > { %p2736_p3 = por %p83_p2, %p82_p1  ;;  %s72_s25 = ssub.s32 %s2664_s19, %s3537_s22 }
   0xb   : > { %p89_p5 = scmp.eq.s32.totalorder %s2131_s21, 0  ;;  %p73_p6 = scmp.eq.s32.totalorder %s72_s25, 0 }
   0xc   : > { %p176_p7 = scmp.eq.s32.totalorder %s2131_s21, 1  ;;  %p2278_p10 = scmp.lt.s32.totalorder %s2668_s20, 2 }
   0xd   : > { %p2743_p8 = por %p89_p5, %p88_p4  ;;  %s2756_s29 = sand.u32 1, %s2656_s17  }
   0xe   : > { %s2748_s27 = scalar_select %p73_p6, %s2656_s17, %s75_s23  }
   0xf   : > { %s3525_s26 = scalar_select %p2743_p8, 1, 0 }
  0x10   : > { %p2750_p9 = por %p176_p7, %p82_p1  ;;  %s2255_s30 = sshll.u32 %s2664_s19, 10 }
  0x11   : > { %s2136_s5 = sshll.u32 %s2756_s29, 6  ;;  %s2763_s8 = scalar_lea.hbm %s3519_s1, %s2255_s30 }
  0x12   : > { %s3526_s28 = scalar_select %p2750_p9, 1, 0 }
  0x13   : > { %s225_s9 = scalar_lea.vmem [#allocation5], %s2136_s5  ;;  %p2767_p11 = pnand %p2278_p10, %p2736_p3 }
  0x14   : > { %s232_s10 = sshll.u32 %s225_s9, 4  ;;  %s222_s12 = scalar_lea.sflag [#allocation6], %s2756_s29  ;;  %s2771_s10 = int_to_ptr.vmem [resolvable:$true] %s232_s10 }
  0x15   : > { %s2554_s13 = scalar_lea.hbm %s2763_s8, 1024  ;;  %p2556_p13 = pneg %p2767_p11 }
  0x16   : > { %p2555_p12 = scmp.ne.s32.totalorder %s2763_s8, %s2554_s13  ;;  %s2559_s21 = scalar_lea.hbm %s3519_s1, 2048 }
  0x17   : > { %p2560_p2 = scmp.lt.u32.totalorder %s2763_s8, %s3519_s1  ;;  %p2561_p3 = scmp.lt.u32.totalorder %s2559_s21, %s2554_s13 }
  0x18   : > { %p2557_p0 = pnand %p2556_p13, %p2555_p12  ;;  %p2563_p5 = scmp.lt.u32.totalorder %s2554_s13, %s2763_s8 }
  0x19   : > { %p2562_p4 = por %p2561_p3, %p2560_p2 }
  0x1a   : > { %p2558_p1 = pneg %p2557_p0 }
  0x1b   : > { %p2564_p6 = por %p2563_p5, %p2562_p4 }
  0x1d   : > { %p2565_p7 = pnand %p2564_p6, %p2558_p1 }
  0x1f   : > { %2568 = shalt.err (!%p2565_p7)
}
  0x20   : > { %s2569_s25 = scalar_lea.vmem %s2771_s10, 1024  ;;  %s2670_s30 = smov [#allocation5]  }
  0x21   : > { %p2570_p10 = scmp.ne.s32.totalorder %s2771_s10, %s2569_s25  ;;  %s2574_s5 = sshll.u32 %s2670_s30, 4  ;;  %s2575_s5 = int_to_ptr.vmem [resolvable:$false] %s2574_s5 }
  0x22   : > { %s2576_s6 = scalar_lea.vmem %s2575_s5, 2048  ;;  %p2577_p9 = scmp.lt.s32.totalorder %s2771_s10, %s2575_s5 }
  0x23   : > { %p2572_p12 = pnand %p2570_p10, %p2556_p13  ;;  %p2578_p2 = scmp.lt.s32.totalorder %s2576_s6, %s2569_s25 }
  0x25   : > { %p2573_p0 = pneg %p2572_p12  ;;  %p2579_p3 = por %p2578_p2, %p2577_p9 }
  0x27   : > { %p2580_p4 = pnand %p2579_p3, %p2573_p0 }
  0x29   : > { %2583 = shalt.err (!%p2580_p4)
}
  0x2a   : > { %s2671_s7 = smov 256   ;;  %s2672_s9 = smov 16  }
  0x2b   : > { %2274 = dma.hbm_to_vmem [thread:$0]  (!%p2767_p11), %s2763_s8, 1024, %s2771_s10, %s222_s12, %s2671_s7, %s2671_s7, %s2672_s9  }
  0x2c   : > { %p2142_p9 = scmp.ge.s32.totalorder %s2668_s20, 1  ;;  %p268_p1 = scmp.lt.s32.totalorder %s2668_s20, 3 }
  0x2d   : > { %s2139_s13 = sshll.u32 %s2756_s29, 8  ;;  %s2256_s15 = sshll.u32 %s2664_s19, 12 }
  0x2e   : > { %p2807_p5 = pnand %p2142_p9, %p268_p1  ;;  %s246_s21 = scalar_lea.vmem [#allocation7], %s2139_s13 }
  0x2f   : > { %s253_s23 = sshll.u32 %s246_s21, 4  ;;  %s2815_s30 = scalar_lea.hbm %s3520_s2, %s2256_s15  ;;  %s2817_s23 = int_to_ptr.vmem [resolvable:$true] %s253_s23 }
  0x30   : > { %s243_s8 = scalar_lea.sflag [#allocation8], %s2756_s29  ;;  %s2584_s10 = scalar_lea.hbm %s2815_s30, 4096 }
  0x31   : > { %p2585_p6 = scmp.ne.s32.totalorder %s2815_s30, %s2584_s10  ;;  %s2589_s6 = scalar_lea.hbm %s3520_s2, 8192 }
  0x32   : > { %p2590_p12 = scmp.lt.u32.totalorder %s2815_s30, %s3520_s2  ;;  %p2591_p0 = scmp.lt.u32.totalorder %s2589_s6, %s2584_s10 }
  0x33   : > { %p2587_p7 = pnand %p2585_p6, %p2556_p13  ;;  %p2593_p3 = scmp.lt.u32.totalorder %s2584_s10, %s2815_s30 }
  0x34   : > { %p2592_p2 = por %p2591_p0, %p2590_p12 }
  0x35   : > { %p2588_p10 = pneg %p2587_p7 }
  0x36   : > { %p2594_p4 = por %p2593_p3, %p2592_p2 }
  0x38   : > { %p2595_p9 = pnand %p2594_p4, %p2588_p10 }
  0x3a   : > { %2598 = shalt.err (!%p2595_p9)
}
  0x3b   : > { %s2599_s21 = scalar_lea.vmem %s2817_s23, 4096  ;;  %s2673_s24 = smov [#allocation7]  }
  0x3c   : > { %p2600_p1 = scmp.ne.s32.totalorder %s2817_s23, %s2599_s21  ;;  %s2604_s25 = sshll.u32 %s2673_s24, 4  ;;  %s2605_s25 = int_to_ptr.vmem [resolvable:$false] %s2604_s25 }
  0x3d   : > { %s2606_s12 = scalar_lea.vmem %s2605_s25, 8192  ;;  %p2607_p8 = scmp.lt.s32.totalorder %s2817_s23, %s2605_s25 }
  0x3e   : > { %p2602_p6 = pnand %p2600_p1, %p2556_p13  ;;  %p2608_p12 = scmp.lt.s32.totalorder %s2606_s12, %s2599_s21 }
  0x40   : > { %p2603_p7 = pneg %p2602_p6  ;;  %p2609_p0 = por %p2608_p12, %p2607_p8 }
  0x42   : > { %p2610_p2 = pnand %p2609_p0, %p2603_p7 }
  0x44   : > { %2613 = shalt.err (!%p2610_p2)
}
  0x45   : > { %2277 = dma.hbm_to_vmem [thread:$0]  (!%p2767_p11), %s2815_s30, 4096, %s2817_s23, %s243_s8, %s2671_s7, %s2671_s7, %s2672_s9  }
  0x46   : > { %272 = sbr.rel (%p2807_p5) target bundleno = 2277 (0x8e5), region = 36  ;;  %s2851_s10 = sand.u32 (!%p2807_p5), 1, %s2652_s16  }
  0x47   : > { %s2143_s5 = sshll.u32 (!%p2807_p5), %s2851_s10, 6  ;;  %s275_s6 = scalar_lea.sflag (!%p2807_p5), [#allocation6], %s2851_s10 }
  0x48   : > { %s278_s11 = scalar_lea.vmem (!%p2807_p5), [#allocation5], %s2143_s5  ;;  %p3529_p8 = scmp.ne.s32.totalorder (!%p2807_p5), %s3525_s26, 0 }
  0x4d   : > { %2639 = dma.done.wait (%p3529_p8), %s275_s6, 1024  }
  0x4e   : > { %2641 = vsyncadd (%p3529_p8), %s275_s6, 4294966272  ;;  %s2144_s29 = sshll.u32 %s2851_s10, 8  ;;  %s284_s7 = scalar_lea.sflag [#allocation8], %s2851_s10 }
  0x4f   : > { %s2861_s9 = scalar_lea.vmem [#allocation7], %s2144_s29 }
  0x50   : > { %2643 = dma.done.wait (%p3529_p8), %s284_s7, 4096  }
  0x51   : > { %2645 = vsyncadd (%p3529_p8), %s284_s7, 4294963200  ;;  %v2674_v0 = vmov 0   ;;  %v2330_v1 = vld [vmem:[%s278_s11 + $0x4] ss:$16 sps:$4 sm:$0xff]   ;;  %v2332_v2 = vld [vmem:[%s278_s11 + $0xc] ss:$16 sps:$4 sm:$0xff]   ;;  %v600_v46 = vlaneseq }
  0x52   : > { %484 = vmatprep.mubr.bf16.mxu0 %v2674_v0  ;;  %361 = vst [vmem:[#allocation2] sm:$0xf] %v2674_v0  ;;  %557 = vmatprep.mubr.bf16.mxu1 %v2674_v0  ;;  %v2334_v3 = vld [vmem:[%s278_s11] ss:$16 sps:$4 sm:$0xff]   ;;  %v2335_v4 = vld [vmem:[%s278_s11 + $0x8] ss:$16 sps:$4 sm:$0xff]  }
  0x53   : > { %452 = vmatprep.subr.bf16.mxu0 %v2330_v1  ;;  %525 = vmatprep.subr.bf16.mxu1 %v2332_v2  ;;  %v2336_v5 = vld [vmem:[%s278_s11 + $0x24] ss:$16 sps:$4 sm:$0xff]   ;;  %v2338_v6 = vld [vmem:[%s278_s11 + $0x2c] ss:$16 sps:$4 sm:$0xff]   ;;  %v2340_v7 = vld [vmem:[%s278_s11 + $0x20] ss:$16 sps:$4 sm:$0xff]  }
  0x54   : > { %453 = vmatpush1.bf16.msra.mxu0 %v2334_v3  ;;  %526 = vmatpush1.bf16.msra.mxu1 %v2335_v4  ;;  %v2341_v8 = vld [vmem:[%s278_s11 + $0x28] ss:$16 sps:$4 sm:$0xff]   ;;  %v2342_v9 = vld [vmem:[%s3518_s0] sm:$0xff]   ;;  %v2874_v10 = vld [vmem:[%s2861_s9 + $0x4] ss:$16 sps:$4 sm:$0xff]   ;;  %vm439_vm0 = vcmask 261120  }
  0x55   : > { %454 = vmatprep.subr.bf16.mxu0 %v2336_v5  ;;  %527 = vmatprep.subr.bf16.mxu1 %v2338_v6  ;;  %v2877_v11 = vld [vmem:[%s2861_s9] ss:$16 sps:$4 sm:$0xff]   ;;  %v2880_v12 = vld [vmem:[%s2861_s9 + $0xc] ss:$16 sps:$4 sm:$0xff]   ;;  %v2884_v13 = vld [vmem:[%s2861_s9 + $0x24] ss:$16 sps:$4 sm:$0xff]  }
  0x56   : > { %v2887_v14 = vld [vmem:[%s2861_s9 + $0x8] ss:$16 sps:$4 sm:$0xff]   ;;  %v2893_v15 = vld [vmem:[%s2861_s9 + $0x20] ss:$16 sps:$4 sm:$0xff]   ;;  %v2898_v16 = vld [vmem:[%s2861_s9 + $0x2c] ss:$16 sps:$4 sm:$0xff]  }
  0x57   : > { %v2903_v17 = vld [vmem:[%s2861_s9 + $0x44] ss:$16 sps:$4 sm:$0xff]   ;;  %v2906_v18 = vld [vmem:[%s2861_s9 + $0x28] ss:$16 sps:$4 sm:$0xff]   ;;  %v2911_v19 = vld [vmem:[%s2861_s9 + $0x4c] ss:$16 sps:$4 sm:$0xff]  }
  0x58   : > { %455 = vmatpush1.bf16.msra.mxu0 %v2340_v7  ;;  %528 = vmatpush1.bf16.msra.mxu1 %v2341_v8  ;;  %v2352_v20 = vld [vmem:[%s3518_s0 + $0x8] sm:$0xff]   ;;  %v2919_v21 = vld [vmem:[%s2861_s9 + $0x40] ss:$16 sps:$4 sm:$0xff]   ;;  %v2930_v24 = vld [vmem:[%s2861_s9 + $0x6c] ss:$16 sps:$4 sm:$0xff]   ;;  %p346_p11 = scmp.lt.s32.totalorder %s2660_s18, 1 }
  0x59   : > { %885 = vmatprep.subr.bf16.mxu0 %v2874_v10  ;;  %926 = vmatprep.subr.bf16.mxu1 %v2880_v12  ;;  %v2922_v22 = vld [vmem:[%s2861_s9 + $0x48] ss:$16 sps:$4 sm:$0xff]   ;;  %v2927_v23 = vld [vmem:[%s2861_s9 + $0x64] ss:$16 sps:$4 sm:$0xff]   ;;  %v2935_v25 = vld [vmem:[%s2861_s9 + $0x60] ss:$16 sps:$4 sm:$0xff]  }
  0x5a   : > { %v2938_v26 = vld [vmem:[%s2861_s9 + $0x84] ss:$16 sps:$4 sm:$0xff]   ;;  %v2943_v27 = vld [vmem:[%s2861_s9 + $0x68] ss:$16 sps:$4 sm:$0xff]   ;;  %v2948_v28 = vld [vmem:[%s2861_s9 + $0x8c] ss:$16 sps:$4 sm:$0xff]  }
  0x5b   : > { %2159 = vmatmul.mubr.msk.bf16.vlgmr.msra.gmra.mrb[0].mxu0 %vm439_vm0, %v2342_v9  ;;  %2163 = vmatmul.mubr.msk.bf16.vlgmr.msra.gmra.mrb[0].mxu1 %vm439_vm0, %v2342_v9  ;;  %v2365_v29 = vld [vmem:[%s3518_s0 + $0x10] sm:$0xff]   ;;  %v2961_v31 = vld [vmem:[%s2861_s9 + $0x88] ss:$16 sps:$4 sm:$0xff]   ;;  %v2966_v32 = vld [vmem:[%s2861_s9 + $0xa4] ss:$16 sps:$4 sm:$0xff]   ;;  %s347_s24 = scalar_select %p346_p11, %s2660_s18, 1 }
  0x5c   : > { %886 = vmatpush1.bf16.msra.mxu0 %v2877_v11  ;;  %927 = vmatpush1.bf16.msra.mxu1 %v2887_v14  ;;  %v2956_v30 = vld [vmem:[%s2861_s9 + $0x80] ss:$16 sps:$4 sm:$0xff]   ;;  %v2969_v33 = vld [vmem:[%s2861_s9 + $0xac] ss:$16 sps:$4 sm:$0xff]   ;;  %v2979_v35 = vld [vmem:[%s2861_s9 + $0xc4] ss:$16 sps:$4 sm:$0xff]  }
  0x5d   : > { %887 = vmatprep.subr.bf16.mxu0 %v2884_v13  ;;  %494 = vmatprep.mubr.bf16.mxu0 %v2674_v0  ;;  %v2974_v34 = vld [vmem:[%s2861_s9 + $0xa0] ss:$16 sps:$4 sm:$0xff]   ;;  %v2982_v36 = vld [vmem:[%s2861_s9 + $0xa8] ss:$16 sps:$4 sm:$0xff]   ;;  %v2987_v37 = vld [vmem:[%s2861_s9 + $0xcc] ss:$16 sps:$4 sm:$0xff]  }
  0x5e   : > { %567 = vmatprep.mubr.bf16.mxu1 %v2674_v0  ;;  %928 = vmatprep.subr.bf16.mxu1 %v2898_v16  ;;  %v2378_v38 = vld [vmem:[%s3518_s0 + $0x18] sm:$0xff]   ;;  %v2997_v39 = vld [vmem:[%s2861_s9 + $0xc0] ss:$16 sps:$4 sm:$0xff]   ;;  %v3008_v42 = vld [vmem:[%s2861_s9 + $0xec] ss:$16 sps:$4 sm:$0xff]   ;;  %s2146_s25 = sshll.u32 %s347_s24, 2 }
  0x5f   : > { %v3000_v40 = vld [vmem:[%s2861_s9 + $0xc8] ss:$16 sps:$4 sm:$0xff]   ;;  %v3005_v41 = vld [vmem:[%s2861_s9 + $0xe4] ss:$16 sps:$4 sm:$0xff]   ;;  %v3015_v43 = vld [vmem:[%s2861_s9 + $0xe0] ss:$16 sps:$4 sm:$0xff]   ;;  %s349_s6 = scalar_lea.vmem %s3521_s3, %s2146_s25 }
  0x60   : > { %888 = vmatpush1.bf16.msra.mxu0 %v2893_v15  ;;  %929 = vmatpush1.bf16.msra.mxu1 %v2906_v18  ;;  %v3018_v44 = vld [vmem:[%s2861_s9 + $0xe8] ss:$16 sps:$4 sm:$0xff]   ;;  %v717_v45 = vld [vmem:[#allocation2] sm:$0xf]  ;;  %v601_v47 = vshrl.u32 %v600_v46, 7  ;;  %s2257_s11 = smul.u32 224, %s2660_s18 }
  0x61   : > { %889 = vmatprep.subr.bf16.mxu0 %v2903_v17  ;;  %930 = vmatprep.subr.bf16.mxu1 %v2911_v19  ;;  %v598_v50 = vld [vmem:[%s349_s6] sm:$0xf]  ;;  %s2145_s7 = sshll.u32 %s2851_s10, 5  ;;  %s2258_s26 = smul.u32 28, %s2660_s18 }
  0x62   : > { %v602_v48 = vsub.s32 0, %v601_v47  ;;  %v610_v49 = vsub.s32 2, %v601_v47  ;;  %v606_v51 = vsub.s32 1, %v601_v47  ;;  %v614_v52 = vsub.s32 3, %v601_v47  ;;  %s720_s29 = scalar_lea.vmem [#allocation4], %s2257_s11  ;;  %s3113_s14 = scalar_lea.vmem [#allocation9], %s2145_s7 }
  0x63   : > { %2160 = vmatmul.mubr.msk.bf16.gmra.mrb[4].mxu0 %vm439_vm0, %v2352_v20  ;;  %2164 = vmatmul.mubr.msk.bf16.gmra.mrb[4].mxu1 %vm439_vm0, %v2352_v20  ;;  %s996_s23 = scalar_lea.vmem %s3113_s14, %s2258_s26 [#allocation9]  ;;  %s998_s10 = smul.u32 6, %s2660_s18 }
  0x64   : > { %890 = vmatpush1.bf16.msra.mxu0 %v2919_v21  ;;  %931 = vmatpush1.bf16.msra.mxu1 %v2922_v22  ;;  %v3067_v53 = vrot.slane %v598_v50, %v602_v48  ;;  %v3069_v54 = vrot.slane %v598_v50, %v610_v49  ;;  %v3071_v55 = vrot.slane %v598_v50, %v606_v51  ;;  %s3152_s30 = ssub.s32 1, %s2660_s18  ;;  %s1122_s25 = smul.u32 5, %s2660_s18 }
  0x65   : > { %891 = vmatprep.subr.bf16.mxu0 %v2927_v23  ;;  %504 = vmatprep.mubr.bf16.mxu0 %v2674_v0  ;;  %v3073_v56 = vrot.slane %v598_v50, %v614_v52  ;;  %s3155_s8 = sadd.s32 %s3152_s30, %s998_s10  ;;  %s2211_s12 = sshll.u32 %s3152_s30, 1 }
  0x66   : > { %577 = vmatprep.mubr.bf16.mxu1 %v2674_v0  ;;  %932 = vmatprep.subr.bf16.mxu1 %v2930_v24  ;;  %s2259_s13 = sshll.u32 %s3155_s8, 5  ;;  %s2210_s21 = sshll.u32 %s3155_s8, 2 }
  0x67   : > { %s1004_s15 = scalar_lea.vmem [#allocation4], %s2259_s13  ;;  %s1120_s24 = scalar_lea.vmem %s3113_s14, %s2210_s21 [#allocation9] }
  0x68   : > { %892 = vmatpush1.bf16.msra.mxu0 %v2935_v25  ;;  %933 = vmatpush1.bf16.msra.mxu1 %v2943_v27  ;;  %s3200_s5 = sadd.s32 %s2211_s12, %s1122_s25  ;;  %s1247_s26 = smul.u32 3, %s3152_s30 }
  0x69   : > { %893 = vmatprep.subr.bf16.mxu0 %v2938_v26  ;;  %934 = vmatprep.subr.bf16.mxu1 %v2948_v28  ;;  %s2260_s6 = sshll.u32 %s3200_s5, 5  ;;  %s2225_s25 = sshll.u32 %s3152_s30, 2 }
  0x6a   : > { %s1128_s11 = scalar_lea.vmem [#allocation4], %s2260_s6  ;;  %p3530_p13 = scmp.ne.s32.totalorder %s3526_s28, 0 }
  0x6b   : > { %2161 = vmatmul.mubr.msk.bf16.gmra.mrb[8].mxu0 %vm439_vm0, %v2365_v29  ;;  %2165 = vmatmul.mubr.msk.bf16.gmra.mrb[8].mxu1 %vm439_vm0, %v2365_v29 }
  0x6c   : > { %894 = vmatpush1.bf16.msra.mxu0 %v2956_v30  ;;  %935 = vmatpush1.bf16.msra.mxu1 %v2961_v31 }
  0x6d   : > { %895 = vmatprep.subr.bf16.mxu0 %v2966_v32  ;;  %514 = vmatprep.mubr.bf16.mxu0 %v2674_v0 }
  0x6e   : > { %587 = vmatprep.mubr.bf16.mxu1 %v2674_v0  ;;  %936 = vmatprep.subr.bf16.mxu1 %v2969_v33 }
  0x70   : > { %896 = vmatpush1.bf16.msra.mxu0 %v2974_v34  ;;  %937 = vmatpush1.bf16.msra.mxu1 %v2982_v36 }
  0x71   : > { %897 = vmatprep.subr.bf16.mxu0 %v2979_v35  ;;  %938 = vmatprep.subr.bf16.mxu1 %v2987_v37 }
  0x73   : > { %2162 = vmatmul.mubr.msk.bf16.gmra.mrb[12].mxu0 %vm439_vm0, %v2378_v38  ;;  %2166 = vmatmul.mubr.msk.bf16.gmra.mrb[12].mxu1 %vm439_vm0, %v2378_v38 }
  0x74   : > { %898 = vmatpush1.bf16.msra.mxu0 %v2997_v39  ;;  %939 = vmatpush1.bf16.msra.mxu1 %v3000_v40 }
  0x75   : > { %899 = vmatprep.subr.bf16.mxu0 %v3005_v41  ;;  %917 = vmatprep.mubr.bf16.mxu0 %v2674_v0 }
  0x76   : > { %940 = vmatprep.subr.bf16.mxu1 %v3008_v42  ;;  %958 = vmatprep.mubr.bf16.mxu1 %v2674_v0 }
  0x78   : > { %900 = vmatpush1.bf16.msra.mxu0 %v3015_v43  ;;  %941 = vmatpush1.bf16.msra.mxu1 %v3018_v44 }
  0x79   : > { %1009 = vmatprep.subr.bf16.mxu0 %v2874_v10  ;;  %1050 = vmatprep.subr.bf16.mxu1 %v2880_v12 }
  0x7b   : > { %918 = vmatmul.mubr.bf16.vlgmr.msra.gmra.mrb[16].mxu0 %v717_v45  ;;  %959 = vmatmul.mubr.bf16.vlgmr.msra.gmra.mrb[16].mxu1 %v717_v45 }
  0x7c   : > { %1010 = vmatpush1.bf16.msra.mxu0 %v2877_v11  ;;  %1051 = vmatpush1.bf16.msra.mxu1 %v2887_v14 }
  0x7d   : > { %1011 = vmatprep.subr.bf16.mxu0 %v2884_v13  ;;  %1052 = vmatprep.subr.bf16.mxu1 %v2898_v16 }
  0x7e   : > { %1041 = vmatprep.mubr.bf16.mxu0 %v2674_v0  ;;  %1082 = vmatprep.mubr.bf16.mxu1 %v2674_v0 }
  0x80   : > { %1012 = vmatpush1.bf16.msra.mxu0 %v2893_v15  ;;  %1053 = vmatpush1.bf16.msra.mxu1 %v2906_v18 }
  0x81   : > { %1013 = vmatprep.subr.bf16.mxu0 %v2903_v17  ;;  %1054 = vmatprep.subr.bf16.mxu1 %v2911_v19 }
  0x84   : > { %1014 = vmatpush1.bf16.msra.mxu0 %v2919_v21  ;;  %1055 = vmatpush1.bf16.msra.mxu1 %v2922_v22 }
  0x85   : > { %1015 = vmatprep.subr.bf16.mxu0 %v2927_v23  ;;  %1056 = vmatprep.subr.bf16.mxu1 %v2930_v24 }
  0x88   : > { %1016 = vmatpush1.bf16.msra.mxu0 %v2935_v25  ;;  %1057 = vmatpush1.bf16.msra.mxu1 %v2943_v27 }
  0x89   : > { %1017 = vmatprep.subr.bf16.mxu0 %v2938_v26  ;;  %1058 = vmatprep.subr.bf16.mxu1 %v2948_v28 }
  0x8c   : > { %1018 = vmatpush1.bf16.msra.mxu0 %v2956_v30  ;;  %1059 = vmatpush1.bf16.msra.mxu1 %v2961_v31 }
  0x8d   : > { %1019 = vmatprep.subr.bf16.mxu0 %v2966_v32  ;;  %1060 = vmatprep.subr.bf16.mxu1 %v2969_v33 }
  0x90   : > { %1020 = vmatpush1.bf16.msra.mxu0 %v2974_v34  ;;  %1061 = vmatpush1.bf16.msra.mxu1 %v2982_v36 }
  0x91   : > { %1021 = vmatprep.subr.bf16.mxu0 %v2979_v35  ;;  %1062 = vmatprep.subr.bf16.mxu1 %v2987_v37 }
  0x94   : > { %1022 = vmatpush1.bf16.msra.mxu0 %v2997_v39  ;;  %1063 = vmatpush1.bf16.msra.mxu1 %v3000_v40 }
  0x95   : > { %1023 = vmatprep.subr.bf16.mxu0 %v3005_v41  ;;  %1064 = vmatprep.subr.bf16.mxu1 %v3008_v42 }
  0x98   : > { %1024 = vmatpush1.bf16.msra.mxu0 %v3015_v43  ;;  %1065 = vmatpush1.bf16.msra.mxu1 %v3018_v44 }
  0x99   : > { %1133 = vmatprep.subr.bf16.mxu0 %v2874_v10  ;;  %1174 = vmatprep.subr.bf16.mxu1 %v2880_v12 }
 0x12e   : > { %v486_v57 = vpop.f32.mrb[0].mxu0  ;;  %v559_v58 = vpop.f32.mrb[0].mxu1 }
 0x12f   : > { %v620_v59 = vadd.f32 %v3067_v53, %v486_v57  ;;  %v622_v60 = vadd.f32 %v3069_v54, %v559_v58  ;;  %v488_v61 = vpop.f32.mrb[1].mxu0  ;;  %v561_v62 = vpop.f32.mrb[1].mxu1 }
 0x130   : > { %v621_v63 = vadd.f32 %v3071_v55, %v488_v61  ;;  %v623_v1 = vadd.f32 %v3073_v56, %v561_v62  ;;  %v490_v2 = vpop.f32.mrb[2].mxu0  ;;  %v563_v3 = vpop.f32.mrb[2].mxu1 }
 0x131   : > { %652 = vst [vmem:[#allocation4] sm:$0xff] %v620_v59  ;;  %654 = vst [vmem:[#allocation4 + $0x10] sm:$0xff] %v622_v60  ;;  %v624_v4 = vadd.f32 %v3067_v53, %v490_v2  ;;  %v626_v5 = vadd.f32 %v3069_v54, %v563_v3  ;;  %v492_v6 = vpop.f32.mrb[3].mxu0  ;;  %v565_v7 = vpop.f32.mrb[3].mxu1 }
 0x132   : > { %653 = vst [vmem:[#allocation4 + $0x8] sm:$0xff] %v621_v63  ;;  %655 = vst [vmem:[#allocation4 + $0x18] sm:$0xff] %v623_v1  ;;  %v625_v8 = vadd.f32 %v3071_v55, %v492_v6  ;;  %v627_v9 = vadd.f32 %v3073_v56, %v565_v7 }
 0x133   : > { %656 = vst [vmem:[#allocation4 + $0x20] sm:$0xff] %v624_v4  ;;  %658 = vst [vmem:[#allocation4 + $0x30] sm:$0xff] %v626_v5 }
 0x134   : > { %657 = vst [vmem:[#allocation4 + $0x28] sm:$0xff] %v625_v8  ;;  %659 = vst [vmem:[#allocation4 + $0x38] sm:$0xff] %v627_v9 }
 0x136   : > { %v496_v20 = vpop.f32.mrb[4].mxu0  ;;  %v569_v29 = vpop.f32.mrb[4].mxu1 }
 0x137   : > { %v628_v38 = vadd.f32 %v3067_v53, %v496_v20  ;;  %v630_v45 = vadd.f32 %v3069_v54, %v569_v29  ;;  %v498_v46 = vpop.f32.mrb[5].mxu0  ;;  %v571_v47 = vpop.f32.mrb[5].mxu1 }
 0x138   : > { %v629_v48 = vadd.f32 %v3071_v55, %v498_v46  ;;  %v631_v49 = vadd.f32 %v3073_v56, %v571_v47  ;;  %v500_v50 = vpop.f32.mrb[6].mxu0  ;;  %v573_v51 = vpop.f32.mrb[6].mxu1 }
 0x139   : > { %660 = vst [vmem:[#allocation4 + $0x40] sm:$0xff] %v628_v38  ;;  %662 = vst [vmem:[#allocation4 + $0x50] sm:$0xff] %v630_v45  ;;  %v632_v52 = vadd.f32 %v3067_v53, %v500_v50  ;;  %v634_v57 = vadd.f32 %v3069_v54, %v573_v51  ;;  %v502_v58 = vpop.f32.mrb[7].mxu0  ;;  %v575_v59 = vpop.f32.mrb[7].mxu1 }
 0x13a   : > { %661 = vst [vmem:[#allocation4 + $0x48] sm:$0xff] %v629_v48  ;;  %663 = vst [vmem:[#allocation4 + $0x58] sm:$0xff] %v631_v49  ;;  %v633_v60 = vadd.f32 %v3071_v55, %v502_v58  ;;  %v635_v61 = vadd.f32 %v3073_v56, %v575_v59 }
 0x13b   : > { %664 = vst [vmem:[#allocation4 + $0x60] sm:$0xff] %v632_v52  ;;  %666 = vst [vmem:[#allocation4 + $0x70] sm:$0xff] %v634_v57 }
 0x13c   : > { %665 = vst [vmem:[#allocation4 + $0x68] sm:$0xff] %v633_v60  ;;  %667 = vst [vmem:[#allocation4 + $0x78] sm:$0xff] %v635_v61 }
 0x13e   : > { %v506_v62 = vpop.f32.mrb[8].mxu0  ;;  %v579_v63 = vpop.f32.mrb[8].mxu1 }
 0x13f   : > { %v636_v1 = vadd.f32 %v3067_v53, %v506_v62  ;;  %v638_v2 = vadd.f32 %v3069_v54, %v579_v63  ;;  %v508_v3 = vpop.f32.mrb[9].mxu0  ;;  %v581_v4 = vpop.f32.mrb[9].mxu1 }
 0x140   : > { %v637_v5 = vadd.f32 %v3071_v55, %v508_v3  ;;  %v639_v6 = vadd.f32 %v3073_v56, %v581_v4  ;;  %v510_v7 = vpop.f32.mrb[10].mxu0  ;;  %v583_v8 = vpop.f32.mrb[10].mxu1 }
 0x141   : > { %668 = vst [vmem:[#allocation4 + $0x80] sm:$0xff] %v636_v1  ;;  %670 = vst [vmem:[#allocation4 + $0x90] sm:$0xff] %v638_v2  ;;  %v640_v9 = vadd.f32 %v3067_v53, %v510_v7  ;;  %v642_v20 = vadd.f32 %v3069_v54, %v583_v8  ;;  %v512_v29 = vpop.f32.mrb[11].mxu0  ;;  %v585_v38 = vpop.f32.mrb[11].mxu1 }
 0x142   : > { %669 = vst [vmem:[#allocation4 + $0x88] sm:$0xff] %v637_v5  ;;  %671 = vst [vmem:[#allocation4 + $0x98] sm:$0xff] %v639_v6  ;;  %v641_v45 = vadd.f32 %v3071_v55, %v512_v29  ;;  %v643_v46 = vadd.f32 %v3073_v56, %v585_v38 }
 0x143   : > { %672 = vst [vmem:[#allocation4 + $0xa0] sm:$0xff] %v640_v9  ;;  %674 = vst [vmem:[#allocation4 + $0xb0] sm:$0xff] %v642_v20 }
 0x144   : > { %673 = vst [vmem:[#allocation4 + $0xa8] sm:$0xff] %v641_v45  ;;  %675 = vst [vmem:[#allocation4 + $0xb8] sm:$0xff] %v643_v46 }
 0x146   : > { %v516_v47 = vpop.f32.mrb[12].mxu0  ;;  %v589_v48 = vpop.f32.mrb[12].mxu1 }
 0x147   : > { %v644_v49 = vadd.f32 %v3067_v53, %v516_v47  ;;  %v646_v50 = vadd.f32 %v3069_v54, %v589_v48  ;;  %v518_v51 = vpop.f32.mrb[13].mxu0  ;;  %v591_v52 = vpop.f32.mrb[13].mxu1 }
 0x148   : > { %v645_v57 = vadd.f32 %v3071_v55, %v518_v51  ;;  %v647_v58 = vadd.f32 %v3073_v56, %v591_v52  ;;  %v520_v59 = vpop.f32.mrb[14].mxu0  ;;  %v593_v60 = vpop.f32.mrb[14].mxu1 }
 0x149   : > { %676 = vst [vmem:[#allocation4 + $0xc0] sm:$0xff] %v644_v49  ;;  %678 = vst [vmem:[#allocation4 + $0xd0] sm:$0xff] %v646_v50  ;;  %v648_v61 = vadd.f32 %v3067_v53, %v520_v59  ;;  %v650_v62 = vadd.f32 %v3069_v54, %v593_v60  ;;  %v522_v63 = vpop.f32.mrb[15].mxu0  ;;  %v595_v1 = vpop.f32.mrb[15].mxu1 }
 0x14a   : > { %677 = vst [vmem:[#allocation4 + $0xc8] sm:$0xff] %v645_v57  ;;  %679 = vst [vmem:[#allocation4 + $0xd8] sm:$0xff] %v647_v58  ;;  %v649_v2 = vadd.f32 %v3071_v55, %v522_v63  ;;  %v651_v3 = vadd.f32 %v3073_v56, %v595_v1 }
 0x14b   : > { %680 = vst [vmem:[#allocation4 + $0xe0] sm:$0xff] %v648_v61  ;;  %682 = vst [vmem:[#allocation4 + $0xf0] sm:$0xff] %v650_v62 }
 0x14c   : > { %681 = vst [vmem:[#allocation4 + $0xe8] sm:$0xff] %v649_v2  ;;  %683 = vst [vmem:[#allocation4 + $0xf8] sm:$0xff] %v651_v3 }
 0x14e   : > { %v919_v4 = vpop.f32.mrb[16].mxu0  ;;  %v960_v5 = vpop.f32.mrb[16].mxu1 }
 0x14f   : > { %v921_v6 = vpop.f32.mrb[17].mxu0  ;;  %v962_v7 = vpop.f32.mrb[17].mxu1 }
 0x150   : > { %v923_v53 = vpop.f32.mrb[18].mxu0  ;;  %v964_v8 = vpop.f32.mrb[18].mxu1 }
 0x151   : > { %v924_v54 = vpop.f32.mrb[19].mxu0  ;;  %v965_v9 = vpop.f32.mrb[19].mxu1 }
 0x153   : > { %v721_v20 = vld [vmem:[%s720_s29] sm:$0xff]  ;;  %v722_v29 = vld [vmem:[%s720_s29 + $0x8] sm:$0xff]  ;;  %v723_v46 = vld [vmem:[%s720_s29 + $0x10] sm:$0xff] }
 0x154   : > { %v920_v38 = vadd.f32 %v919_v4, %v721_v20  ;;  %v922_v55 = vadd.f32 %v921_v6, %v722_v29  ;;  %v961_v47 = vadd.f32 %v960_v5, %v723_v46  ;;  %v724_v48 = vld [vmem:[%s720_s29 + $0x18] sm:$0xff]  ;;  %v1005_v8 = vld [vmem:[%s1004_s15] sm:$0xff]  ;;  %v1006_v29 = vld [vmem:[%s1004_s15 + $0x8] sm:$0xff]  ;;  %s2217_s29 = sshll.u32 %s3200_s5, 2 }
 0x155   : > { %v963_v50 = vadd.f32 %v962_v7, %v724_v48  ;;  %s1244_s7 = scalar_lea.vmem %s3113_s14, %s2217_s29 [#allocation9] }
 0x156   : > { %v2201_v45 = vmul.f32 -1.442695, %v920_v38  ;;  %v2202_v56 = vmul.f32 -1.442695, %v922_v55  ;;  %v2203_v49 = vmul.f32 -1.442695, %v961_v47 }
 0x158   : > { %2394 = vpow2.f32 %v2201_v45 }
 0x159   : > { %2396 = vpow2.f32 %v2202_v56 }
 0x15a   : > { %2398 = vpow2.f32 %v2203_v49 }
 0x15b   : > { %2400 = vtanh.f32 %v963_v50 }
 0x162   : > { %v2395_v51 = vpop.eup %2394 }
 0x163   : > { %v2397_v52 = vpop.eup %2396  ;;  %v976_v57 = vadd.f32 1.0, %v2395_v51  ;;  %v1007_v51 = vld [vmem:[%s1004_s15 + $0x10] sm:$0xff] }
 0x164   : > { %v977_v58 = vadd.f32 1.0, %v2397_v52  ;;  %v2399_v59 = vpop.eup %2398 }
 0x165   : > { %2402 = vrcp.f32 %v976_v57  ;;  %v2401_v60 = vpop.eup %2400  ;;  %v978_v63 = vadd.f32 1.0, %v2399_v59  ;;  %v1008_v57 = vld [vmem:[%s1004_s15 + $0x18] sm:$0xff] }
 0x166   : > { %2404 = vrcp.f32 %v977_v58 }
 0x167   : > { %2406 = vrcp.f32 %v978_v63 }
 0x16f   : > { %v2403_v61 = vpop.eup %2402 }
 0x170   : > { %v2405_v62 = vpop.eup %2404  ;;  %v988_v1 = vmul.f32 %v2403_v61, %v2401_v60 }
 0x171   : > { %v987_v2 = vmul.f32 0.0, %v2405_v62  ;;  %v2407_v4 = vpop.eup %2406 }
 0x173   : > { %v3108_v3 = vadd.f32 %v988_v1, %v987_v2 }
 0x175   : > { %2408 = vtanh.f32 %v3108_v3 }
 0x17f   : > { %v2409_v5 = vpop.eup %2408 }
 0x180   : > { %v991_v6 = vmul.f32 %v2409_v5, %v2407_v4 }
 0x182   : > { %v992_v7 = vpack.c.bf16 %v991_v6, %v991_v6 }
 0x184   : > { %994 = vst [vmem:[#allocation2] sm:$0xf] %v992_v7  ;;  %997 = vst [vmem:[%s996_s23] sm:$0xf] %v992_v7  ;;  %s2218_s23 = sshll.u32 %s2660_s18, 2 }
 0x185   : > { %s3253_s10 = sadd.s32 %s2218_s23, %s1247_s26  ;;  %s2232_s26 = sshll.u32 %s2660_s18, 1 }
 0x186   : > { %s2261_s8 = sshll.u32 %s3253_s10, 5  ;;  %s2224_s15 = sshll.u32 %s3253_s10, 2 }
 0x187   : > { %s1252_s13 = scalar_lea.vmem [#allocation4], %s2261_s8  ;;  %s1368_s21 = scalar_lea.vmem %s3113_s14, %s2224_s15 [#allocation9] }
 0x18b   : > { %v1001_v53 = vld [vmem:[#allocation2] sm:$0xf] }
 0x18c   : > { %1042 = vmatmul.mubr.bf16.vlgmr.msra.gmra.mrb[20].mxu0 %v1001_v53  ;;  %1083 = vmatmul.mubr.bf16.vlgmr.msra.gmra.mrb[20].mxu1 %v1001_v53 }
 0x18d   : > { %1134 = vmatpush1.bf16.msra.mxu0 %v2877_v11  ;;  %1175 = vmatpush1.bf16.msra.mxu1 %v2887_v14 }
 0x18e   : > { %1135 = vmatprep.subr.bf16.mxu0 %v2884_v13  ;;  %1176 = vmatprep.subr.bf16.mxu1 %v2898_v16 }
 0x18f   : > { %1165 = vmatprep.mubr.bf16.mxu0 %v2674_v0  ;;  %1206 = vmatprep.mubr.bf16.mxu1 %v2674_v0 }
 0x191   : > { %1136 = vmatpush1.bf16.msra.mxu0 %v2893_v15  ;;  %1177 = vmatpush1.bf16.msra.mxu1 %v2906_v18 }
 0x192   : > { %1137 = vmatprep.subr.bf16.mxu0 %v2903_v17  ;;  %1178 = vmatprep.subr.bf16.mxu1 %v2911_v19 }
 0x195   : > { %1138 = vmatpush1.bf16.msra.mxu0 %v2919_v21  ;;  %1179 = vmatpush1.bf16.msra.mxu1 %v2922_v22 }
 0x196   : > { %1139 = vmatprep.subr.bf16.mxu0 %v2927_v23  ;;  %1180 = vmatprep.subr.bf16.mxu1 %v2930_v24 }
 0x199   : > { %1140 = vmatpush1.bf16.msra.mxu0 %v2935_v25  ;;  %1181 = vmatpush1.bf16.msra.mxu1 %v2943_v27 }
 0x19a   : > { %1141 = vmatprep.subr.bf16.mxu0 %v2938_v26  ;;  %1182 = vmatprep.subr.bf16.mxu1 %v2948_v28 }
 0x19d   : > { %1142 = vmatpush1.bf16.msra.mxu0 %v2956_v30  ;;  %1183 = vmatpush1.bf16.msra.mxu1 %v2961_v31 }
 0x19e   : > { %1143 = vmatprep.subr.bf16.mxu0 %v2966_v32  ;;  %1184 = vmatprep.subr.bf16.mxu1 %v2969_v33 }
 0x1a1   : > { %1144 = vmatpush1.bf16.msra.mxu0 %v2974_v34  ;;  %1185 = vmatpush1.bf16.msra.mxu1 %v2982_v36 }
 0x1a2   : > { %1145 = vmatprep.subr.bf16.mxu0 %v2979_v35  ;;  %1186 = vmatprep.subr.bf16.mxu1 %v2987_v37 }
 0x1a5   : > { %1146 = vmatpush1.bf16.msra.mxu0 %v2997_v39  ;;  %1187 = vmatpush1.bf16.msra.mxu1 %v3000_v40 }
 0x1a6   : > { %1147 = vmatprep.subr.bf16.mxu0 %v3005_v41  ;;  %1188 = vmatprep.subr.bf16.mxu1 %v3008_v42 }
 0x1a9   : > { %1148 = vmatpush1.bf16.msra.mxu0 %v3015_v43  ;;  %1189 = vmatpush1.bf16.msra.mxu1 %v3018_v44 }
 0x1aa   : > { %1257 = vmatprep.subr.bf16.mxu0 %v2874_v10  ;;  %1298 = vmatprep.subr.bf16.mxu1 %v2880_v12 }
 0x25f   : > { %v1043_v54 = vpop.f32.mrb[20].mxu0  ;;  %v1084_v9 = vpop.f32.mrb[20].mxu1 }
 0x260   : > { %v1044_v20 = vadd.f32 %v1043_v54, %v1005_v8  ;;  %v1045_v38 = vpop.f32.mrb[21].mxu0  ;;  %v1086_v55 = vpop.f32.mrb[21].mxu1  ;;  %v1085_v52 = vadd.f32 %v1084_v9, %v1007_v51 }
 0x261   : > { %v1046_v45 = vadd.f32 %v1045_v38, %v1006_v29  ;;  %v1047_v56 = vpop.f32.mrb[22].mxu0  ;;  %v1088_v46 = vpop.f32.mrb[22].mxu1  ;;  %v1087_v58 = vadd.f32 %v1086_v55, %v1008_v57 }
 0x262   : > { %v2207_v47 = vmul.f32 -1.442695, %v1044_v20  ;;  %v1048_v48 = vpop.f32.mrb[23].mxu0  ;;  %v1089_v49 = vpop.f32.mrb[23].mxu1  ;;  %v2209_v59 = vmul.f32 -1.442695, %v1085_v52 }
 0x263   : > { %v2208_v50 = vmul.f32 -1.442695, %v1046_v45  ;;  %v1130_v46 = vld [vmem:[%s1128_s11 + $0x8] sm:$0xff] }
 0x264   : > { %2410 = vpow2.f32 %v2207_v47 }
 0x265   : > { %2412 = vpow2.f32 %v2208_v50 }
 0x266   : > { %2414 = vtanh.f32 %v1087_v58  ;;  %v1131_v58 = vld [vmem:[%s1128_s11 + $0x10] sm:$0xff] }
 0x267   : > { %2416 = vpow2.f32 %v2209_v59 }
 0x26e   : > { %v2411_v60 = vpop.eup %2410 }
 0x26f   : > { %v1100_v61 = vadd.f32 1.0, %v2411_v60  ;;  %v2413_v62 = vpop.eup %2412  ;;  %v1132_v60 = vld [vmem:[%s1128_s11 + $0x18] sm:$0xff] }
 0x270   : > { %v1101_v63 = vadd.f32 1.0, %v2413_v62  ;;  %v2415_v1 = vpop.eup %2414 }
 0x271   : > { %2418 = vrcp.f32 %v1100_v61  ;;  %v2417_v2 = vpop.eup %2416 }
 0x272   : > { %2420 = vrcp.f32 %v1101_v63  ;;  %v1102_v7 = vadd.f32 1.0, %v2417_v2 }
 0x274   : > { %2422 = vrcp.f32 %v1102_v7 }
 0x27b   : > { %v2419_v4 = vpop.eup %2418 }
 0x27c   : > { %v1112_v5 = vmul.f32 %v2419_v4, %v2415_v1  ;;  %v2421_v6 = vpop.eup %2420 }
 0x27d   : > { %v1111_v53 = vmul.f32 %v2421_v6, %v3108_v3  ;;  %v1129_v3 = vld [vmem:[%s1128_s11] sm:$0xff] }
 0x27e   : > { %v2423_v54 = vpop.eup %2422 }
 0x27f   : > { %v3159_v8 = vadd.f32 %v1112_v5, %v1111_v53 }
 0x281   : > { %2424 = vtanh.f32 %v3159_v8 }
 0x28b   : > { %v2425_v9 = vpop.eup %2424 }
 0x28c   : > { %v1115_v20 = vmul.f32 %v2425_v9, %v2423_v54 }
 0x28e   : > { %v1116_v29 = vpack.c.bf16 %v1115_v20, %v1115_v20 }
 0x290   : > { %1118 = vst [vmem:[#allocation2] sm:$0xf] %v1116_v29  ;;  %1121 = vst [vmem:[%s1120_s24] sm:$0xf] %v1116_v29  ;;  %s1370_s24 = smul.u32 3, %s2660_s18 }
 0x292   : > { %s3382_s12 = sadd.s32 %s2225_s25, %s1370_s24 }
 0x293   : > { %s2262_s5 = sshll.u32 %s3382_s12, 5  ;;  %s2231_s11 = sshll.u32 %s3382_s12, 2 }
 0x294   : > { %s1376_s6 = scalar_lea.vmem [#allocation4], %s2262_s5  ;;  %s1492_s29 = scalar_lea.vmem %s3113_s14, %s2231_s11 [#allocation9] }
 0x295   : > { %s2265_s11 = smul.u32 224, %s3152_s30 }
 0x297   : > { %v1125_v38 = vld [vmem:[#allocation2] sm:$0xf] }
 0x298   : > { %1166 = vmatmul.mubr.bf16.vlgmr.msra.gmra.mrb[24].mxu0 %v1125_v38  ;;  %1207 = vmatmul.mubr.bf16.vlgmr.msra.gmra.mrb[24].mxu1 %v1125_v38 }
 0x299   : > { %1258 = vmatpush1.bf16.msra.mxu0 %v2877_v11  ;;  %1299 = vmatpush1.bf16.msra.mxu1 %v2887_v14 }
 0x29a   : > { %1259 = vmatprep.subr.bf16.mxu0 %v2884_v13  ;;  %1300 = vmatprep.subr.bf16.mxu1 %v2898_v16 }
 0x29b   : > { %1289 = vmatprep.mubr.bf16.mxu0 %v2674_v0  ;;  %1330 = vmatprep.mubr.bf16.mxu1 %v2674_v0 }
 0x29d   : > { %1260 = vmatpush1.bf16.msra.mxu0 %v2893_v15  ;;  %1301 = vmatpush1.bf16.msra.mxu1 %v2906_v18 }
 0x29e   : > { %1261 = vmatprep.subr.bf16.mxu0 %v2903_v17  ;;  %1302 = vmatprep.subr.bf16.mxu1 %v2911_v19 }
 0x2a1   : > { %1262 = vmatpush1.bf16.msra.mxu0 %v2919_v21  ;;  %1303 = vmatpush1.bf16.msra.mxu1 %v2922_v22 }
 0x2a2   : > { %1263 = vmatprep.subr.bf16.mxu0 %v2927_v23  ;;  %1304 = vmatprep.subr.bf16.mxu1 %v2930_v24 }
 0x2a5   : > { %1264 = vmatpush1.bf16.msra.mxu0 %v2935_v25  ;;  %1305 = vmatpush1.bf16.msra.mxu1 %v2943_v27 }
 0x2a6   : > { %1265 = vmatprep.subr.bf16.mxu0 %v2938_v26  ;;  %1306 = vmatprep.subr.bf16.mxu1 %v2948_v28 }
 0x2a9   : > { %1266 = vmatpush1.bf16.msra.mxu0 %v2956_v30  ;;  %1307 = vmatpush1.bf16.msra.mxu1 %v2961_v31 }
 0x2aa   : > { %1267 = vmatprep.subr.bf16.mxu0 %v2966_v32  ;;  %1308 = vmatprep.subr.bf16.mxu1 %v2969_v33 }
 0x2ad   : > { %1268 = vmatpush1.bf16.msra.mxu0 %v2974_v34  ;;  %1309 = vmatpush1.bf16.msra.mxu1 %v2982_v36 }
 0x2ae   : > { %1269 = vmatprep.subr.bf16.mxu0 %v2979_v35  ;;  %1310 = vmatprep.subr.bf16.mxu1 %v2987_v37 }
 0x2b1   : > { %1270 = vmatpush1.bf16.msra.mxu0 %v2997_v39  ;;  %1311 = vmatpush1.bf16.msra.mxu1 %v3000_v40 }
 0x2b2   : > { %1271 = vmatprep.subr.bf16.mxu0 %v3005_v41  ;;  %1312 = vmatprep.subr.bf16.mxu1 %v3008_v42 }
 0x2b5   : > { %1272 = vmatpush1.bf16.msra.mxu0 %v3015_v43  ;;  %1313 = vmatpush1.bf16.msra.mxu1 %v3018_v44 }
 0x2b6   : > { %1381 = vmatprep.subr.bf16.mxu0 %v2874_v10  ;;  %1422 = vmatprep.subr.bf16.mxu1 %v2880_v12 }
 0x36b   : > { %v1167_v55 = vpop.f32.mrb[24].mxu0  ;;  %v1208_v45 = vpop.f32.mrb[24].mxu1 }
 0x36c   : > { %v1168_v56 = vadd.f32 %v1167_v55, %v1129_v3  ;;  %v1169_v47 = vpop.f32.mrb[25].mxu0  ;;  %v1210_v48 = vpop.f32.mrb[25].mxu1  ;;  %v1209_v59 = vadd.f32 %v1208_v45, %v1131_v58  ;;  %v3267_v58 = vld [vmem:[%s2861_s9 + $0x8] ss:$16 sps:$4 sm:$0xff]  }
 0x36d   : > { %v1170_v49 = vadd.f32 %v1169_v47, %v1130_v46  ;;  %v1171_v50 = vpop.f32.mrb[26].mxu0  ;;  %v1212_v51 = vpop.f32.mrb[26].mxu1  ;;  %v1211_v61 = vadd.f32 %v1210_v48, %v1132_v60  ;;  %v3275_v60 = vld [vmem:[%s2861_s9 + $0x2c] ss:$16 sps:$4 sm:$0xff]  }
 0x36e   : > { %v2214_v10 = vmul.f32 -1.442695, %v1168_v56  ;;  %v1172_v52 = vpop.f32.mrb[27].mxu0  ;;  %v1213_v12 = vpop.f32.mrb[27].mxu1  ;;  %v2216_v62 = vmul.f32 -1.442695, %v1209_v59 }
 0x36f   : > { %v2215_v57 = vmul.f32 -1.442695, %v1170_v49  ;;  %v3271_v59 = vld [vmem:[%s2861_s9 + $0x24] ss:$16 sps:$4 sm:$0xff]  }
 0x370   : > { %2426 = vpow2.f32 %v2214_v10 }
 0x371   : > { %2428 = vpow2.f32 %v2215_v57  ;;  %v3263_v57 = vld [vmem:[%s2861_s9] ss:$16 sps:$4 sm:$0xff]  }
 0x372   : > { %2430 = vtanh.f32 %v1211_v61  ;;  %v3281_v61 = vld [vmem:[%s2861_s9 + $0x20] ss:$16 sps:$4 sm:$0xff]  }
 0x373   : > { %2432 = vpow2.f32 %v2216_v62  ;;  %v3285_v62 = vld [vmem:[%s2861_s9 + $0x28] ss:$16 sps:$4 sm:$0xff]  }
 0x37a   : > { %v2427_v63 = vpop.eup %2426 }
 0x37b   : > { %v1224_v1 = vadd.f32 1.0, %v2427_v63  ;;  %v2429_v2 = vpop.eup %2428  ;;  %v3289_v63 = vld [vmem:[%s2861_s9 + $0x44] ss:$16 sps:$4 sm:$0xff]  }
 0x37c   : > { %v1225_v4 = vadd.f32 1.0, %v2429_v2  ;;  %v2431_v5 = vpop.eup %2430  ;;  %v3297_v2 = vld [vmem:[%s2861_s9 + $0x40] ss:$16 sps:$4 sm:$0xff]  }
 0x37d   : > { %2434 = vrcp.f32 %v1224_v1  ;;  %v2433_v6 = vpop.eup %2432  ;;  %v3293_v1 = vld [vmem:[%s2861_s9 + $0x4c] ss:$16 sps:$4 sm:$0xff]  }
 0x37e   : > { %2436 = vrcp.f32 %v1225_v4  ;;  %v1226_v9 = vadd.f32 1.0, %v2433_v6  ;;  %v3301_v4 = vld [vmem:[%s2861_s9 + $0x48] ss:$16 sps:$4 sm:$0xff]   ;;  %v3309_v6 = vld [vmem:[%s2861_s9 + $0x6c] ss:$16 sps:$4 sm:$0xff]  }
 0x380   : > { %2438 = vrcp.f32 %v1226_v9  ;;  %v3325_v9 = vld [vmem:[%s2861_s9 + $0x8c] ss:$16 sps:$4 sm:$0xff]  }
 0x387   : > { %v2435_v7 = vpop.eup %2434 }
 0x388   : > { %v1236_v53 = vmul.f32 %v2435_v7, %v2431_v5  ;;  %v2437_v54 = vpop.eup %2436  ;;  %v3305_v5 = vld [vmem:[%s2861_s9 + $0x64] ss:$16 sps:$4 sm:$0xff]   ;;  %v3313_v7 = vld [vmem:[%s2861_s9 + $0x60] ss:$16 sps:$4 sm:$0xff]  }
 0x389   : > { %v1235_v20 = vmul.f32 %v2437_v54, %v3159_v8  ;;  %v3321_v54 = vld [vmem:[%s2861_s9 + $0x84] ss:$16 sps:$4 sm:$0xff]  }
 0x38a   : > { %v2439_v38 = vpop.eup %2438 }
 0x38b   : > { %v3204_v29 = vadd.f32 %v1236_v53, %v1235_v20  ;;  %v3317_v53 = vld [vmem:[%s2861_s9 + $0x68] ss:$16 sps:$4 sm:$0xff]   ;;  %v3329_v20 = vld [vmem:[%s2861_s9 + $0x80] ss:$16 sps:$4 sm:$0xff]  }
 0x38d   : > { %2440 = vtanh.f32 %v3204_v29 }
 0x397   : > { %v2441_v3 = vpop.eup %2440 }
 0x398   : > { %v1239_v55 = vmul.f32 %v2441_v3, %v2439_v38  ;;  %v3337_v38 = vld [vmem:[%s2861_s9 + $0xa4] ss:$16 sps:$4 sm:$0xff]   ;;  %v3341_v3 = vld [vmem:[%s2861_s9 + $0xac] ss:$16 sps:$4 sm:$0xff]  }
 0x39a   : > { %v1240_v45 = vpack.c.bf16 %v1239_v55, %v1239_v55  ;;  %v3345_v55 = vld [vmem:[%s2861_s9 + $0xa0] ss:$16 sps:$4 sm:$0xff]  }
 0x39c   : > { %1245 = vst [vmem:[%s1244_s7] sm:$0xf] %v1240_v45  ;;  %1242 = vst [vmem:[#allocation2] sm:$0xf] %v1240_v45  ;;  %v3349_v45 = vld [vmem:[%s2861_s9 + $0xa8] ss:$16 sps:$4 sm:$0xff]   ;;  %s1495_s7 = smul.u32 5, %s3152_s30 }
 0x39e   : > { %s3433_s10 = sadd.s32 %s2232_s26, %s1495_s7  ;;  %s2266_s7 = smul.u32 28, %s3152_s30 }
 0x39f   : > { %s2263_s8 = sshll.u32 %s3433_s10, 5 }
 0x3a0   : > { %s1861_s26 = scalar_lea.vmem %s3113_s14, %s2266_s7 [#allocation9] }
 0x3a3   : > { %v1249_v56 = vld [vmem:[#allocation2] sm:$0xf] }
 0x3a4   : > { %1290 = vmatmul.mubr.bf16.vlgmr.msra.gmra.mrb[28].mxu0 %v1249_v56  ;;  %1331 = vmatmul.mubr.bf16.vlgmr.msra.gmra.mrb[28].mxu1 %v1249_v56  ;;  %v3353_v56 = vld [vmem:[%s2861_s9 + $0xc4] ss:$16 sps:$4 sm:$0xff]  }
 0x3a5   : > { %1382 = vmatpush1.bf16.msra.mxu0 %v2877_v11  ;;  %1423 = vmatpush1.bf16.msra.mxu1 %v2887_v14  ;;  %v3242_v11 = vld [vmem:[%s2861_s9 + $0x4] ss:$16 sps:$4 sm:$0xff]   ;;  %v1253_v14 = vld [vmem:[%s1252_s13] sm:$0xff] }
 0x3a6   : > { %1383 = vmatprep.subr.bf16.mxu0 %v2884_v13  ;;  %1424 = vmatprep.subr.bf16.mxu1 %v2898_v16  ;;  %v3246_v13 = vld [vmem:[%s2861_s9 + $0xc] ss:$16 sps:$4 sm:$0xff]  }
 0x3a7   : > { %1413 = vmatprep.mubr.bf16.mxu0 %v2674_v0  ;;  %1454 = vmatprep.mubr.bf16.mxu1 %v2674_v0 }
 0x3a9   : > { %1384 = vmatpush1.bf16.msra.mxu0 %v2893_v15  ;;  %1425 = vmatpush1.bf16.msra.mxu1 %v2906_v18  ;;  %v1254_v18 = vld [vmem:[%s1252_s13 + $0x8] sm:$0xff] }
 0x3aa   : > { %1385 = vmatprep.subr.bf16.mxu0 %v2903_v17  ;;  %1426 = vmatprep.subr.bf16.mxu1 %v2911_v19 }
 0x3ad   : > { %1386 = vmatpush1.bf16.msra.mxu0 %v2919_v21  ;;  %1427 = vmatpush1.bf16.msra.mxu1 %v2922_v22 }
 0x3ae   : > { %1387 = vmatprep.subr.bf16.mxu0 %v2927_v23  ;;  %1428 = vmatprep.subr.bf16.mxu1 %v2930_v24 }
 0x3b1   : > { %1388 = vmatpush1.bf16.msra.mxu0 %v2935_v25  ;;  %1429 = vmatpush1.bf16.msra.mxu1 %v2943_v27 }
 0x3b2   : > { %1389 = vmatprep.subr.bf16.mxu0 %v2938_v26  ;;  %1430 = vmatprep.subr.bf16.mxu1 %v2948_v28 }
 0x3b5   : > { %1390 = vmatpush1.bf16.msra.mxu0 %v2956_v30  ;;  %1431 = vmatpush1.bf16.msra.mxu1 %v2961_v31  ;;  %v1255_v30 = vld [vmem:[%s1252_s13 + $0x10] sm:$0xff] }
 0x3b6   : > { %1391 = vmatprep.subr.bf16.mxu0 %v2966_v32  ;;  %1432 = vmatprep.subr.bf16.mxu1 %v2969_v33  ;;  %v1256_v32 = vld [vmem:[%s1252_s13 + $0x18] sm:$0xff]  ;;  %s1500_s13 = scalar_lea.vmem [#allocation4], %s2263_s8 }
 0x3b9   : > { %1392 = vmatpush1.bf16.msra.mxu0 %v2974_v34  ;;  %1433 = vmatpush1.bf16.msra.mxu1 %v2982_v36 }
 0x3ba   : > { %1393 = vmatprep.subr.bf16.mxu0 %v2979_v35  ;;  %1434 = vmatprep.subr.bf16.mxu1 %v2987_v37 }
 0x3bd   : > { %1394 = vmatpush1.bf16.msra.mxu0 %v2997_v39  ;;  %1435 = vmatpush1.bf16.msra.mxu1 %v3000_v40 }
 0x3be   : > { %1395 = vmatprep.subr.bf16.mxu0 %v3005_v41  ;;  %1436 = vmatprep.subr.bf16.mxu1 %v3008_v42 }
 0x3c1   : > { %1396 = vmatpush1.bf16.msra.mxu0 %v3015_v43  ;;  %1437 = vmatpush1.bf16.msra.mxu1 %v3018_v44 }
 0x3c2   : > { %1505 = vmatprep.subr.bf16.mxu0 %v3242_v11  ;;  %1546 = vmatprep.subr.bf16.mxu1 %v3246_v13 }
 0x477   : > { %v1291_v15 = vpop.f32.mrb[28].mxu0  ;;  %v1332_v16 = vpop.f32.mrb[28].mxu1 }
 0x478   : > { %v1292_v17 = vadd.f32 %v1291_v15, %v1253_v14  ;;  %v1293_v19 = vpop.f32.mrb[29].mxu0  ;;  %v1334_v21 = vpop.f32.mrb[29].mxu1  ;;  %v1333_v31 = vadd.f32 %v1332_v16, %v1255_v30  ;;  %v3357_v14 = vld [vmem:[%s2861_s9 + $0xcc] ss:$16 sps:$4 sm:$0xff]   ;;  %v3361_v15 = vld [vmem:[%s2861_s9 + $0xc0] ss:$16 sps:$4 sm:$0xff]  }
 0x479   : > { %v1294_v22 = vadd.f32 %v1293_v19, %v1254_v18  ;;  %v1295_v23 = vpop.f32.mrb[30].mxu0  ;;  %v1336_v24 = vpop.f32.mrb[30].mxu1  ;;  %v1335_v33 = vadd.f32 %v1334_v21, %v1256_v32  ;;  %v3365_v16 = vld [vmem:[%s2861_s9 + $0xc8] ss:$16 sps:$4 sm:$0xff]   ;;  %v3373_v18 = vld [vmem:[%s2861_s9 + $0xec] ss:$16 sps:$4 sm:$0xff]  }
 0x47a   : > { %v2221_v25 = vmul.f32 -1.442695, %v1292_v17  ;;  %v1296_v26 = vpop.f32.mrb[31].mxu0  ;;  %v1337_v27 = vpop.f32.mrb[31].mxu1  ;;  %v2223_v34 = vmul.f32 -1.442695, %v1333_v31 }
 0x47b   : > { %v2222_v28 = vmul.f32 -1.442695, %v1294_v22  ;;  %v3369_v17 = vld [vmem:[%s2861_s9 + $0xe4] ss:$16 sps:$4 sm:$0xff]   ;;  %v1377_v19 = vld [vmem:[%s1376_s6] sm:$0xff] }
 0x47c   : > { %2442 = vpow2.f32 %v2221_v25  ;;  %v1378_v24 = vld [vmem:[%s1376_s6 + $0x8] sm:$0xff] }
 0x47d   : > { %2444 = vpow2.f32 %v2222_v28 }
 0x47e   : > { %2446 = vtanh.f32 %v1335_v33  ;;  %v1379_v33 = vld [vmem:[%s1376_s6 + $0x10] sm:$0xff] }
 0x47f   : > { %2448 = vpow2.f32 %v2223_v34 }
 0x486   : > { %v2443_v35 = vpop.eup %2442 }
 0x487   : > { %v1348_v36 = vadd.f32 1.0, %v2443_v35  ;;  %v2445_v37 = vpop.eup %2444  ;;  %v1380_v35 = vld [vmem:[%s1376_s6 + $0x18] sm:$0xff] }
 0x488   : > { %v1349_v39 = vadd.f32 1.0, %v2445_v37  ;;  %v2447_v40 = vpop.eup %2446 }
 0x489   : > { %2450 = vrcp.f32 %v1348_v36  ;;  %v2449_v41 = vpop.eup %2448 }
 0x48a   : > { %2452 = vrcp.f32 %v1349_v39  ;;  %v1350_v47 = vadd.f32 1.0, %v2449_v41 }
 0x48c   : > { %2454 = vrcp.f32 %v1350_v47 }
 0x493   : > { %v2451_v42 = vpop.eup %2450 }
 0x494   : > { %v1360_v8 = vmul.f32 %v2451_v42, %v2447_v40  ;;  %v2453_v46 = vpop.eup %2452 }
 0x495   : > { %v1359_v48 = vmul.f32 %v2453_v46, %v3204_v29  ;;  %v3333_v29 = vld [vmem:[%s2861_s9 + $0x88] ss:$16 sps:$4 sm:$0xff]  }
 0x496   : > { %v2455_v50 = vpop.eup %2454 }
 0x497   : > { %v3257_v49 = vadd.f32 %v1360_v8, %v1359_v48 }
 0x499   : > { %2456 = vtanh.f32 %v3257_v49 }
 0x4a3   : > { %v2457_v51 = vpop.eup %2456 }
 0x4a4   : > { %v1363_v10 = vmul.f32 %v2457_v51, %v2455_v50 }
 0x4a6   : > { %v1364_v52 = vpack.c.bf16 %v1363_v10, %v1363_v10 }
 0x4a8   : > { %1369 = vst [vmem:[%s1368_s21] sm:$0xf] %v1364_v52  ;;  %1366 = vst [vmem:[#allocation2] sm:$0xf] %v1364_v52  ;;  %s1618_s21 = smul.u32 6, %s3152_s30  ;;  %s1879_s30 = scalar_lea.vmem (%p3530_p13), %s3522_s4, %s2218_s23 }
 0x4aa   : > { %s3476_s24 = sadd.s32 %s2660_s18, %s1618_s21 }
 0x4ab   : > { %s2264_s25 = sshll.u32 %s3476_s24, 5  ;;  %s2244_s5 = sshll.u32 %s3476_s24, 2 }
 0x4ac   : > { %s1623_s12 = scalar_lea.vmem [#allocation4], %s2264_s25  ;;  %s1739_s6 = scalar_lea.vmem %s3113_s14, %s2244_s5 [#allocation9] }
 0x4af   : > { %v1373_v12 = vld [vmem:[#allocation2] sm:$0xf] }
 0x4b0   : > { %1414 = vmatmul.mubr.bf16.vlgmr.msra.gmra.mrb[32].mxu0 %v1373_v12  ;;  %1455 = vmatmul.mubr.bf16.vlgmr.msra.gmra.mrb[32].mxu1 %v1373_v12 }
 0x4b1   : > { %1506 = vmatpush1.bf16.msra.mxu0 %v3263_v57  ;;  %1547 = vmatpush1.bf16.msra.mxu1 %v3267_v58 }
 0x4b2   : > { %1507 = vmatprep.subr.bf16.mxu0 %v3271_v59  ;;  %1548 = vmatprep.subr.bf16.mxu1 %v3275_v60 }
 0x4b3   : > { %1537 = vmatprep.mubr.bf16.mxu0 %v2674_v0  ;;  %1578 = vmatprep.mubr.bf16.mxu1 %v2674_v0 }
 0x4b5   : > { %1508 = vmatpush1.bf16.msra.mxu0 %v3281_v61  ;;  %1549 = vmatpush1.bf16.msra.mxu1 %v3285_v62 }
 0x4b6   : > { %1509 = vmatprep.subr.bf16.mxu0 %v3289_v63  ;;  %1550 = vmatprep.subr.bf16.mxu1 %v3293_v1 }
 0x4b9   : > { %1510 = vmatpush1.bf16.msra.mxu0 %v3297_v2  ;;  %1551 = vmatpush1.bf16.msra.mxu1 %v3301_v4 }
 0x4ba   : > { %1511 = vmatprep.subr.bf16.mxu0 %v3305_v5  ;;  %1552 = vmatprep.subr.bf16.mxu1 %v3309_v6 }
 0x4bd   : > { %1512 = vmatpush1.bf16.msra.mxu0 %v3313_v7  ;;  %1553 = vmatpush1.bf16.msra.mxu1 %v3317_v53 }
 0x4be   : > { %1513 = vmatprep.subr.bf16.mxu0 %v3321_v54  ;;  %1554 = vmatprep.subr.bf16.mxu1 %v3325_v9 }
 0x4c1   : > { %1514 = vmatpush1.bf16.msra.mxu0 %v3329_v20  ;;  %1555 = vmatpush1.bf16.msra.mxu1 %v3333_v29 }
 0x4c2   : > { %1515 = vmatprep.subr.bf16.mxu0 %v3337_v38  ;;  %1556 = vmatprep.subr.bf16.mxu1 %v3341_v3 }
 0x4c5   : > { %1516 = vmatpush1.bf16.msra.mxu0 %v3345_v55  ;;  %1557 = vmatpush1.bf16.msra.mxu1 %v3349_v45 }
 0x4c6   : > { %1517 = vmatprep.subr.bf16.mxu0 %v3353_v56  ;;  %1558 = vmatprep.subr.bf16.mxu1 %v3357_v14 }
 0x4c9   : > { %1518 = vmatpush1.bf16.msra.mxu0 %v3361_v15  ;;  %1559 = vmatpush1.bf16.msra.mxu1 %v3365_v16 }
 0x4ca   : > { %1519 = vmatprep.subr.bf16.mxu0 %v3369_v17  ;;  %1560 = vmatprep.subr.bf16.mxu1 %v3373_v18 }
 0x4cd   : > { %1520 = vmatpush1.bf16.msra.mxu0 %v3015_v43  ;;  %1561 = vmatpush1.bf16.msra.mxu1 %v3018_v44 }
 0x4ce   : > { %1628 = vmatprep.subr.bf16.mxu0 %v3242_v11  ;;  %1669 = vmatprep.subr.bf16.mxu1 %v3246_v13 }
 0x583   : > { %v1415_v21 = vpop.f32.mrb[32].mxu0  ;;  %v1456_v22 = vpop.f32.mrb[32].mxu1 }
 0x584   : > { %v1416_v23 = vadd.f32 %v1415_v21, %v1377_v19  ;;  %v1417_v25 = vpop.f32.mrb[33].mxu0  ;;  %v1458_v43 = vpop.f32.mrb[33].mxu1  ;;  %v1457_v34 = vadd.f32 %v1456_v22, %v1379_v33 }
 0x585   : > { %v1418_v26 = vadd.f32 %v1417_v25, %v1378_v24  ;;  %v1419_v44 = vpop.f32.mrb[34].mxu0  ;;  %v1460_v27 = vpop.f32.mrb[34].mxu1  ;;  %v1459_v36 = vadd.f32 %v1458_v43, %v1380_v35  ;;  %v3426_v24 = vld [vmem:[%s2861_s9 + $0xe8] ss:$16 sps:$4 sm:$0xff]   ;;  %v1501_v25 = vld [vmem:[%s1500_s13] sm:$0xff] }
 0x586   : > { %v2228_v28 = vmul.f32 -1.442695, %v1416_v23  ;;  %v1420_v30 = vpop.f32.mrb[35].mxu0  ;;  %v1461_v31 = vpop.f32.mrb[35].mxu1  ;;  %v2230_v37 = vmul.f32 -1.442695, %v1457_v34 }
 0x587   : > { %v2229_v32 = vmul.f32 -1.442695, %v1418_v26  ;;  %v1502_v27 = vld [vmem:[%s1500_s13 + $0x8] sm:$0xff] }
 0x588   : > { %2458 = vpow2.f32 %v2228_v28 }
 0x589   : > { %2460 = vpow2.f32 %v2229_v32 }
 0x58a   : > { %2462 = vtanh.f32 %v1459_v36  ;;  %v1503_v36 = vld [vmem:[%s1500_s13 + $0x10] sm:$0xff] }
 0x58b   : > { %2464 = vpow2.f32 %v2230_v37 }
 0x592   : > { %v2459_v39 = vpop.eup %2458 }
 0x593   : > { %v1472_v40 = vadd.f32 1.0, %v2459_v39  ;;  %v2461_v41 = vpop.eup %2460  ;;  %v1504_v39 = vld [vmem:[%s1500_s13 + $0x18] sm:$0xff] }
 0x594   : > { %v1473_v42 = vadd.f32 1.0, %v2461_v41  ;;  %v2463_v8 = vpop.eup %2462 }
 0x595   : > { %2466 = vrcp.f32 %v1472_v40  ;;  %v2465_v46 = vpop.eup %2464 }
 0x596   : > { %2468 = vrcp.f32 %v1473_v42  ;;  %v1474_v51 = vadd.f32 1.0, %v2465_v46 }
 0x598   : > { %2470 = vrcp.f32 %v1474_v51 }
 0x59f   : > { %v2467_v47 = vpop.eup %2466 }
 0x5a0   : > { %v1484_v48 = vmul.f32 %v2467_v47, %v2463_v8  ;;  %v2469_v50 = vpop.eup %2468 }
 0x5a1   : > { %v1483_v10 = vmul.f32 %v2469_v50, %v3257_v49  ;;  %v3422_v49 = vld [vmem:[%s2861_s9 + $0xe0] ss:$16 sps:$4 sm:$0xff]   ;;  %s2238_s9 = sshll.u32 %s3433_s10, 2 }
 0x5a2   : > { %v2471_v12 = vpop.eup %2470  ;;  %s1616_s15 = scalar_lea.vmem %s3113_s14, %s2238_s9 [#allocation9] }
 0x5a3   : > { %v3386_v52 = vadd.f32 %v1484_v48, %v1483_v10 }
 0x5a5   : > { %2472 = vtanh.f32 %v3386_v52 }
 0x5af   : > { %v2473_v19 = vpop.eup %2472 }
 0x5b0   : > { %v1487_v21 = vmul.f32 %v2473_v19, %v2471_v12 }
 0x5b2   : > { %v1488_v22 = vpack.c.bf16 %v1487_v21, %v1487_v21 }
 0x5b4   : > { %1493 = vst [vmem:[%s1492_s29] sm:$0xf] %v1488_v22  ;;  %1490 = vst [vmem:[#allocation2] sm:$0xf] %v1488_v22  ;;  %s1745_s29 = scalar_lea.vmem [#allocation4], %s2265_s11 }
 0x5bb   : > { %v1497_v23 = vld [vmem:[#allocation2] sm:$0xf] }
 0x5bc   : > { %1538 = vmatmul.mubr.bf16.vlgmr.msra.gmra.mrb[36].mxu0 %v1497_v23  ;;  %1579 = vmatmul.mubr.bf16.vlgmr.msra.gmra.mrb[36].mxu1 %v1497_v23 }
 0x5bd   : > { %1629 = vmatpush1.bf16.msra.mxu0 %v3263_v57  ;;  %1670 = vmatpush1.bf16.msra.mxu1 %v3267_v58 }
 0x5be   : > { %1630 = vmatprep.subr.bf16.mxu0 %v3271_v59  ;;  %1671 = vmatprep.subr.bf16.mxu1 %v3275_v60 }
 0x5bf   : > { %1660 = vmatprep.mubr.bf16.mxu0 %v2674_v0  ;;  %1701 = vmatprep.mubr.bf16.mxu1 %v2674_v0 }
 0x5c1   : > { %1631 = vmatpush1.bf16.msra.mxu0 %v3281_v61  ;;  %1672 = vmatpush1.bf16.msra.mxu1 %v3285_v62 }
 0x5c2   : > { %1632 = vmatprep.subr.bf16.mxu0 %v3289_v63  ;;  %1673 = vmatprep.subr.bf16.mxu1 %v3293_v1 }
 0x5c5   : > { %1633 = vmatpush1.bf16.msra.mxu0 %v3297_v2  ;;  %1674 = vmatpush1.bf16.msra.mxu1 %v3301_v4 }
 0x5c6   : > { %1634 = vmatprep.subr.bf16.mxu0 %v3305_v5  ;;  %1675 = vmatprep.subr.bf16.mxu1 %v3309_v6 }
 0x5c9   : > { %1635 = vmatpush1.bf16.msra.mxu0 %v3313_v7  ;;  %1676 = vmatpush1.bf16.msra.mxu1 %v3317_v53 }
 0x5ca   : > { %1636 = vmatprep.subr.bf16.mxu0 %v3321_v54  ;;  %1677 = vmatprep.subr.bf16.mxu1 %v3325_v9 }
 0x5cd   : > { %1637 = vmatpush1.bf16.msra.mxu0 %v3329_v20  ;;  %1678 = vmatpush1.bf16.msra.mxu1 %v3333_v29 }
 0x5ce   : > { %1638 = vmatprep.subr.bf16.mxu0 %v3337_v38  ;;  %1679 = vmatprep.subr.bf16.mxu1 %v3341_v3 }
 0x5d1   : > { %1639 = vmatpush1.bf16.msra.mxu0 %v3345_v55  ;;  %1680 = vmatpush1.bf16.msra.mxu1 %v3349_v45 }
 0x5d2   : > { %1640 = vmatprep.subr.bf16.mxu0 %v3353_v56  ;;  %1681 = vmatprep.subr.bf16.mxu1 %v3357_v14 }
 0x5d5   : > { %1641 = vmatpush1.bf16.msra.mxu0 %v3361_v15  ;;  %1682 = vmatpush1.bf16.msra.mxu1 %v3365_v16 }
 0x5d6   : > { %1642 = vmatprep.subr.bf16.mxu0 %v3369_v17  ;;  %1683 = vmatprep.subr.bf16.mxu1 %v3373_v18 }
 0x5d9   : > { %1643 = vmatpush1.bf16.msra.mxu0 %v3422_v49  ;;  %1684 = vmatpush1.bf16.msra.mxu1 %v3426_v24 }
 0x5da   : > { %1750 = vmatprep.subr.bf16.mxu0 %v3242_v11  ;;  %1791 = vmatprep.subr.bf16.mxu1 %v3246_v13 }
 0x68f   : > { %v1539_v43 = vpop.f32.mrb[36].mxu0  ;;  %v1580_v26 = vpop.f32.mrb[36].mxu1 }
 0x690   : > { %v1540_v44 = vadd.f32 %v1539_v43, %v1501_v25  ;;  %v1541_v28 = vpop.f32.mrb[37].mxu0  ;;  %v1582_v30 = vpop.f32.mrb[37].mxu1  ;;  %v1581_v37 = vadd.f32 %v1580_v26, %v1503_v36 }
 0x691   : > { %v1542_v31 = vadd.f32 %v1541_v28, %v1502_v27  ;;  %v1543_v32 = vpop.f32.mrb[38].mxu0  ;;  %v1584_v33 = vpop.f32.mrb[38].mxu1  ;;  %v1583_v40 = vadd.f32 %v1582_v30, %v1504_v39 }
 0x692   : > { %v2235_v11 = vmul.f32 -1.442695, %v1540_v44  ;;  %v1544_v34 = vpop.f32.mrb[39].mxu0  ;;  %v1585_v13 = vpop.f32.mrb[39].mxu1  ;;  %v2237_v41 = vmul.f32 -1.442695, %v1581_v37 }
 0x693   : > { %v2236_v35 = vmul.f32 -1.442695, %v1542_v31  ;;  %v1746_v32 = vld [vmem:[%s1745_s29] sm:$0xff]  ;;  %v1747_v13 = vld [vmem:[%s1745_s29 + $0x8] sm:$0xff] }
 0x694   : > { %2474 = vpow2.f32 %v2235_v11 }
 0x695   : > { %2476 = vpow2.f32 %v2236_v35 }
 0x696   : > { %2478 = vtanh.f32 %v1583_v40 }
 0x697   : > { %2480 = vpow2.f32 %v2237_v41 }
 0x69e   : > { %v2475_v42 = vpop.eup %2474 }
 0x69f   : > { %v1596_v8 = vadd.f32 1.0, %v2475_v42  ;;  %v2477_v46 = vpop.eup %2476 }
 0x6a0   : > { %v1597_v47 = vadd.f32 1.0, %v2477_v46  ;;  %v2479_v48 = vpop.eup %2478 }
 0x6a1   : > { %2482 = vrcp.f32 %v1596_v8  ;;  %v2481_v50 = vpop.eup %2480 }
 0x6a2   : > { %2484 = vrcp.f32 %v1597_v47  ;;  %v1598_v19 = vadd.f32 1.0, %v2481_v50  ;;  %v1748_v47 = vld [vmem:[%s1745_s29 + $0x10] sm:$0xff]  ;;  %v1749_v50 = vld [vmem:[%s1745_s29 + $0x18] sm:$0xff] }
 0x6a4   : > { %2486 = vrcp.f32 %v1598_v19 }
 0x6ab   : > { %v2483_v51 = vpop.eup %2482 }
 0x6ac   : > { %v1608_v10 = vmul.f32 %v2483_v51, %v2479_v48  ;;  %v2485_v12 = vpop.eup %2484 }
 0x6ad   : > { %v1607_v21 = vmul.f32 %v2485_v12, %v3386_v52 }
 0x6ae   : > { %v2487_v23 = vpop.eup %2486 }
 0x6af   : > { %v3437_v22 = vadd.f32 %v1608_v10, %v1607_v21 }
 0x6b1   : > { %2488 = vtanh.f32 %v3437_v22 }
 0x6bb   : > { %v2489_v25 = vpop.eup %2488 }
 0x6bc   : > { %v1611_v43 = vmul.f32 %v2489_v25, %v2487_v23 }
 0x6be   : > { %v1612_v26 = vpack.c.bf16 %v1611_v43, %v1611_v43 }
 0x6c0   : > { %1617 = vst [vmem:[%s1616_s15] sm:$0xf] %v1612_v26  ;;  %1614 = vst [vmem:[#allocation2] sm:$0xf] %v1612_v26 }
 0x6c7   : > { %v1620_v44 = vld [vmem:[#allocation2] sm:$0xf] }
 0x6c8   : > { %1661 = vmatmul.mubr.bf16.vlgmr.msra.gmra.mrb[40].mxu0 %v1620_v44  ;;  %1702 = vmatmul.mubr.bf16.vlgmr.msra.gmra.mrb[40].mxu1 %v1620_v44 }
 0x6c9   : > { %1751 = vmatpush1.bf16.msra.mxu0 %v3263_v57  ;;  %1792 = vmatpush1.bf16.msra.mxu1 %v3267_v58 }
 0x6ca   : > { %1752 = vmatprep.subr.bf16.mxu0 %v3271_v59  ;;  %1793 = vmatprep.subr.bf16.mxu1 %v3275_v60  ;;  %v1625_v60 = vld [vmem:[%s1623_s12 + $0x8] sm:$0xff] }
 0x6cb   : > { %1782 = vmatprep.mubr.bf16.mxu0 %v2674_v0  ;;  %1823 = vmatprep.mubr.bf16.mxu1 %v2674_v0  ;;  %v1624_v0 = vld [vmem:[%s1623_s12] sm:$0xff] }
 0x6cd   : > { %1753 = vmatpush1.bf16.msra.mxu0 %v3281_v61  ;;  %1794 = vmatpush1.bf16.msra.mxu1 %v3285_v62 }
 0x6ce   : > { %1754 = vmatprep.subr.bf16.mxu0 %v3289_v63  ;;  %1795 = vmatprep.subr.bf16.mxu1 %v3293_v1 }
 0x6d1   : > { %1755 = vmatpush1.bf16.msra.mxu0 %v3297_v2  ;;  %1796 = vmatpush1.bf16.msra.mxu1 %v3301_v4 }
 0x6d2   : > { %1756 = vmatprep.subr.bf16.mxu0 %v3305_v5  ;;  %1797 = vmatprep.subr.bf16.mxu1 %v3309_v6 }
 0x6d5   : > { %1757 = vmatpush1.bf16.msra.mxu0 %v3313_v7  ;;  %1798 = vmatpush1.bf16.msra.mxu1 %v3317_v53  ;;  %v1626_v53 = vld [vmem:[%s1623_s12 + $0x10] sm:$0xff] }
 0x6d6   : > { %1758 = vmatprep.subr.bf16.mxu0 %v3321_v54  ;;  %1799 = vmatprep.subr.bf16.mxu1 %v3325_v9  ;;  %v1627_v9 = vld [vmem:[%s1623_s12 + $0x18] sm:$0xff] }
 0x6d9   : > { %1759 = vmatpush1.bf16.msra.mxu0 %v3329_v20  ;;  %1800 = vmatpush1.bf16.msra.mxu1 %v3333_v29 }
 0x6da   : > { %1760 = vmatprep.subr.bf16.mxu0 %v3337_v38  ;;  %1801 = vmatprep.subr.bf16.mxu1 %v3341_v3 }
 0x6dd   : > { %1761 = vmatpush1.bf16.msra.mxu0 %v3345_v55  ;;  %1802 = vmatpush1.bf16.msra.mxu1 %v3349_v45 }
 0x6de   : > { %1762 = vmatprep.subr.bf16.mxu0 %v3353_v56  ;;  %1803 = vmatprep.subr.bf16.mxu1 %v3357_v14 }
 0x6e1   : > { %1763 = vmatpush1.bf16.msra.mxu0 %v3361_v15  ;;  %1804 = vmatpush1.bf16.msra.mxu1 %v3365_v16 }
 0x6e2   : > { %1764 = vmatprep.subr.bf16.mxu0 %v3369_v17  ;;  %1805 = vmatprep.subr.bf16.mxu1 %v3373_v18 }
 0x6e5   : > { %1765 = vmatpush1.bf16.msra.mxu0 %v3422_v49  ;;  %1806 = vmatpush1.bf16.msra.mxu1 %v3426_v24 }
 0x79b   : > { %v1662_v57 = vpop.f32.mrb[40].mxu0  ;;  %v1703_v58 = vpop.f32.mrb[40].mxu1 }
 0x79c   : > { %v1663_v59 = vadd.f32 %v1662_v57, %v1624_v0  ;;  %v1664_v61 = vpop.f32.mrb[41].mxu0  ;;  %v1705_v62 = vpop.f32.mrb[41].mxu1  ;;  %v1704_v54 = vadd.f32 %v1703_v58, %v1626_v53 }
 0x79d   : > { %v1665_v63 = vadd.f32 %v1664_v61, %v1625_v60  ;;  %v1666_v1 = vpop.f32.mrb[42].mxu0  ;;  %v1707_v2 = vpop.f32.mrb[42].mxu1  ;;  %v1706_v20 = vadd.f32 %v1705_v62, %v1627_v9 }
 0x79e   : > { %v2241_v4 = vmul.f32 -1.442695, %v1663_v59  ;;  %v1667_v5 = vpop.f32.mrb[43].mxu0  ;;  %v1708_v6 = vpop.f32.mrb[43].mxu1  ;;  %v2243_v29 = vmul.f32 -1.442695, %v1704_v54 }
 0x79f   : > { %v2242_v7 = vmul.f32 -1.442695, %v1665_v63 }
 0x7a0   : > { %2490 = vpow2.f32 %v2241_v4 }
 0x7a1   : > { %2492 = vpow2.f32 %v2242_v7 }
 0x7a2   : > { %2494 = vtanh.f32 %v1706_v20 }
 0x7a3   : > { %2496 = vpow2.f32 %v2243_v29 }
 0x7aa   : > { %v2491_v38 = vpop.eup %2490 }
 0x7ab   : > { %v1719_v3 = vadd.f32 1.0, %v2491_v38  ;;  %v2493_v55 = vpop.eup %2492 }
 0x7ac   : > { %v1720_v45 = vadd.f32 1.0, %v2493_v55  ;;  %v2495_v56 = vpop.eup %2494 }
 0x7ad   : > { %2498 = vrcp.f32 %v1719_v3  ;;  %v2497_v14 = vpop.eup %2496 }
 0x7ae   : > { %2500 = vrcp.f32 %v1720_v45  ;;  %v1721_v18 = vadd.f32 1.0, %v2497_v14 }
 0x7b0   : > { %2502 = vrcp.f32 %v1721_v18 }
 0x7b7   : > { %v2499_v15 = vpop.eup %2498 }
 0x7b8   : > { %v1731_v16 = vmul.f32 %v2499_v15, %v2495_v56  ;;  %v2501_v17 = vpop.eup %2500 }
 0x7b9   : > { %v1730_v52 = vmul.f32 %v2501_v17, %v3437_v22 }
 0x7ba   : > { %v2503_v24 = vpop.eup %2502 }
 0x7bb   : > { %v1732_v49 = vadd.f32 %v1731_v16, %v1730_v52 }
 0x7bd   : > { %2504 = vtanh.f32 %v1732_v49 }
 0x7c7   : > { %v2505_v27 = vpop.eup %2504 }
 0x7c8   : > { %v1734_v28 = vmul.f32 %v2505_v27, %v2503_v24 }
 0x7ca   : > { %v1735_v30 = vpack.c.bf16 %v1734_v28, %v1734_v28 }
 0x7cc   : > { %1740 = vst [vmem:[%s1739_s6] sm:$0xf] %v1735_v30  ;;  %1737 = vst [vmem:[#allocation2] sm:$0xf] %v1735_v30 }
 0x7d3   : > { %v1742_v31 = vld [vmem:[#allocation2] sm:$0xf] }
 0x7d4   : > { %1783 = vmatmul.mubr.bf16.vlgmr.msra.gmra.mrb[44].mxu0 %v1742_v31  ;;  %1824 = vmatmul.mubr.bf16.vlgmr.msra.gmra.mrb[44].mxu1 %v1742_v31 }
 0x8a7   : > { %v1784_v33 = vpop.f32.mrb[44].mxu0  ;;  %v1825_v11 = vpop.f32.mrb[44].mxu1 }
 0x8a8   : > { %v1785_v34 = vadd.f32 %v1784_v33, %v1746_v32  ;;  %v1786_v35 = vpop.f32.mrb[45].mxu0  ;;  %v1827_v36 = vpop.f32.mrb[45].mxu1  ;;  %v1826_v48 = vadd.f32 %v1825_v11, %v1748_v47 }
 0x8a9   : > { %v1787_v37 = vadd.f32 %v1786_v35, %v1747_v13  ;;  %v1788_v39 = vpop.f32.mrb[46].mxu0  ;;  %v1829_v40 = vpop.f32.mrb[46].mxu1  ;;  %v1828_v51 = vadd.f32 %v1827_v36, %v1749_v50 }
 0x8aa   : > { %v2247_v41 = vmul.f32 -1.442695, %v1785_v34  ;;  %v1789_v42 = vpop.f32.mrb[47].mxu0  ;;  %v1830_v8 = vpop.f32.mrb[47].mxu1  ;;  %v2249_v10 = vmul.f32 -1.442695, %v1826_v48 }
 0x8ab   : > { %v2248_v46 = vmul.f32 -1.442695, %v1787_v37 }
 0x8ac   : > { %2506 = vpow2.f32 %v2247_v41 }
 0x8ad   : > { %2508 = vpow2.f32 %v2248_v46 }
 0x8ae   : > { %2510 = vtanh.f32 %v1828_v51 }
 0x8af   : > { %2512 = vpow2.f32 %v2249_v10 }
 0x8b6   : > { %v2507_v12 = vpop.eup %2506 }
 0x8b7   : > { %v1841_v19 = vadd.f32 1.0, %v2507_v12  ;;  %v2509_v21 = vpop.eup %2508 }
 0x8b8   : > { %v1842_v22 = vadd.f32 1.0, %v2509_v21  ;;  %v2511_v23 = vpop.eup %2510 }
 0x8b9   : > { %2514 = vrcp.f32 %v1841_v19  ;;  %v2513_v25 = vpop.eup %2512 }
 0x8ba   : > { %2516 = vrcp.f32 %v1842_v22  ;;  %v1843_v0 = vadd.f32 1.0, %v2513_v25 }
 0x8bc   : > { %2518 = vrcp.f32 %v1843_v0 }
 0x8c3   : > { %v2515_v43 = vpop.eup %2514 }
 0x8c4   : > { %v1853_v26 = vmul.f32 %v2515_v43, %v2511_v23  ;;  %v2517_v44 = vpop.eup %2516 }
 0x8c5   : > { %v1852_v57 = vmul.f32 %v2517_v44, %v1732_v49 }
 0x8c6   : > { %v2519_v59 = vpop.eup %2518 }
 0x8c7   : > { %v1854_v58 = vadd.f32 %v1853_v26, %v1852_v57 }
 0x8c9   : > { %2520 = vtanh.f32 %v1854_v58 }
 0x8d2   : > { %1869 = sbr.rel (!%p3530_p13) target bundleno = 2277 (0x8e5), region = 52 }
 0x8d3   : > { %v2521_v60 = vpop.eup %2520 }
 0x8d4   : > { %v1856_v61 = vmul.f32 %v2521_v60, %v2519_v59 }
 0x8d6   : > { %v1857_v62 = vpack.c.bf16 %v1856_v61, %v1856_v61 }
 0x8d8   : > { %1859 = vst [vmem:[#allocation2] sm:$0xf] %v1857_v62  ;;  %1862 = vst [vmem:[%s1861_s26] sm:$0xf] %v1857_v62 }
 0x8df   : > { %v1895_v63 = vld [vmem:[%s3113_s14] sm:$0xf]  ;;  %v1897_v1 = vld [vmem:[%s3113_s14 + $0x4] sm:$0xf]  ;;  %v1899_v2 = vld [vmem:[%s3113_s14 + $0x8] sm:$0xf] }
 0x8e0   : > { %1896 = vst [vmem:[%s1879_s30] sm:$0xf] %v1895_v63  ;;  %1898 = vst [vmem:[%s1879_s30 + $0x8] sm:$0xf] %v1897_v1  ;;  %v1901_v4 = vld [vmem:[%s3113_s14 + $0xc] sm:$0xf] }
 0x8e1   : > { %1900 = vst [vmem:[%s1879_s30 + $0x10] sm:$0xf] %v1899_v2  ;;  %v1903_v5 = vld [vmem:[%s3113_s14 + $0x10] sm:$0xf]  ;;  %v1905_v6 = vld [vmem:[%s3113_s14 + $0x14] sm:$0xf] }
 0x8e2   : > { %1902 = vst [vmem:[%s1879_s30 + $0x18] sm:$0xf] %v1901_v4  ;;  %1904 = vst [vmem:[%s1879_s30 + $0x20] sm:$0xf] %v1903_v5  ;;  %v1907_v7 = vld [vmem:[%s3113_s14 + $0x18] sm:$0xf] }
 0x8e3   : > { %1906 = vst [vmem:[%s1879_s30 + $0x28] sm:$0xf] %v1905_v6  ;;  %v1909_v53 = vld [vmem:[%s3113_s14 + $0x1c] sm:$0xf]  ;;  %1908 = vst [vmem:[%s1879_s30 + $0x30] sm:$0xf] %v1907_v7 }
 0x8e4   : > { %1910 = vst [vmem:[%s1879_s30 + $0x38] sm:$0xf] %v1909_v53 }
 0x8e5 PF: > { %s20_s20 = sadd.s32 1, %s2668_s20   ;;  %s3531_s15 = smov %s2652_s16 }
 0x8e6   : > { %p17_p5 = scmp.ge.s32.totalorder %s20_s20, 4   ;;  %s3532_s16 = smov %s2656_s17 }
 0x8e7   : > { %s3533_s17 = smov %s2748_s27  ;;  %s3534_s18 = smov %s2664_s19 }
 0x8e8   : > { %s3535_s19 = smov %s3537_s22  ;;  %19 = sbr.rel (!%p17_p5) target bundleno = 6 (0x6), region = 156 }
 0x8ef   :  { %1959 = vsyncpa [#allocation6], 1 }
 0x8f0   :  { %1961 = vsyncpa [#allocation6 + $0x1], 1 }
 0x8f1   :  { %1962 = vsyncpa [#allocation8], 1 }
 0x8f2   :  { %1964 = vsyncpa [#allocation8 + $0x1], 1 }

// kernel: forward.4
= control target key start
LH: loop header
LB: loop body
LE: loop exit
PB: predicated region body
PF: predicated region fallthrough
CT: control target
= control target key end

     0   :  { %9 = vsyncpa [#allocation6], 0  ;;  %s3948_s0 = inlined_call_operand.vmem [shape: bf16[8,8,256], index: 0, kind: input, shape index: {}]   ;;  %s3949_s1 = inlined_call_operand.vmem [shape: bf16[2,256,512], index: 1, kind: input, shape index: {}]   ;;  %s3950_s2 = inlined_call_operand.hbm [shape: bf16[2,128,512], index: 2, kind: input, shape index: {}]   ;;  %s3951_s3 = inlined_call_operand.vmem [shape: f32[2,1,512], index: 3, kind: input, shape index: {}]   ;;  %s3952_s4 = inlined_call_operand.vmem [shape: bf16[8,8,256], index: 4, kind: output, shape index: {}]  }
   0x1   :  { %11 = vsyncpa [#allocation6 + $0x1], 0  ;;  %s3117_s15 = smov 0   ;;  %s3119_s16 = smov 0  }
   0x2   :  { %s3121_s17 = smov 0   ;;  %s3123_s18 = smov 0  }
   0x3   :  { %s3125_s19 = smov 0   ;;  %s3127_s20 = smov 0  }
   0x4 LB: > { %s2446_s21 = sadd.s32 4294967295, %s3086_s20   ;;  %s29_s22 = sadd.s32 1, %s3082_s19  ;;  %s3086_s20 = sphi %s3127_s20, %s17_s20   ;;  %s3082_s19 = sphi %s3125_s19, %s3962_s19   ;;  %s3078_s18 = sphi %s3123_s18, %s3961_s18   ;;  %s3074_s17 = sphi %s3121_s17, %s3960_s17   ;;  %s3070_s16 = sphi %s3119_s16, %s3959_s16   ;;  %s3066_s15 = sphi %s3117_s15, %s3958_s15  }
   0x5   : > { %p31_p0 = scmp.ge.s32.totalorder %s29_s22, 2  ;;  %s98_s23 = sadd.s32 1, %s3074_s17 }
   0x6   : > { %p105_p1 = scmp.ne.s32.totalorder %s3074_s17, %s3070_s16  ;;  %p106_p2 = scmp.eq.s32.totalorder %s3086_s20, 0 }
   0x7   : > { %s3964_s22 = smov (%p31_p0, %s29_s22), 0  ;;  %p111_p4 = scmp.ne.s32.totalorder %s3070_s16, %s3066_s15 }
   0x8   : > { %p3153_p3 = por %p106_p2, %p105_p1  ;;  %s95_s25 = ssub.s32 %s3082_s19, %s3964_s22 }
   0x9   : > { %p112_p5 = scmp.eq.s32.totalorder %s2446_s21, 0  ;;  %p96_p6 = scmp.eq.s32.totalorder %s95_s25, 0 }
   0xa   : > { %p173_p7 = scmp.eq.s32.totalorder %s2446_s21, 1  ;;  %p2638_p10 = scmp.lt.s32.totalorder %s3086_s20, 2 }
   0xb   : > { %p3160_p8 = por %p112_p5, %p111_p4  ;;  %s227_s29 = sand.u32 1, %s3074_s17  }
   0xc   : > { %s3165_s27 = scalar_select %p96_p6, %s3074_s17, %s98_s23  }
   0xd   : > { %p3167_p9 = por %p173_p7, %p105_p1  ;;  %s2620_s30 = sshll.u32 %s3082_s19, 12 }
   0xe   : > { %s2451_s5 = sshll.u32 %s227_s29, 8  ;;  %s3177_s8 = scalar_lea.hbm %s3950_s2, %s2620_s30 }
   0xf   : > { %s3955_s28 = scalar_select %p3167_p9, 1, 0 }
  0x10   : > { %s231_s9 = scalar_lea.vmem [#allocation5], %s2451_s5  ;;  %p3181_p11 = pnand %p2638_p10, %p3153_p3 }
  0x11   : > { %s238_s10 = sshll.u32 %s231_s9, 4  ;;  %s3187_s12 = scalar_lea.sflag [#allocation6], %s227_s29  ;;  %s3185_s10 = int_to_ptr.vmem [resolvable:$true] %s238_s10 }
  0x12   : > { %s3006_s13 = scalar_lea.hbm %s3177_s8, 4096  ;;  %p3008_p13 = pneg %p3181_p11 }
  0x13   : > { %p3007_p12 = scmp.ne.s32.totalorder %s3177_s8, %s3006_s13  ;;  %s3011_s21 = scalar_lea.hbm %s3950_s2, 8192 }
  0x14   : > { %p3012_p2 = scmp.lt.u32.totalorder %s3177_s8, %s3950_s2  ;;  %p3013_p3 = scmp.lt.u32.totalorder %s3011_s21, %s3006_s13 }
  0x15   : > { %p3009_p0 = pnand %p3008_p13, %p3007_p12  ;;  %p3015_p5 = scmp.lt.u32.totalorder %s3006_s13, %s3177_s8 }
  0x16   : > { %p3014_p4 = por %p3013_p3, %p3012_p2 }
  0x17   : > { %p3010_p1 = pneg %p3009_p0 }
  0x18   : > { %p3016_p6 = por %p3015_p5, %p3014_p4 }
  0x1a   : > { %p3017_p7 = pnand %p3016_p6, %p3010_p1 }
  0x1c   : > { %3020 = shalt.err (!%p3017_p7)
}
  0x1d   : > { %s3021_s25 = scalar_lea.vmem %s3185_s10, 4096  ;;  %s3088_s29 = smov [#allocation5]  }
  0x1e   : > { %p3022_p10 = scmp.ne.s32.totalorder %s3185_s10, %s3021_s25  ;;  %s3026_s30 = sshll.u32 %s3088_s29, 4  ;;  %s3027_s30 = int_to_ptr.vmem [resolvable:$false] %s3026_s30 }
  0x1f   : > { %s3028_s5 = scalar_lea.vmem %s3027_s30, 8192  ;;  %p3029_p9 = scmp.lt.s32.totalorder %s3185_s10, %s3027_s30 }
  0x20   : > { %p3024_p12 = pnand %p3022_p10, %p3008_p13  ;;  %p3030_p2 = scmp.lt.s32.totalorder %s3028_s5, %s3021_s25 }
  0x22   : > { %p3025_p0 = pneg %p3024_p12  ;;  %p3031_p3 = por %p3030_p2, %p3029_p9 }
  0x24   : > { %p3032_p4 = pnand %p3031_p3, %p3025_p0 }
  0x26   : > { %3035 = shalt.err (!%p3032_p4)
}
  0x27   : > { %s3089_s6 = smov 256   ;;  %s3090_s7 = smov 16  }
  0x28   : > { %2637 = dma.hbm_to_vmem [thread:$0]  (!%p3181_p11), %s3177_s8, 4096, %s3185_s10, %s3187_s12, %s3089_s6, %s3089_s6, %s3090_s7  }
  0x29   : > { %p2454_p13 = scmp.ge.s32.totalorder %s3086_s20, 1  ;;  %p253_p1 = scmp.lt.s32.totalorder %s3086_s20, 3 }
  0x2b   : > { %p254_p5 = pnand %p2454_p13, %p253_p1 }
  0x2c   : > { %s3218_s9 = sand.u32 (!%p254_p5), 1, %s3070_s16  }
  0x2d   : > { %257 = sbr.rel (%p254_p5) target bundleno = 2310 (0x906), region = 36  ;;  %s2455_s13 = sshll.u32 (!%p254_p5), %s3218_s9, 8 }
  0x2e   : > { %s260_s14 = scalar_lea.sflag (!%p254_p5), [#allocation6], %s3218_s9  ;;  %s3222_s15 = scalar_lea.vmem (!%p254_p5), [#allocation5], %s2455_s13 }
  0x34   : > { %3061 = dma.done.wait (%p3160_p8), %s260_s14, 4096  }
  0x35   : > { %3063 = vsyncadd (%p3160_p8), %s260_s14, 4294963200  ;;  %p324_p9 = scmp.lt.s32.totalorder %s3078_s18, 1  ;;  %v3091_v0 = vmov 0   ;;  %v2788_v49 = vld [vmem:[%s3948_s0 + $0x4] ss:$8 sps:$4 sm:$0xff]   ;;  %s2456_s5 = sshll.u32 %s3218_s9, 5 }
  0x36   : > { %344 = vst [vmem:[#allocation2] sm:$0xf] %v3091_v0  ;;  %810 = vmatprep.mubr.bf16.mxu0 %v2788_v49  ;;  %883 = vmatprep.mubr.bf16.mxu1 %v2788_v49  ;;  %s2623_s6 = smul.u32 28, %s3078_s18  ;;  %s3543_s7 = scalar_lea.vmem [#allocation7], %s2456_s5 }
  0x37   : > { %s3231_s8 = scalar_select %p324_p9, %s3078_s18, 1 }
  0x38   : > { %s1322_s13 = scalar_lea.vmem %s3543_s7, %s2623_s6 [#allocation7]  ;;  %s1324_s9 = smul.u32 6, %s3078_s18 }
  0x39   : > { %s2621_s10 = sshll.u32 %s3231_s8, 9  ;;  %s2459_s23 = sshll.u32 %s3231_s8, 2 }
  0x3a   : > { %s3237_s21 = scalar_lea.vmem %s3949_s1, %s2621_s10  ;;  %s332_s29 = scalar_lea.vmem %s3951_s3, %s2459_s23 }
  0x3b   : > { %v2690_v1 = vld [vmem:[%s3237_s21 + $0x4] ss:$16 sps:$4 sm:$0xff]   ;;  %v2692_v2 = vld [vmem:[%s3237_s21 + $0xc] ss:$16 sps:$4 sm:$0xff]   ;;  %v2694_v3 = vld [vmem:[%s3237_s21] ss:$16 sps:$4 sm:$0xff]  }
  0x3c   : > { %778 = vmatprep.subr.bf16.mxu0 %v2690_v1  ;;  %v2695_v4 = vld [vmem:[%s3237_s21 + $0x8] ss:$16 sps:$4 sm:$0xff]   ;;  %851 = vmatprep.subr.bf16.mxu1 %v2692_v2  ;;  %v2696_v5 = vld [vmem:[%s3237_s21 + $0x24] ss:$16 sps:$4 sm:$0xff]   ;;  %v2698_v6 = vld [vmem:[%s3237_s21 + $0x2c] ss:$16 sps:$4 sm:$0xff]  }
  0x3d   : > { %779 = vmatpush1.bf16.msra.mxu0 %v2694_v3  ;;  %852 = vmatpush1.bf16.msra.mxu1 %v2695_v4  ;;  %v2700_v7 = vld [vmem:[%s3237_s21 + $0x20] ss:$16 sps:$4 sm:$0xff]   ;;  %v2701_v8 = vld [vmem:[%s3237_s21 + $0x28] ss:$16 sps:$4 sm:$0xff]   ;;  %v2702_v9 = vld [vmem:[%s3237_s21 + $0x44] ss:$16 sps:$4 sm:$0xff]  }
  0x3e   : > { %780 = vmatprep.subr.bf16.mxu0 %v2696_v5  ;;  %853 = vmatprep.subr.bf16.mxu1 %v2698_v6  ;;  %v2704_v10 = vld [vmem:[%s3237_s21 + $0x4c] ss:$16 sps:$4 sm:$0xff]   ;;  %v2706_v11 = vld [vmem:[%s3237_s21 + $0x40] ss:$16 sps:$4 sm:$0xff]   ;;  %v2707_v12 = vld [vmem:[%s3237_s21 + $0x48] ss:$16 sps:$4 sm:$0xff]  }
  0x3f   : > { %v2708_v13 = vld [vmem:[%s3237_s21 + $0x64] ss:$16 sps:$4 sm:$0xff]   ;;  %v2710_v14 = vld [vmem:[%s3237_s21 + $0x6c] ss:$16 sps:$4 sm:$0xff]   ;;  %v2712_v15 = vld [vmem:[%s3237_s21 + $0x60] ss:$16 sps:$4 sm:$0xff]  }
  0x40   : > { %v2713_v16 = vld [vmem:[%s3237_s21 + $0x68] ss:$16 sps:$4 sm:$0xff]   ;;  %v2714_v17 = vld [vmem:[%s3237_s21 + $0x84] ss:$16 sps:$4 sm:$0xff]   ;;  %v2716_v18 = vld [vmem:[%s3237_s21 + $0x8c] ss:$16 sps:$4 sm:$0xff]  }
  0x41   : > { %781 = vmatpush1.bf16.msra.mxu0 %v2700_v7  ;;  %854 = vmatpush1.bf16.msra.mxu1 %v2701_v8  ;;  %v2718_v19 = vld [vmem:[%s3237_s21 + $0x80] ss:$16 sps:$4 sm:$0xff]   ;;  %v2719_v20 = vld [vmem:[%s3237_s21 + $0x88] ss:$16 sps:$4 sm:$0xff]   ;;  %v2720_v21 = vld [vmem:[%s3237_s21 + $0xa4] ss:$16 sps:$4 sm:$0xff]  }
  0x42   : > { %782 = vmatprep.subr.bf16.mxu0 %v2702_v9  ;;  %855 = vmatprep.subr.bf16.mxu1 %v2704_v10  ;;  %v2722_v22 = vld [vmem:[%s3237_s21 + $0xac] ss:$16 sps:$4 sm:$0xff]   ;;  %v2724_v23 = vld [vmem:[%s3237_s21 + $0xa0] ss:$16 sps:$4 sm:$0xff]   ;;  %v2725_v24 = vld [vmem:[%s3237_s21 + $0xa8] ss:$16 sps:$4 sm:$0xff]  }
  0x43   : > { %v2726_v25 = vld [vmem:[%s3237_s21 + $0xc4] ss:$16 sps:$4 sm:$0xff]   ;;  %v2728_v26 = vld [vmem:[%s3237_s21 + $0xcc] ss:$16 sps:$4 sm:$0xff]   ;;  %v2730_v27 = vld [vmem:[%s3237_s21 + $0xc0] ss:$16 sps:$4 sm:$0xff]  }
  0x44   : > { %v2731_v28 = vld [vmem:[%s3237_s21 + $0xc8] ss:$16 sps:$4 sm:$0xff]   ;;  %v2732_v29 = vld [vmem:[%s3237_s21 + $0xe4] ss:$16 sps:$4 sm:$0xff]   ;;  %v2734_v30 = vld [vmem:[%s3237_s21 + $0xec] ss:$16 sps:$4 sm:$0xff]  }
  0x45   : > { %783 = vmatpush1.bf16.msra.mxu0 %v2706_v11  ;;  %856 = vmatpush1.bf16.msra.mxu1 %v2707_v12  ;;  %v2736_v31 = vld [vmem:[%s3237_s21 + $0xe0] ss:$16 sps:$4 sm:$0xff]   ;;  %v2737_v32 = vld [vmem:[%s3237_s21 + $0xe8] ss:$16 sps:$4 sm:$0xff]   ;;  %v2738_v33 = vld [vmem:[%s3237_s21 + $0x104] ss:$16 sps:$4 sm:$0xff]  }
  0x46   : > { %784 = vmatprep.subr.bf16.mxu0 %v2708_v13  ;;  %857 = vmatprep.subr.bf16.mxu1 %v2710_v14  ;;  %v2740_v34 = vld [vmem:[%s3237_s21 + $0x10c] ss:$16 sps:$4 sm:$0xff]   ;;  %v2742_v35 = vld [vmem:[%s3237_s21 + $0x100] ss:$16 sps:$4 sm:$0xff]   ;;  %v2743_v36 = vld [vmem:[%s3237_s21 + $0x108] ss:$16 sps:$4 sm:$0xff]  }
  0x47   : > { %v2744_v37 = vld [vmem:[%s3237_s21 + $0x124] ss:$16 sps:$4 sm:$0xff]   ;;  %v2746_v38 = vld [vmem:[%s3237_s21 + $0x12c] ss:$16 sps:$4 sm:$0xff]   ;;  %v2748_v39 = vld [vmem:[%s3237_s21 + $0x120] ss:$16 sps:$4 sm:$0xff]  }
  0x48   : > { %v2749_v40 = vld [vmem:[%s3237_s21 + $0x128] ss:$16 sps:$4 sm:$0xff]   ;;  %v2750_v41 = vld [vmem:[%s3237_s21 + $0x144] ss:$16 sps:$4 sm:$0xff]   ;;  %v2752_v42 = vld [vmem:[%s3237_s21 + $0x14c] ss:$16 sps:$4 sm:$0xff]  }
  0x49   : > { %785 = vmatpush1.bf16.msra.mxu0 %v2712_v15  ;;  %858 = vmatpush1.bf16.msra.mxu1 %v2713_v16  ;;  %v2754_v43 = vld [vmem:[%s3237_s21 + $0x140] ss:$16 sps:$4 sm:$0xff]   ;;  %v2755_v44 = vld [vmem:[%s3237_s21 + $0x148] ss:$16 sps:$4 sm:$0xff]   ;;  %v2756_v45 = vld [vmem:[%s3237_s21 + $0x164] ss:$16 sps:$4 sm:$0xff]  }
  0x4a   : > { %786 = vmatprep.subr.bf16.mxu0 %v2714_v17  ;;  %859 = vmatprep.subr.bf16.mxu1 %v2716_v18  ;;  %v2758_v46 = vld [vmem:[%s3237_s21 + $0x16c] ss:$16 sps:$4 sm:$0xff]   ;;  %v2760_v47 = vld [vmem:[%s3237_s21 + $0x160] ss:$16 sps:$4 sm:$0xff]   ;;  %v2761_v48 = vld [vmem:[%s3237_s21 + $0x168] ss:$16 sps:$4 sm:$0xff]  }
  0x4b   : > { %v2762_v50 = vld [vmem:[%s3237_s21 + $0x184] ss:$16 sps:$4 sm:$0xff]   ;;  %v2764_v51 = vld [vmem:[%s3237_s21 + $0x18c] ss:$16 sps:$4 sm:$0xff]   ;;  %v2766_v52 = vld [vmem:[%s3237_s21 + $0x180] ss:$16 sps:$4 sm:$0xff]  }
  0x4c   : > { %v2767_v53 = vld [vmem:[%s3237_s21 + $0x188] ss:$16 sps:$4 sm:$0xff]   ;;  %v2768_v54 = vld [vmem:[%s3237_s21 + $0x1a4] ss:$16 sps:$4 sm:$0xff]   ;;  %v2770_v55 = vld [vmem:[%s3237_s21 + $0x1ac] ss:$16 sps:$4 sm:$0xff]  }
  0x4d   : > { %787 = vmatpush1.bf16.msra.mxu0 %v2718_v19  ;;  %860 = vmatpush1.bf16.msra.mxu1 %v2719_v20  ;;  %v2772_v56 = vld [vmem:[%s3237_s21 + $0x1a0] ss:$16 sps:$4 sm:$0xff]   ;;  %v2773_v57 = vld [vmem:[%s3237_s21 + $0x1a8] ss:$16 sps:$4 sm:$0xff]   ;;  %v2774_v58 = vld [vmem:[%s3237_s21 + $0x1c4] ss:$16 sps:$4 sm:$0xff]  }
  0x4e   : > { %788 = vmatprep.subr.bf16.mxu0 %v2720_v21  ;;  %861 = vmatprep.subr.bf16.mxu1 %v2722_v22  ;;  %v2776_v59 = vld [vmem:[%s3237_s21 + $0x1cc] ss:$16 sps:$4 sm:$0xff]   ;;  %v2778_v60 = vld [vmem:[%s3237_s21 + $0x1c0] ss:$16 sps:$4 sm:$0xff]   ;;  %v2779_v61 = vld [vmem:[%s3237_s21 + $0x1c8] ss:$16 sps:$4 sm:$0xff]  }
  0x4f   : > { %v2780_v62 = vld [vmem:[%s3237_s21 + $0x1e4] ss:$16 sps:$4 sm:$0xff]   ;;  %v2782_v63 = vld [vmem:[%s3237_s21 + $0x1ec] ss:$16 sps:$4 sm:$0xff]   ;;  %v2784_v1 = vld [vmem:[%s3237_s21 + $0x1e0] ss:$16 sps:$4 sm:$0xff]  }
  0x50   : > { %v2785_v2 = vld [vmem:[%s3237_s21 + $0x1e8] ss:$16 sps:$4 sm:$0xff]   ;;  %v3310_v4 = vld [vmem:[%s3222_s15 + $0xc] ss:$16 sps:$4 sm:$0xff]   ;;  %v3316_v6 = vld [vmem:[%s3222_s15] ss:$16 sps:$4 sm:$0xff]  }
  0x51   : > { %789 = vmatpush1.bf16.msra.mxu0 %v2724_v23  ;;  %862 = vmatpush1.bf16.msra.mxu1 %v2725_v24  ;;  %v3307_v3 = vld [vmem:[%s3222_s15 + $0x4] ss:$16 sps:$4 sm:$0xff]   ;;  %v3322_v8 = vld [vmem:[%s3222_s15 + $0x8] ss:$16 sps:$4 sm:$0xff]   ;;  %v3330_v10 = vld [vmem:[%s3222_s15 + $0x2c] ss:$16 sps:$4 sm:$0xff]  }
  0x52   : > { %790 = vmatprep.subr.bf16.mxu0 %v2726_v25  ;;  %863 = vmatprep.subr.bf16.mxu1 %v2728_v26  ;;  %v2786_v5 = vld [vmem:[%s3948_s0] ss:$8 sps:$4 sm:$0xff]   ;;  %v2798_v9 = vld [vmem:[%s3948_s0 + $0x14] ss:$8 sps:$4 sm:$0xff]   ;;  %v2800_v15 = vld [vmem:[%s3948_s0 + $0x10] ss:$8 sps:$4 sm:$0xff]  }
  0x53   : > { %v3319_v7 = vld [vmem:[%s3222_s15 + $0x24] ss:$16 sps:$4 sm:$0xff]   ;;  %v3333_v11 = vld [vmem:[%s3222_s15 + $0x20] ss:$16 sps:$4 sm:$0xff]   ;;  %v3338_v12 = vld [vmem:[%s3222_s15 + $0x28] ss:$16 sps:$4 sm:$0xff]  }
  0x54   : > { %v3342_v13 = vld [vmem:[%s3222_s15 + $0x44] ss:$16 sps:$4 sm:$0xff]   ;;  %v3345_v14 = vld [vmem:[%s3222_s15 + $0x4c] ss:$16 sps:$4 sm:$0xff]   ;;  %v3354_v16 = vld [vmem:[%s3222_s15 + $0x40] ss:$16 sps:$4 sm:$0xff]  }
  0x55   : > { %791 = vmatpush1.bf16.msra.mxu0 %v2730_v27  ;;  %864 = vmatpush1.bf16.msra.mxu1 %v2731_v28  ;;  %v3357_v17 = vld [vmem:[%s3222_s15 + $0x48] ss:$16 sps:$4 sm:$0xff]   ;;  %v3362_v18 = vld [vmem:[%s3222_s15 + $0x64] ss:$16 sps:$4 sm:$0xff]   ;;  %v3368_v20 = vld [vmem:[%s3222_s15 + $0x6c] ss:$16 sps:$4 sm:$0xff]  }
  0x56   : > { %792 = vmatprep.subr.bf16.mxu0 %v2732_v29  ;;  %865 = vmatprep.subr.bf16.mxu1 %v2734_v30  ;;  %v2813_v19 = vld [vmem:[%s3948_s0 + $0x24] ss:$8 sps:$4 sm:$0xff]   ;;  %v3380_v23 = vld [vmem:[%s3222_s15 + $0x84] ss:$16 sps:$4 sm:$0xff]   ;;  %v3383_v24 = vld [vmem:[%s3222_s15 + $0x8c] ss:$16 sps:$4 sm:$0xff]  }
  0x57   : > { %v3373_v21 = vld [vmem:[%s3222_s15 + $0x60] ss:$16 sps:$4 sm:$0xff]   ;;  %v3376_v22 = vld [vmem:[%s3222_s15 + $0x68] ss:$16 sps:$4 sm:$0xff]   ;;  %v2815_v25 = vld [vmem:[%s3948_s0 + $0x20] ss:$8 sps:$4 sm:$0xff]  }
  0x58   : > { %v3392_v26 = vld [vmem:[%s3222_s15 + $0x80] ss:$16 sps:$4 sm:$0xff]   ;;  %v3395_v27 = vld [vmem:[%s3222_s15 + $0x88] ss:$16 sps:$4 sm:$0xff]   ;;  %v3400_v28 = vld [vmem:[%s3222_s15 + $0xa4] ss:$16 sps:$4 sm:$0xff]  }
  0x59   : > { %793 = vmatpush1.bf16.msra.mxu0 %v2736_v31  ;;  %866 = vmatpush1.bf16.msra.mxu1 %v2737_v32  ;;  %v2828_v29 = vld [vmem:[%s3948_s0 + $0x34] ss:$8 sps:$4 sm:$0xff]   ;;  %v3406_v30 = vld [vmem:[%s3222_s15 + $0xac] ss:$16 sps:$4 sm:$0xff]   ;;  %s2622_s8 = smul.u32 224, %s3078_s18  ;;  %s3582_s14 = ssub.s32 1, %s3078_s18 }
  0x5a   : > { %794 = vmatprep.subr.bf16.mxu0 %v2738_v33  ;;  %867 = vmatprep.subr.bf16.mxu1 %v2740_v34  ;;  %v3411_v31 = vld [vmem:[%s3222_s15 + $0xa0] ss:$16 sps:$4 sm:$0xff]   ;;  %v3414_v32 = vld [vmem:[%s3222_s15 + $0xa8] ss:$16 sps:$4 sm:$0xff]   ;;  %v3418_v33 = vld [vmem:[%s3222_s15 + $0xc4] ss:$16 sps:$4 sm:$0xff]   ;;  %s3585_s10 = sadd.s32 %s3582_s14, %s1324_s9 }
  0x5b   : > { %v3421_v34 = vld [vmem:[%s3222_s15 + $0xcc] ss:$16 sps:$4 sm:$0xff]   ;;  %s1046_s30 = scalar_lea.vmem [#allocation4], %s2622_s8  ;;  %s2624_s11 = sshll.u32 %s3585_s10, 5 }
  0x5c   : > { %s1330_s12 = scalar_lea.vmem [#allocation4], %s2624_s11  ;;  %s2575_s21 = sshll.u32 %s3585_s10, 2 }
  0x5d   : > { %795 = vmatpush1.bf16.msra.mxu0 %v2742_v35  ;;  %868 = vmatpush1.bf16.msra.mxu1 %v2743_v36  ;;  %v2830_v35 = vld [vmem:[%s3948_s0 + $0x30] ss:$8 sps:$4 sm:$0xff]   ;;  %v3430_v36 = vld [vmem:[%s3222_s15 + $0xc0] ss:$16 sps:$4 sm:$0xff]   ;;  %s1446_s26 = scalar_lea.vmem %s3543_s7, %s2575_s21 [#allocation7]  ;;  %s1448_s23 = smul.u32 5, %s3078_s18 }
  0x5e   : > { %796 = vmatprep.subr.bf16.mxu0 %v2744_v37  ;;  %869 = vmatprep.subr.bf16.mxu1 %v2746_v38  ;;  %v3433_v37 = vld [vmem:[%s3222_s15 + $0xc8] ss:$16 sps:$4 sm:$0xff]   ;;  %v3438_v38 = vld [vmem:[%s3222_s15 + $0xe4] ss:$16 sps:$4 sm:$0xff]   ;;  %s2576_s24 = sshll.u32 %s3582_s14, 1  ;;  %s1573_s6 = smul.u32 3, %s3582_s14 }
  0x5f   : > { %s3630_s25 = sadd.s32 %s2576_s24, %s1448_s23  ;;  %s2590_s23 = sshll.u32 %s3582_s14, 2 }
  0x60   : > { %p3957_p8 = scmp.ne.s32.totalorder %s3955_s28, 0 }
  0x61   : > { %797 = vmatpush1.bf16.msra.mxu0 %v2748_v39  ;;  %870 = vmatpush1.bf16.msra.mxu1 %v2749_v40  ;;  %v3441_v39 = vld [vmem:[%s3222_s15 + $0xec] ss:$16 sps:$4 sm:$0xff]   ;;  %v3446_v40 = vld [vmem:[%s3222_s15 + $0xe0] ss:$16 sps:$4 sm:$0xff]  }
  0x62   : > { %798 = vmatprep.subr.bf16.mxu0 %v2750_v41  ;;  %871 = vmatprep.subr.bf16.mxu1 %v2752_v42  ;;  %v3449_v41 = vld [vmem:[%s3222_s15 + $0xe8] ss:$16 sps:$4 sm:$0xff]   ;;  %v1043_v42 = vld [vmem:[#allocation2] sm:$0xf] }
  0x65   : > { %799 = vmatpush1.bf16.msra.mxu0 %v2754_v43  ;;  %872 = vmatpush1.bf16.msra.mxu1 %v2755_v44  ;;  %v926_v43 = vlaneseq }
  0x66   : > { %800 = vmatprep.subr.bf16.mxu0 %v2756_v45  ;;  %873 = vmatprep.subr.bf16.mxu1 %v2758_v46 }
  0x67   : > { %v927_v44 = vshrl.u32 %v926_v43, 7 }
  0x69   : > { %801 = vmatpush1.bf16.msra.mxu0 %v2760_v47  ;;  %874 = vmatpush1.bf16.msra.mxu1 %v2761_v48  ;;  %v928_v45 = vsub.s32 0, %v927_v44  ;;  %v936_v46 = vsub.s32 2, %v927_v44  ;;  %v924_v47 = vld [vmem:[%s332_s29] sm:$0xf]  ;;  %v932_v48 = vsub.s32 1, %v927_v44  ;;  %v940_v49 = vsub.s32 3, %v927_v44 }
  0x6a   : > { %802 = vmatprep.subr.bf16.mxu0 %v2762_v50  ;;  %875 = vmatprep.subr.bf16.mxu1 %v2764_v51  ;;  %s2625_s29 = sshll.u32 %s3630_s25, 5 }
  0x6b   : > { %v3497_v50 = vrot.slane %v924_v47, %v928_v45  ;;  %v3499_v51 = vrot.slane %v924_v47, %v936_v46  ;;  %s1454_s8 = scalar_lea.vmem [#allocation4], %s2625_s29 }
  0x6d   : > { %803 = vmatpush1.bf16.msra.mxu0 %v2766_v52  ;;  %876 = vmatpush1.bf16.msra.mxu1 %v2767_v53  ;;  %v3501_v52 = vrot.slane %v924_v47, %v932_v48  ;;  %v3503_v53 = vrot.slane %v924_v47, %v940_v49 }
  0x6e   : > { %804 = vmatprep.subr.bf16.mxu0 %v2768_v54  ;;  %877 = vmatprep.subr.bf16.mxu1 %v2770_v55 }
  0x71   : > { %805 = vmatpush1.bf16.msra.mxu0 %v2772_v56  ;;  %878 = vmatpush1.bf16.msra.mxu1 %v2773_v57 }
  0x72   : > { %806 = vmatprep.subr.bf16.mxu0 %v2774_v58  ;;  %879 = vmatprep.subr.bf16.mxu1 %v2776_v59 }
  0x75   : > { %807 = vmatpush1.bf16.msra.mxu0 %v2778_v60  ;;  %880 = vmatpush1.bf16.msra.mxu1 %v2779_v61 }
  0x76   : > { %808 = vmatprep.subr.bf16.mxu0 %v2780_v62  ;;  %881 = vmatprep.subr.bf16.mxu1 %v2782_v63 }
  0x79   : > { %809 = vmatpush1.bf16.msra.mxu0 %v2784_v1  ;;  %882 = vmatpush1.bf16.msra.mxu1 %v2785_v2 }
  0x7a   : > { %1211 = vmatprep.subr.bf16.mxu0 %v3307_v3  ;;  %1252 = vmatprep.subr.bf16.mxu1 %v3310_v4 }
  0x7c   : > { %811 = vmatmul.mubr.bf16.vlgmr.msra.gmra.mrb[0].mxu0 %v2786_v5  ;;  %884 = vmatmul.mubr.bf16.vlgmr.msra.gmra.mrb[0].mxu1 %v2786_v5 }
  0x7d   : > { %1212 = vmatpush1.bf16.msra.mxu0 %v3316_v6  ;;  %1253 = vmatpush1.bf16.msra.mxu1 %v3322_v8 }
  0x7e   : > { %1213 = vmatprep.subr.bf16.mxu0 %v3319_v7  ;;  %820 = vmatprep.mubr.bf16.mxu0 %v2798_v9 }
  0x7f   : > { %893 = vmatprep.mubr.bf16.mxu1 %v2798_v9  ;;  %1254 = vmatprep.subr.bf16.mxu1 %v3330_v10 }
  0x81   : > { %1214 = vmatpush1.bf16.msra.mxu0 %v3333_v11  ;;  %1255 = vmatpush1.bf16.msra.mxu1 %v3338_v12 }
  0x82   : > { %1215 = vmatprep.subr.bf16.mxu0 %v3342_v13  ;;  %1256 = vmatprep.subr.bf16.mxu1 %v3345_v14 }
  0x84   : > { %821 = vmatmul.mubr.bf16.gmra.mrb[4].mxu0 %v2800_v15  ;;  %894 = vmatmul.mubr.bf16.gmra.mrb[4].mxu1 %v2800_v15 }
  0x85   : > { %1216 = vmatpush1.bf16.msra.mxu0 %v3354_v16  ;;  %1257 = vmatpush1.bf16.msra.mxu1 %v3357_v17 }
  0x86   : > { %1217 = vmatprep.subr.bf16.mxu0 %v3362_v18  ;;  %830 = vmatprep.mubr.bf16.mxu0 %v2813_v19 }
  0x87   : > { %903 = vmatprep.mubr.bf16.mxu1 %v2813_v19  ;;  %1258 = vmatprep.subr.bf16.mxu1 %v3368_v20 }
  0x89   : > { %1218 = vmatpush1.bf16.msra.mxu0 %v3373_v21  ;;  %1259 = vmatpush1.bf16.msra.mxu1 %v3376_v22 }
  0x8a   : > { %1219 = vmatprep.subr.bf16.mxu0 %v3380_v23  ;;  %1260 = vmatprep.subr.bf16.mxu1 %v3383_v24 }
  0x8c   : > { %831 = vmatmul.mubr.bf16.gmra.mrb[8].mxu0 %v2815_v25  ;;  %904 = vmatmul.mubr.bf16.gmra.mrb[8].mxu1 %v2815_v25 }
  0x8d   : > { %1220 = vmatpush1.bf16.msra.mxu0 %v3392_v26  ;;  %1261 = vmatpush1.bf16.msra.mxu1 %v3395_v27 }
  0x8e   : > { %1221 = vmatprep.subr.bf16.mxu0 %v3400_v28  ;;  %840 = vmatprep.mubr.bf16.mxu0 %v2828_v29 }
  0x8f   : > { %913 = vmatprep.mubr.bf16.mxu1 %v2828_v29  ;;  %1262 = vmatprep.subr.bf16.mxu1 %v3406_v30 }
  0x91   : > { %1222 = vmatpush1.bf16.msra.mxu0 %v3411_v31  ;;  %1263 = vmatpush1.bf16.msra.mxu1 %v3414_v32 }
  0x92   : > { %1223 = vmatprep.subr.bf16.mxu0 %v3418_v33  ;;  %1264 = vmatprep.subr.bf16.mxu1 %v3421_v34 }
  0x94   : > { %841 = vmatmul.mubr.bf16.gmra.mrb[12].mxu0 %v2830_v35  ;;  %914 = vmatmul.mubr.bf16.gmra.mrb[12].mxu1 %v2830_v35 }
  0x95   : > { %1224 = vmatpush1.bf16.msra.mxu0 %v3430_v36  ;;  %1265 = vmatpush1.bf16.msra.mxu1 %v3433_v37 }
  0x96   : > { %1225 = vmatprep.subr.bf16.mxu0 %v3438_v38  ;;  %1243 = vmatprep.mubr.bf16.mxu0 %v3091_v0 }
  0x97   : > { %1266 = vmatprep.subr.bf16.mxu1 %v3441_v39  ;;  %1284 = vmatprep.mubr.bf16.mxu1 %v3091_v0 }
  0x99   : > { %1226 = vmatpush1.bf16.msra.mxu0 %v3446_v40  ;;  %1267 = vmatpush1.bf16.msra.mxu1 %v3449_v41 }
  0x9a   : > { %1335 = vmatprep.subr.bf16.mxu0 %v3307_v3  ;;  %1376 = vmatprep.subr.bf16.mxu1 %v3310_v4 }
  0x9c   : > { %1244 = vmatmul.mubr.bf16.vlgmr.msra.gmra.mrb[16].mxu0 %v1043_v42  ;;  %1285 = vmatmul.mubr.bf16.vlgmr.msra.gmra.mrb[16].mxu1 %v1043_v42 }
  0x9d   : > { %1336 = vmatpush1.bf16.msra.mxu0 %v3316_v6  ;;  %1377 = vmatpush1.bf16.msra.mxu1 %v3322_v8 }
  0x9e   : > { %1337 = vmatprep.subr.bf16.mxu0 %v3319_v7  ;;  %1378 = vmatprep.subr.bf16.mxu1 %v3330_v10 }
  0x9f   : > { %1367 = vmatprep.mubr.bf16.mxu0 %v3091_v0  ;;  %1408 = vmatprep.mubr.bf16.mxu1 %v3091_v0 }
  0xa1   : > { %1338 = vmatpush1.bf16.msra.mxu0 %v3333_v11  ;;  %1379 = vmatpush1.bf16.msra.mxu1 %v3338_v12 }
  0xa2   : > { %1339 = vmatprep.subr.bf16.mxu0 %v3342_v13  ;;  %1380 = vmatprep.subr.bf16.mxu1 %v3345_v14 }
  0xa5   : > { %1340 = vmatpush1.bf16.msra.mxu0 %v3354_v16  ;;  %1381 = vmatpush1.bf16.msra.mxu1 %v3357_v17 }
  0xa6   : > { %1341 = vmatprep.subr.bf16.mxu0 %v3362_v18  ;;  %1382 = vmatprep.subr.bf16.mxu1 %v3368_v20 }
  0xa9   : > { %1342 = vmatpush1.bf16.msra.mxu0 %v3373_v21  ;;  %1383 = vmatpush1.bf16.msra.mxu1 %v3376_v22 }
  0xaa   : > { %1343 = vmatprep.subr.bf16.mxu0 %v3380_v23  ;;  %1384 = vmatprep.subr.bf16.mxu1 %v3383_v24 }
  0xad   : > { %1344 = vmatpush1.bf16.msra.mxu0 %v3392_v26  ;;  %1385 = vmatpush1.bf16.msra.mxu1 %v3395_v27 }
  0xae   : > { %1345 = vmatprep.subr.bf16.mxu0 %v3400_v28  ;;  %1386 = vmatprep.subr.bf16.mxu1 %v3406_v30 }
  0xb1   : > { %1346 = vmatpush1.bf16.msra.mxu0 %v3411_v31  ;;  %1387 = vmatpush1.bf16.msra.mxu1 %v3414_v32 }
  0xb2   : > { %1347 = vmatprep.subr.bf16.mxu0 %v3418_v33  ;;  %1388 = vmatprep.subr.bf16.mxu1 %v3421_v34 }
  0xb5   : > { %1348 = vmatpush1.bf16.msra.mxu0 %v3430_v36  ;;  %1389 = vmatpush1.bf16.msra.mxu1 %v3433_v37 }
  0xb6   : > { %1349 = vmatprep.subr.bf16.mxu0 %v3438_v38  ;;  %1390 = vmatprep.subr.bf16.mxu1 %v3441_v39 }
  0xb9   : > { %1350 = vmatpush1.bf16.msra.mxu0 %v3446_v40  ;;  %1391 = vmatpush1.bf16.msra.mxu1 %v3449_v41 }
  0xba   : > { %1459 = vmatprep.subr.bf16.mxu0 %v3307_v3  ;;  %1500 = vmatprep.subr.bf16.mxu1 %v3310_v4 }
 0x14f   : > { %v812_v54 = vpop.f32.mrb[0].mxu0  ;;  %v885_v55 = vpop.f32.mrb[0].mxu1 }
 0x150   : > { %v946_v56 = vadd.f32 %v3497_v50, %v812_v54  ;;  %v948_v57 = vadd.f32 %v3499_v51, %v885_v55  ;;  %v814_v58 = vpop.f32.mrb[1].mxu0  ;;  %v887_v59 = vpop.f32.mrb[1].mxu1 }
 0x151   : > { %v947_v60 = vadd.f32 %v3501_v52, %v814_v58  ;;  %v949_v61 = vadd.f32 %v3503_v53, %v887_v59  ;;  %v816_v62 = vpop.f32.mrb[2].mxu0  ;;  %v889_v63 = vpop.f32.mrb[2].mxu1 }
 0x152   : > { %978 = vst [vmem:[#allocation4] sm:$0xff] %v946_v56  ;;  %980 = vst [vmem:[#allocation4 + $0x10] sm:$0xff] %v948_v57  ;;  %v950_v1 = vadd.f32 %v3497_v50, %v816_v62  ;;  %v952_v2 = vadd.f32 %v3499_v51, %v889_v63  ;;  %v818_v5 = vpop.f32.mrb[3].mxu0  ;;  %v891_v9 = vpop.f32.mrb[3].mxu1 }
 0x153   : > { %979 = vst [vmem:[#allocation4 + $0x8] sm:$0xff] %v947_v60  ;;  %981 = vst [vmem:[#allocation4 + $0x18] sm:$0xff] %v949_v61  ;;  %v951_v15 = vadd.f32 %v3501_v52, %v818_v5  ;;  %v953_v19 = vadd.f32 %v3503_v53, %v891_v9 }
 0x154   : > { %982 = vst [vmem:[#allocation4 + $0x20] sm:$0xff] %v950_v1  ;;  %984 = vst [vmem:[#allocation4 + $0x30] sm:$0xff] %v952_v2 }
 0x155   : > { %983 = vst [vmem:[#allocation4 + $0x28] sm:$0xff] %v951_v15  ;;  %985 = vst [vmem:[#allocation4 + $0x38] sm:$0xff] %v953_v19 }
 0x157   : > { %v822_v25 = vpop.f32.mrb[4].mxu0  ;;  %v895_v29 = vpop.f32.mrb[4].mxu1 }
 0x158   : > { %v954_v35 = vadd.f32 %v3497_v50, %v822_v25  ;;  %v956_v42 = vadd.f32 %v3499_v51, %v895_v29  ;;  %v824_v43 = vpop.f32.mrb[5].mxu0  ;;  %v897_v44 = vpop.f32.mrb[5].mxu1 }
 0x159   : > { %v955_v45 = vadd.f32 %v3501_v52, %v824_v43  ;;  %v957_v46 = vadd.f32 %v3503_v53, %v897_v44  ;;  %v826_v47 = vpop.f32.mrb[6].mxu0  ;;  %v899_v48 = vpop.f32.mrb[6].mxu1 }
 0x15a   : > { %986 = vst [vmem:[#allocation4 + $0x40] sm:$0xff] %v954_v35  ;;  %988 = vst [vmem:[#allocation4 + $0x50] sm:$0xff] %v956_v42  ;;  %v958_v49 = vadd.f32 %v3497_v50, %v826_v47  ;;  %v960_v54 = vadd.f32 %v3499_v51, %v899_v48  ;;  %v828_v55 = vpop.f32.mrb[7].mxu0  ;;  %v901_v56 = vpop.f32.mrb[7].mxu1 }
 0x15b   : > { %987 = vst [vmem:[#allocation4 + $0x48] sm:$0xff] %v955_v45  ;;  %989 = vst [vmem:[#allocation4 + $0x58] sm:$0xff] %v957_v46  ;;  %v959_v57 = vadd.f32 %v3501_v52, %v828_v55  ;;  %v961_v58 = vadd.f32 %v3503_v53, %v901_v56 }
 0x15c   : > { %990 = vst [vmem:[#allocation4 + $0x60] sm:$0xff] %v958_v49  ;;  %992 = vst [vmem:[#allocation4 + $0x70] sm:$0xff] %v960_v54 }
 0x15d   : > { %991 = vst [vmem:[#allocation4 + $0x68] sm:$0xff] %v959_v57  ;;  %993 = vst [vmem:[#allocation4 + $0x78] sm:$0xff] %v961_v58 }
 0x15f   : > { %v832_v59 = vpop.f32.mrb[8].mxu0  ;;  %v905_v60 = vpop.f32.mrb[8].mxu1 }
 0x160   : > { %v962_v61 = vadd.f32 %v3497_v50, %v832_v59  ;;  %v964_v62 = vadd.f32 %v3499_v51, %v905_v60  ;;  %v834_v63 = vpop.f32.mrb[9].mxu0  ;;  %v907_v1 = vpop.f32.mrb[9].mxu1 }
 0x161   : > { %v963_v2 = vadd.f32 %v3501_v52, %v834_v63  ;;  %v965_v5 = vadd.f32 %v3503_v53, %v907_v1  ;;  %v836_v9 = vpop.f32.mrb[10].mxu0  ;;  %v909_v15 = vpop.f32.mrb[10].mxu1 }
 0x162   : > { %994 = vst [vmem:[#allocation4 + $0x80] sm:$0xff] %v962_v61  ;;  %996 = vst [vmem:[#allocation4 + $0x90] sm:$0xff] %v964_v62  ;;  %v966_v19 = vadd.f32 %v3497_v50, %v836_v9  ;;  %v968_v25 = vadd.f32 %v3499_v51, %v909_v15  ;;  %v838_v29 = vpop.f32.mrb[11].mxu0  ;;  %v911_v35 = vpop.f32.mrb[11].mxu1 }
 0x163   : > { %995 = vst [vmem:[#allocation4 + $0x88] sm:$0xff] %v963_v2  ;;  %997 = vst [vmem:[#allocation4 + $0x98] sm:$0xff] %v965_v5  ;;  %v967_v42 = vadd.f32 %v3501_v52, %v838_v29  ;;  %v969_v43 = vadd.f32 %v3503_v53, %v911_v35 }
 0x164   : > { %998 = vst [vmem:[#allocation4 + $0xa0] sm:$0xff] %v966_v19  ;;  %1000 = vst [vmem:[#allocation4 + $0xb0] sm:$0xff] %v968_v25 }
 0x165   : > { %999 = vst [vmem:[#allocation4 + $0xa8] sm:$0xff] %v967_v42  ;;  %1001 = vst [vmem:[#allocation4 + $0xb8] sm:$0xff] %v969_v43 }
 0x167   : > { %v842_v44 = vpop.f32.mrb[12].mxu0  ;;  %v915_v45 = vpop.f32.mrb[12].mxu1 }
 0x168   : > { %v970_v46 = vadd.f32 %v3497_v50, %v842_v44  ;;  %v972_v47 = vadd.f32 %v3499_v51, %v915_v45  ;;  %v844_v48 = vpop.f32.mrb[13].mxu0  ;;  %v917_v49 = vpop.f32.mrb[13].mxu1 }
 0x169   : > { %v971_v54 = vadd.f32 %v3501_v52, %v844_v48  ;;  %v973_v55 = vadd.f32 %v3503_v53, %v917_v49  ;;  %v846_v56 = vpop.f32.mrb[14].mxu0  ;;  %v919_v57 = vpop.f32.mrb[14].mxu1 }
 0x16a   : > { %1002 = vst [vmem:[#allocation4 + $0xc0] sm:$0xff] %v970_v46  ;;  %1004 = vst [vmem:[#allocation4 + $0xd0] sm:$0xff] %v972_v47  ;;  %v974_v58 = vadd.f32 %v3497_v50, %v846_v56  ;;  %v976_v59 = vadd.f32 %v3499_v51, %v919_v57  ;;  %v848_v60 = vpop.f32.mrb[15].mxu0  ;;  %v921_v61 = vpop.f32.mrb[15].mxu1 }
 0x16b   : > { %1003 = vst [vmem:[#allocation4 + $0xc8] sm:$0xff] %v971_v54  ;;  %1005 = vst [vmem:[#allocation4 + $0xd8] sm:$0xff] %v973_v55  ;;  %v975_v62 = vadd.f32 %v3501_v52, %v848_v60  ;;  %v977_v63 = vadd.f32 %v3503_v53, %v921_v61 }
 0x16c   : > { %1006 = vst [vmem:[#allocation4 + $0xe0] sm:$0xff] %v974_v58  ;;  %1008 = vst [vmem:[#allocation4 + $0xf0] sm:$0xff] %v976_v59 }
 0x16d   : > { %1007 = vst [vmem:[#allocation4 + $0xe8] sm:$0xff] %v975_v62  ;;  %1009 = vst [vmem:[#allocation4 + $0xf8] sm:$0xff] %v977_v63 }
 0x16f   : > { %v1245_v1 = vpop.f32.mrb[16].mxu0  ;;  %v1286_v2 = vpop.f32.mrb[16].mxu1 }
 0x170   : > { %v1247_v5 = vpop.f32.mrb[17].mxu0  ;;  %v1288_v9 = vpop.f32.mrb[17].mxu1 }
 0x171   : > { %v1249_v50 = vpop.f32.mrb[18].mxu0  ;;  %v1290_v15 = vpop.f32.mrb[18].mxu1 }
 0x172   : > { %v1250_v51 = vpop.f32.mrb[19].mxu0  ;;  %v1291_v19 = vpop.f32.mrb[19].mxu1 }
 0x174   : > { %v1047_v25 = vld [vmem:[%s1046_s30] sm:$0xff]  ;;  %v1048_v29 = vld [vmem:[%s1046_s30 + $0x8] sm:$0xff]  ;;  %v1049_v43 = vld [vmem:[%s1046_s30 + $0x10] sm:$0xff] }
 0x175   : > { %v1246_v35 = vadd.f32 %v1245_v1, %v1047_v25  ;;  %v1248_v52 = vadd.f32 %v1247_v5, %v1048_v29  ;;  %v1287_v44 = vadd.f32 %v1286_v2, %v1049_v43  ;;  %v1050_v45 = vld [vmem:[%s1046_s30 + $0x18] sm:$0xff]  ;;  %v1331_v15 = vld [vmem:[%s1330_s12] sm:$0xff]  ;;  %v1332_v29 = vld [vmem:[%s1330_s12 + $0x8] sm:$0xff]  ;;  %s2582_s30 = sshll.u32 %s3630_s25, 2 }
 0x176   : > { %v1289_v47 = vadd.f32 %v1288_v9, %v1050_v45  ;;  %s1570_s5 = scalar_lea.vmem %s3543_s7, %s2582_s30 [#allocation7] }
 0x177   : > { %v2566_v42 = vmul.f32 -1.442695, %v1246_v35  ;;  %v2567_v53 = vmul.f32 -1.442695, %v1248_v52  ;;  %v2568_v46 = vmul.f32 -1.442695, %v1287_v44 }
 0x179   : > { %2846 = vpow2.f32 %v2566_v42 }
 0x17a   : > { %2848 = vpow2.f32 %v2567_v53 }
 0x17b   : > { %2850 = vpow2.f32 %v2568_v46 }
 0x17c   : > { %2852 = vtanh.f32 %v1289_v47 }
 0x183   : > { %v2847_v48 = vpop.eup %2846 }
 0x184   : > { %v2849_v49 = vpop.eup %2848  ;;  %v1302_v54 = vadd.f32 1.0, %v2847_v48  ;;  %v1333_v48 = vld [vmem:[%s1330_s12 + $0x10] sm:$0xff] }
 0x185   : > { %v1303_v55 = vadd.f32 1.0, %v2849_v49  ;;  %v2851_v56 = vpop.eup %2850 }
 0x186   : > { %2854 = vrcp.f32 %v1302_v54  ;;  %v2853_v57 = vpop.eup %2852  ;;  %v1304_v60 = vadd.f32 1.0, %v2851_v56  ;;  %v1334_v54 = vld [vmem:[%s1330_s12 + $0x18] sm:$0xff] }
 0x187   : > { %2856 = vrcp.f32 %v1303_v55 }
 0x188   : > { %2858 = vrcp.f32 %v1304_v60 }
 0x190   : > { %v2855_v58 = vpop.eup %2854 }
 0x191   : > { %v2857_v59 = vpop.eup %2856  ;;  %v1314_v61 = vmul.f32 %v2855_v58, %v2853_v57 }
 0x192   : > { %v1313_v62 = vmul.f32 0.0, %v2857_v59  ;;  %v2859_v1 = vpop.eup %2858 }
 0x194   : > { %v3538_v63 = vadd.f32 %v1314_v61, %v1313_v62 }
 0x196   : > { %2860 = vtanh.f32 %v3538_v63 }
 0x1a0   : > { %v2861_v2 = vpop.eup %2860 }
 0x1a1   : > { %v1317_v5 = vmul.f32 %v2861_v2, %v2859_v1 }
 0x1a3   : > { %v1318_v9 = vpack.c.bf16 %v1317_v5, %v1317_v5 }
 0x1a5   : > { %1320 = vst [vmem:[#allocation2] sm:$0xf] %v1318_v9  ;;  %1323 = vst [vmem:[%s1322_s13] sm:$0xf] %v1318_v9  ;;  %s2583_s13 = sshll.u32 %s3078_s18, 2 }
 0x1a6   : > { %s3683_s9 = sadd.s32 %s2583_s13, %s1573_s6  ;;  %s2597_s6 = sshll.u32 %s3078_s18, 1 }
 0x1a7   : > { %s2626_s10 = sshll.u32 %s3683_s9, 5  ;;  %s2589_s12 = sshll.u32 %s3683_s9, 2 }
 0x1a8   : > { %s1578_s11 = scalar_lea.vmem [#allocation4], %s2626_s10  ;;  %s1694_s21 = scalar_lea.vmem %s3543_s7, %s2589_s12 [#allocation7] }
 0x1ac   : > { %v1327_v50 = vld [vmem:[#allocation2] sm:$0xf] }
 0x1ad   : > { %1368 = vmatmul.mubr.bf16.vlgmr.msra.gmra.mrb[20].mxu0 %v1327_v50  ;;  %1409 = vmatmul.mubr.bf16.vlgmr.msra.gmra.mrb[20].mxu1 %v1327_v50 }
 0x1ae   : > { %1460 = vmatpush1.bf16.msra.mxu0 %v3316_v6  ;;  %1501 = vmatpush1.bf16.msra.mxu1 %v3322_v8 }
 0x1af   : > { %1461 = vmatprep.subr.bf16.mxu0 %v3319_v7  ;;  %1502 = vmatprep.subr.bf16.mxu1 %v3330_v10 }
 0x1b0   : > { %1491 = vmatprep.mubr.bf16.mxu0 %v3091_v0  ;;  %1532 = vmatprep.mubr.bf16.mxu1 %v3091_v0 }
 0x1b2   : > { %1462 = vmatpush1.bf16.msra.mxu0 %v3333_v11  ;;  %1503 = vmatpush1.bf16.msra.mxu1 %v3338_v12 }
 0x1b3   : > { %1463 = vmatprep.subr.bf16.mxu0 %v3342_v13  ;;  %1504 = vmatprep.subr.bf16.mxu1 %v3345_v14 }
 0x1b6   : > { %1464 = vmatpush1.bf16.msra.mxu0 %v3354_v16  ;;  %1505 = vmatpush1.bf16.msra.mxu1 %v3357_v17 }
 0x1b7   : > { %1465 = vmatprep.subr.bf16.mxu0 %v3362_v18  ;;  %1506 = vmatprep.subr.bf16.mxu1 %v3368_v20 }
 0x1ba   : > { %1466 = vmatpush1.bf16.msra.mxu0 %v3373_v21  ;;  %1507 = vmatpush1.bf16.msra.mxu1 %v3376_v22 }
 0x1bb   : > { %1467 = vmatprep.subr.bf16.mxu0 %v3380_v23  ;;  %1508 = vmatprep.subr.bf16.mxu1 %v3383_v24 }
 0x1be   : > { %1468 = vmatpush1.bf16.msra.mxu0 %v3392_v26  ;;  %1509 = vmatpush1.bf16.msra.mxu1 %v3395_v27 }
 0x1bf   : > { %1469 = vmatprep.subr.bf16.mxu0 %v3400_v28  ;;  %1510 = vmatprep.subr.bf16.mxu1 %v3406_v30 }
 0x1c2   : > { %1470 = vmatpush1.bf16.msra.mxu0 %v3411_v31  ;;  %1511 = vmatpush1.bf16.msra.mxu1 %v3414_v32 }
 0x1c3   : > { %1471 = vmatprep.subr.bf16.mxu0 %v3418_v33  ;;  %1512 = vmatprep.subr.bf16.mxu1 %v3421_v34 }
 0x1c6   : > { %1472 = vmatpush1.bf16.msra.mxu0 %v3430_v36  ;;  %1513 = vmatpush1.bf16.msra.mxu1 %v3433_v37 }
 0x1c7   : > { %1473 = vmatprep.subr.bf16.mxu0 %v3438_v38  ;;  %1514 = vmatprep.subr.bf16.mxu1 %v3441_v39 }
 0x1ca   : > { %1474 = vmatpush1.bf16.msra.mxu0 %v3446_v40  ;;  %1515 = vmatpush1.bf16.msra.mxu1 %v3449_v41 }
 0x1cb   : > { %1583 = vmatprep.subr.bf16.mxu0 %v3307_v3  ;;  %1624 = vmatprep.subr.bf16.mxu1 %v3310_v4 }
 0x280   : > { %v1369_v51 = vpop.f32.mrb[20].mxu0  ;;  %v1410_v19 = vpop.f32.mrb[20].mxu1 }
 0x281   : > { %v1370_v25 = vadd.f32 %v1369_v51, %v1331_v15  ;;  %v1371_v35 = vpop.f32.mrb[21].mxu0  ;;  %v1412_v52 = vpop.f32.mrb[21].mxu1  ;;  %v1411_v49 = vadd.f32 %v1410_v19, %v1333_v48 }
 0x282   : > { %v1372_v42 = vadd.f32 %v1371_v35, %v1332_v29  ;;  %v1373_v53 = vpop.f32.mrb[22].mxu0  ;;  %v1414_v43 = vpop.f32.mrb[22].mxu1  ;;  %v1413_v55 = vadd.f32 %v1412_v52, %v1334_v54 }
 0x283   : > { %v2572_v44 = vmul.f32 -1.442695, %v1370_v25  ;;  %v1374_v45 = vpop.f32.mrb[23].mxu0  ;;  %v1415_v46 = vpop.f32.mrb[23].mxu1  ;;  %v2574_v56 = vmul.f32 -1.442695, %v1411_v49 }
 0x284   : > { %v2573_v47 = vmul.f32 -1.442695, %v1372_v42  ;;  %v1456_v43 = vld [vmem:[%s1454_s8 + $0x8] sm:$0xff] }
 0x285   : > { %2862 = vpow2.f32 %v2572_v44 }
 0x286   : > { %2864 = vpow2.f32 %v2573_v47 }
 0x287   : > { %2866 = vtanh.f32 %v1413_v55  ;;  %v1457_v55 = vld [vmem:[%s1454_s8 + $0x10] sm:$0xff] }
 0x288   : > { %2868 = vpow2.f32 %v2574_v56 }
 0x28f   : > { %v2863_v57 = vpop.eup %2862 }
 0x290   : > { %v1426_v58 = vadd.f32 1.0, %v2863_v57  ;;  %v2865_v59 = vpop.eup %2864  ;;  %v1458_v57 = vld [vmem:[%s1454_s8 + $0x18] sm:$0xff] }
 0x291   : > { %v1427_v60 = vadd.f32 1.0, %v2865_v59  ;;  %v2867_v61 = vpop.eup %2866 }
 0x292   : > { %2870 = vrcp.f32 %v1426_v58  ;;  %v2869_v62 = vpop.eup %2868 }
 0x293   : > { %2872 = vrcp.f32 %v1427_v60  ;;  %v1428_v9 = vadd.f32 1.0, %v2869_v62 }
 0x295   : > { %2874 = vrcp.f32 %v1428_v9 }
 0x29c   : > { %v2871_v1 = vpop.eup %2870 }
 0x29d   : > { %v1438_v2 = vmul.f32 %v2871_v1, %v2867_v61  ;;  %v2873_v5 = vpop.eup %2872 }
 0x29e   : > { %v1437_v50 = vmul.f32 %v2873_v5, %v3538_v63  ;;  %v1455_v63 = vld [vmem:[%s1454_s8] sm:$0xff] }
 0x29f   : > { %v2875_v51 = vpop.eup %2874 }
 0x2a0   : > { %v3589_v15 = vadd.f32 %v1438_v2, %v1437_v50 }
 0x2a2   : > { %2876 = vtanh.f32 %v3589_v15 }
 0x2ac   : > { %v2877_v19 = vpop.eup %2876 }
 0x2ad   : > { %v1441_v25 = vmul.f32 %v2877_v19, %v2875_v51 }
 0x2af   : > { %v1442_v29 = vpack.c.bf16 %v1441_v25, %v1441_v25 }
 0x2b1   : > { %1444 = vst [vmem:[#allocation2] sm:$0xf] %v1442_v29  ;;  %1447 = vst [vmem:[%s1446_s26] sm:$0xf] %v1442_v29  ;;  %s1696_s26 = smul.u32 3, %s3078_s18 }
 0x2b3   : > { %s3806_s24 = sadd.s32 %s2590_s23, %s1696_s26 }
 0x2b4   : > { %s2627_s25 = sshll.u32 %s3806_s24, 5  ;;  %s2596_s8 = sshll.u32 %s3806_s24, 2 }
 0x2b5   : > { %s1702_s29 = scalar_lea.vmem [#allocation4], %s2627_s25  ;;  %s1818_s30 = scalar_lea.vmem %s3543_s7, %s2596_s8 [#allocation7] }
 0x2b6   : > { %s2630_s8 = smul.u32 224, %s3582_s14 }
 0x2b8   : > { %v1451_v35 = vld [vmem:[#allocation2] sm:$0xf] }
 0x2b9   : > { %1492 = vmatmul.mubr.bf16.vlgmr.msra.gmra.mrb[24].mxu0 %v1451_v35  ;;  %1533 = vmatmul.mubr.bf16.vlgmr.msra.gmra.mrb[24].mxu1 %v1451_v35 }
 0x2ba   : > { %1584 = vmatpush1.bf16.msra.mxu0 %v3316_v6  ;;  %1625 = vmatpush1.bf16.msra.mxu1 %v3322_v8 }
 0x2bb   : > { %1585 = vmatprep.subr.bf16.mxu0 %v3319_v7  ;;  %1626 = vmatprep.subr.bf16.mxu1 %v3330_v10 }
 0x2bc   : > { %1615 = vmatprep.mubr.bf16.mxu0 %v3091_v0  ;;  %1656 = vmatprep.mubr.bf16.mxu1 %v3091_v0 }
 0x2be   : > { %1586 = vmatpush1.bf16.msra.mxu0 %v3333_v11  ;;  %1627 = vmatpush1.bf16.msra.mxu1 %v3338_v12 }
 0x2bf   : > { %1587 = vmatprep.subr.bf16.mxu0 %v3342_v13  ;;  %1628 = vmatprep.subr.bf16.mxu1 %v3345_v14 }
 0x2c2   : > { %1588 = vmatpush1.bf16.msra.mxu0 %v3354_v16  ;;  %1629 = vmatpush1.bf16.msra.mxu1 %v3357_v17 }
 0x2c3   : > { %1589 = vmatprep.subr.bf16.mxu0 %v3362_v18  ;;  %1630 = vmatprep.subr.bf16.mxu1 %v3368_v20 }
 0x2c6   : > { %1590 = vmatpush1.bf16.msra.mxu0 %v3373_v21  ;;  %1631 = vmatpush1.bf16.msra.mxu1 %v3376_v22 }
 0x2c7   : > { %1591 = vmatprep.subr.bf16.mxu0 %v3380_v23  ;;  %1632 = vmatprep.subr.bf16.mxu1 %v3383_v24 }
 0x2ca   : > { %1592 = vmatpush1.bf16.msra.mxu0 %v3392_v26  ;;  %1633 = vmatpush1.bf16.msra.mxu1 %v3395_v27 }
 0x2cb   : > { %1593 = vmatprep.subr.bf16.mxu0 %v3400_v28  ;;  %1634 = vmatprep.subr.bf16.mxu1 %v3406_v30 }
 0x2ce   : > { %1594 = vmatpush1.bf16.msra.mxu0 %v3411_v31  ;;  %1635 = vmatpush1.bf16.msra.mxu1 %v3414_v32 }
 0x2cf   : > { %1595 = vmatprep.subr.bf16.mxu0 %v3418_v33  ;;  %1636 = vmatprep.subr.bf16.mxu1 %v3421_v34 }
 0x2d2   : > { %1596 = vmatpush1.bf16.msra.mxu0 %v3430_v36  ;;  %1637 = vmatpush1.bf16.msra.mxu1 %v3433_v37 }
 0x2d3   : > { %1597 = vmatprep.subr.bf16.mxu0 %v3438_v38  ;;  %1638 = vmatprep.subr.bf16.mxu1 %v3441_v39 }
 0x2d6   : > { %1598 = vmatpush1.bf16.msra.mxu0 %v3446_v40  ;;  %1639 = vmatpush1.bf16.msra.mxu1 %v3449_v41 }
 0x2d7   : > { %1707 = vmatprep.subr.bf16.mxu0 %v3307_v3  ;;  %1748 = vmatprep.subr.bf16.mxu1 %v3310_v4 }
 0x38c   : > { %v1493_v52 = vpop.f32.mrb[24].mxu0  ;;  %v1534_v42 = vpop.f32.mrb[24].mxu1 }
 0x38d   : > { %v1494_v53 = vadd.f32 %v1493_v52, %v1455_v63  ;;  %v1495_v44 = vpop.f32.mrb[25].mxu0  ;;  %v1536_v45 = vpop.f32.mrb[25].mxu1  ;;  %v1535_v56 = vadd.f32 %v1534_v42, %v1457_v55 }
 0x38e   : > { %v1496_v46 = vadd.f32 %v1495_v44, %v1456_v43  ;;  %v1497_v47 = vpop.f32.mrb[26].mxu0  ;;  %v1538_v48 = vpop.f32.mrb[26].mxu1  ;;  %v1537_v58 = vadd.f32 %v1536_v45, %v1458_v57  ;;  %v3697_v57 = vld [vmem:[%s3222_s15 + $0x8] ss:$16 sps:$4 sm:$0xff]  }
 0x38f   : > { %v2579_v3 = vmul.f32 -1.442695, %v1494_v53  ;;  %v1498_v49 = vpop.f32.mrb[27].mxu0  ;;  %v1539_v4 = vpop.f32.mrb[27].mxu1  ;;  %v2581_v59 = vmul.f32 -1.442695, %v1535_v56 }
 0x390   : > { %v2580_v54 = vmul.f32 -1.442695, %v1496_v46  ;;  %v3693_v56 = vld [vmem:[%s3222_s15] ss:$16 sps:$4 sm:$0xff]  }
 0x391   : > { %2878 = vpow2.f32 %v2579_v3 }
 0x392   : > { %2880 = vpow2.f32 %v2580_v54 }
 0x393   : > { %2882 = vtanh.f32 %v1537_v58  ;;  %v3701_v58 = vld [vmem:[%s3222_s15 + $0x24] ss:$16 sps:$4 sm:$0xff]  }
 0x394   : > { %2884 = vpow2.f32 %v2581_v59  ;;  %v3705_v59 = vld [vmem:[%s3222_s15 + $0x2c] ss:$16 sps:$4 sm:$0xff]  }
 0x39b   : > { %v2879_v60 = vpop.eup %2878 }
 0x39c   : > { %v1550_v61 = vadd.f32 1.0, %v2879_v60  ;;  %v2881_v62 = vpop.eup %2880  ;;  %v3711_v60 = vld [vmem:[%s3222_s15 + $0x20] ss:$16 sps:$4 sm:$0xff]  }
 0x39d   : > { %v1551_v1 = vadd.f32 1.0, %v2881_v62  ;;  %v2883_v2 = vpop.eup %2882  ;;  %v3719_v62 = vld [vmem:[%s3222_s15 + $0x44] ss:$16 sps:$4 sm:$0xff]  }
 0x39e   : > { %2886 = vrcp.f32 %v1550_v61  ;;  %v2885_v5 = vpop.eup %2884  ;;  %v3715_v61 = vld [vmem:[%s3222_s15 + $0x28] ss:$16 sps:$4 sm:$0xff]  }
 0x39f   : > { %2888 = vrcp.f32 %v1551_v1  ;;  %v1552_v19 = vadd.f32 1.0, %v2885_v5  ;;  %v3723_v1 = vld [vmem:[%s3222_s15 + $0x4c] ss:$16 sps:$4 sm:$0xff]   ;;  %v3731_v5 = vld [vmem:[%s3222_s15 + $0x48] ss:$16 sps:$4 sm:$0xff]  }
 0x3a1   : > { %2890 = vrcp.f32 %v1552_v19  ;;  %v3747_v19 = vld [vmem:[%s3222_s15 + $0x68] ss:$16 sps:$4 sm:$0xff]  }
 0x3a8   : > { %v2887_v9 = vpop.eup %2886 }
 0x3a9   : > { %v1562_v50 = vmul.f32 %v2887_v9, %v2883_v2  ;;  %v2889_v51 = vpop.eup %2888  ;;  %v3727_v2 = vld [vmem:[%s3222_s15 + $0x40] ss:$16 sps:$4 sm:$0xff]   ;;  %v3735_v9 = vld [vmem:[%s3222_s15 + $0x64] ss:$16 sps:$4 sm:$0xff]  }
 0x3aa   : > { %v1561_v25 = vmul.f32 %v2889_v51, %v3589_v15  ;;  %v3743_v51 = vld [vmem:[%s3222_s15 + $0x60] ss:$16 sps:$4 sm:$0xff]  }
 0x3ab   : > { %v2891_v35 = vpop.eup %2890 }
 0x3ac   : > { %v3634_v29 = vadd.f32 %v1562_v50, %v1561_v25  ;;  %v3739_v50 = vld [vmem:[%s3222_s15 + $0x6c] ss:$16 sps:$4 sm:$0xff]   ;;  %v3751_v25 = vld [vmem:[%s3222_s15 + $0x84] ss:$16 sps:$4 sm:$0xff]  }
 0x3ae   : > { %2892 = vtanh.f32 %v3634_v29 }
 0x3b8   : > { %v2893_v63 = vpop.eup %2892 }
 0x3b9   : > { %v1565_v52 = vmul.f32 %v2893_v63, %v2891_v35  ;;  %v3759_v35 = vld [vmem:[%s3222_s15 + $0x80] ss:$16 sps:$4 sm:$0xff]   ;;  %v3763_v63 = vld [vmem:[%s3222_s15 + $0x88] ss:$16 sps:$4 sm:$0xff]  }
 0x3bb   : > { %v1566_v42 = vpack.c.bf16 %v1565_v52, %v1565_v52  ;;  %v3767_v52 = vld [vmem:[%s3222_s15 + $0xa4] ss:$16 sps:$4 sm:$0xff]  }
 0x3bd   : > { %1571 = vst [vmem:[%s1570_s5] sm:$0xf] %v1566_v42  ;;  %1568 = vst [vmem:[#allocation2] sm:$0xf] %v1566_v42  ;;  %v3771_v42 = vld [vmem:[%s3222_s15 + $0xac] ss:$16 sps:$4 sm:$0xff]   ;;  %s1821_s5 = smul.u32 5, %s3582_s14 }
 0x3bf   : > { %s3863_s9 = sadd.s32 %s2597_s6, %s1821_s5  ;;  %s2631_s5 = smul.u32 28, %s3582_s14 }
 0x3c0   : > { %s2628_s10 = sshll.u32 %s3863_s9, 5 }
 0x3c1   : > { %s2187_s6 = scalar_lea.vmem %s3543_s7, %s2631_s5 [#allocation7] }
 0x3c4   : > { %v1575_v53 = vld [vmem:[#allocation2] sm:$0xf] }
 0x3c5   : > { %1616 = vmatmul.mubr.bf16.vlgmr.msra.gmra.mrb[28].mxu0 %v1575_v53  ;;  %1657 = vmatmul.mubr.bf16.vlgmr.msra.gmra.mrb[28].mxu1 %v1575_v53  ;;  %v3775_v53 = vld [vmem:[%s3222_s15 + $0xa0] ss:$16 sps:$4 sm:$0xff]  }
 0x3c6   : > { %1708 = vmatpush1.bf16.msra.mxu0 %v3316_v6  ;;  %1749 = vmatpush1.bf16.msra.mxu1 %v3322_v8  ;;  %v3672_v6 = vld [vmem:[%s3222_s15 + $0x4] ss:$16 sps:$4 sm:$0xff]   ;;  %v1579_v8 = vld [vmem:[%s1578_s11] sm:$0xff] }
 0x3c7   : > { %1709 = vmatprep.subr.bf16.mxu0 %v3319_v7  ;;  %1750 = vmatprep.subr.bf16.mxu1 %v3330_v10  ;;  %v3676_v7 = vld [vmem:[%s3222_s15 + $0xc] ss:$16 sps:$4 sm:$0xff]  }
 0x3c8   : > { %1739 = vmatprep.mubr.bf16.mxu0 %v3091_v0  ;;  %1780 = vmatprep.mubr.bf16.mxu1 %v3091_v0 }
 0x3ca   : > { %1710 = vmatpush1.bf16.msra.mxu0 %v3333_v11  ;;  %1751 = vmatpush1.bf16.msra.mxu1 %v3338_v12 }
 0x3cb   : > { %1711 = vmatprep.subr.bf16.mxu0 %v3342_v13  ;;  %1752 = vmatprep.subr.bf16.mxu1 %v3345_v14  ;;  %v1580_v13 = vld [vmem:[%s1578_s11 + $0x8] sm:$0xff] }
 0x3ce   : > { %1712 = vmatpush1.bf16.msra.mxu0 %v3354_v16  ;;  %1753 = vmatpush1.bf16.msra.mxu1 %v3357_v17 }
 0x3cf   : > { %1713 = vmatprep.subr.bf16.mxu0 %v3362_v18  ;;  %1754 = vmatprep.subr.bf16.mxu1 %v3368_v20 }
 0x3d2   : > { %1714 = vmatpush1.bf16.msra.mxu0 %v3373_v21  ;;  %1755 = vmatpush1.bf16.msra.mxu1 %v3376_v22 }
 0x3d3   : > { %1715 = vmatprep.subr.bf16.mxu0 %v3380_v23  ;;  %1756 = vmatprep.subr.bf16.mxu1 %v3383_v24 }
 0x3d6   : > { %1716 = vmatpush1.bf16.msra.mxu0 %v3392_v26  ;;  %1757 = vmatpush1.bf16.msra.mxu1 %v3395_v27  ;;  %v1581_v26 = vld [vmem:[%s1578_s11 + $0x10] sm:$0xff] }
 0x3d7   : > { %1717 = vmatprep.subr.bf16.mxu0 %v3400_v28  ;;  %1758 = vmatprep.subr.bf16.mxu1 %v3406_v30  ;;  %v1582_v28 = vld [vmem:[%s1578_s11 + $0x18] sm:$0xff]  ;;  %s1826_s11 = scalar_lea.vmem [#allocation4], %s2628_s10 }
 0x3da   : > { %1718 = vmatpush1.bf16.msra.mxu0 %v3411_v31  ;;  %1759 = vmatpush1.bf16.msra.mxu1 %v3414_v32 }
 0x3db   : > { %1719 = vmatprep.subr.bf16.mxu0 %v3418_v33  ;;  %1760 = vmatprep.subr.bf16.mxu1 %v3421_v34 }
 0x3de   : > { %1720 = vmatpush1.bf16.msra.mxu0 %v3430_v36  ;;  %1761 = vmatpush1.bf16.msra.mxu1 %v3433_v37 }
 0x3df   : > { %1721 = vmatprep.subr.bf16.mxu0 %v3438_v38  ;;  %1762 = vmatprep.subr.bf16.mxu1 %v3441_v39 }
 0x3e2   : > { %1722 = vmatpush1.bf16.msra.mxu0 %v3446_v40  ;;  %1763 = vmatpush1.bf16.msra.mxu1 %v3449_v41 }
 0x3e3   : > { %1831 = vmatprep.subr.bf16.mxu0 %v3672_v6  ;;  %1872 = vmatprep.subr.bf16.mxu1 %v3676_v7 }
 0x498   : > { %v1617_v10 = vpop.f32.mrb[28].mxu0  ;;  %v1658_v11 = vpop.f32.mrb[28].mxu1 }
 0x499   : > { %v1618_v12 = vadd.f32 %v1617_v10, %v1579_v8  ;;  %v1619_v14 = vpop.f32.mrb[29].mxu0  ;;  %v1660_v16 = vpop.f32.mrb[29].mxu1  ;;  %v1659_v27 = vadd.f32 %v1658_v11, %v1581_v26  ;;  %v3779_v8 = vld [vmem:[%s3222_s15 + $0xa8] ss:$16 sps:$4 sm:$0xff]   ;;  %v3783_v10 = vld [vmem:[%s3222_s15 + $0xc4] ss:$16 sps:$4 sm:$0xff]  }
 0x49a   : > { %v1620_v17 = vadd.f32 %v1619_v14, %v1580_v13  ;;  %v1621_v18 = vpop.f32.mrb[30].mxu0  ;;  %v1662_v20 = vpop.f32.mrb[30].mxu1  ;;  %v1661_v30 = vadd.f32 %v1660_v16, %v1582_v28  ;;  %v3787_v11 = vld [vmem:[%s3222_s15 + $0xcc] ss:$16 sps:$4 sm:$0xff]   ;;  %v3795_v13 = vld [vmem:[%s3222_s15 + $0xc8] ss:$16 sps:$4 sm:$0xff]  }
 0x49b   : > { %v2586_v21 = vmul.f32 -1.442695, %v1618_v12  ;;  %v1622_v22 = vpop.f32.mrb[31].mxu0  ;;  %v1663_v23 = vpop.f32.mrb[31].mxu1  ;;  %v2588_v31 = vmul.f32 -1.442695, %v1659_v27 }
 0x49c   : > { %v2587_v24 = vmul.f32 -1.442695, %v1620_v17  ;;  %v3791_v12 = vld [vmem:[%s3222_s15 + $0xc0] ss:$16 sps:$4 sm:$0xff]  }
 0x49d   : > { %2894 = vpow2.f32 %v2586_v21  ;;  %v1703_v14 = vld [vmem:[%s1702_s29] sm:$0xff]  ;;  %v1705_v27 = vld [vmem:[%s1702_s29 + $0x10] sm:$0xff] }
 0x49e   : > { %2896 = vpow2.f32 %v2587_v24 }
 0x49f   : > { %2898 = vtanh.f32 %v1661_v30  ;;  %v1706_v30 = vld [vmem:[%s1702_s29 + $0x18] sm:$0xff] }
 0x4a0   : > { %2900 = vpow2.f32 %v2588_v31 }
 0x4a7   : > { %v2895_v32 = vpop.eup %2894 }
 0x4a8   : > { %v1674_v33 = vadd.f32 1.0, %v2895_v32  ;;  %v2897_v34 = vpop.eup %2896 }
 0x4a9   : > { %v1675_v36 = vadd.f32 1.0, %v2897_v34  ;;  %v2899_v37 = vpop.eup %2898 }
 0x4aa   : > { %2902 = vrcp.f32 %v1674_v33  ;;  %v2901_v15 = vpop.eup %2900 }
 0x4ab   : > { %2904 = vrcp.f32 %v1675_v36  ;;  %v1676_v46 = vadd.f32 1.0, %v2901_v15 }
 0x4ad   : > { %2906 = vrcp.f32 %v1676_v46 }
 0x4b4   : > { %v2903_v43 = vpop.eup %2902 }
 0x4b5   : > { %v1686_v44 = vmul.f32 %v2903_v43, %v2899_v37  ;;  %v2905_v45 = vpop.eup %2904 }
 0x4b6   : > { %v1685_v47 = vmul.f32 %v2905_v45, %v3634_v29  ;;  %v3755_v29 = vld [vmem:[%s3222_s15 + $0x8c] ss:$16 sps:$4 sm:$0xff]  }
 0x4b7   : > { %v2907_v3 = vpop.eup %2906 }
 0x4b8   : > { %v3687_v48 = vadd.f32 %v1686_v44, %v1685_v47 }
 0x4ba   : > { %2908 = vtanh.f32 %v3687_v48 }
 0x4c4   : > { %v2909_v49 = vpop.eup %2908 }
 0x4c5   : > { %v1689_v4 = vmul.f32 %v2909_v49, %v2907_v3 }
 0x4c7   : > { %v1690_v54 = vpack.c.bf16 %v1689_v4, %v1689_v4 }
 0x4c9   : > { %1695 = vst [vmem:[%s1694_s21] sm:$0xf] %v1690_v54  ;;  %1692 = vst [vmem:[#allocation2] sm:$0xf] %v1690_v54  ;;  %s1944_s21 = smul.u32 6, %s3582_s14  ;;  %s2205_s14 = scalar_lea.vmem (%p3957_p8), %s3952_s4, %s2583_s13 }
 0x4cb   : > { %s3906_s26 = sadd.s32 %s3078_s18, %s1944_s21 }
 0x4cc   : > { %s2629_s23 = sshll.u32 %s3906_s26, 5  ;;  %s2609_s25 = sshll.u32 %s3906_s26, 2 }
 0x4cd   : > { %s1949_s24 = scalar_lea.vmem [#allocation4], %s2629_s23 }
 0x4d0   : > { %v1699_v55 = vld [vmem:[#allocation2] sm:$0xf] }
 0x4d1   : > { %1740 = vmatmul.mubr.bf16.vlgmr.msra.gmra.mrb[32].mxu0 %v1699_v55  ;;  %1781 = vmatmul.mubr.bf16.vlgmr.msra.gmra.mrb[32].mxu1 %v1699_v55 }
 0x4d2   : > { %1832 = vmatpush1.bf16.msra.mxu0 %v3693_v56  ;;  %1873 = vmatpush1.bf16.msra.mxu1 %v3697_v57 }
 0x4d3   : > { %1833 = vmatprep.subr.bf16.mxu0 %v3701_v58  ;;  %1874 = vmatprep.subr.bf16.mxu1 %v3705_v59 }
 0x4d4   : > { %1863 = vmatprep.mubr.bf16.mxu0 %v3091_v0  ;;  %1904 = vmatprep.mubr.bf16.mxu1 %v3091_v0 }
 0x4d6   : > { %1834 = vmatpush1.bf16.msra.mxu0 %v3711_v60  ;;  %1875 = vmatpush1.bf16.msra.mxu1 %v3715_v61 }
 0x4d7   : > { %1835 = vmatprep.subr.bf16.mxu0 %v3719_v62  ;;  %1876 = vmatprep.subr.bf16.mxu1 %v3723_v1 }
 0x4da   : > { %1836 = vmatpush1.bf16.msra.mxu0 %v3727_v2  ;;  %1877 = vmatpush1.bf16.msra.mxu1 %v3731_v5 }
 0x4db   : > { %1837 = vmatprep.subr.bf16.mxu0 %v3735_v9  ;;  %1878 = vmatprep.subr.bf16.mxu1 %v3739_v50 }
 0x4de   : > { %1838 = vmatpush1.bf16.msra.mxu0 %v3743_v51  ;;  %1879 = vmatpush1.bf16.msra.mxu1 %v3747_v19 }
 0x4df   : > { %1839 = vmatprep.subr.bf16.mxu0 %v3751_v25  ;;  %1880 = vmatprep.subr.bf16.mxu1 %v3755_v29 }
 0x4e2   : > { %1840 = vmatpush1.bf16.msra.mxu0 %v3759_v35  ;;  %1881 = vmatpush1.bf16.msra.mxu1 %v3763_v63 }
 0x4e3   : > { %1841 = vmatprep.subr.bf16.mxu0 %v3767_v52  ;;  %1882 = vmatprep.subr.bf16.mxu1 %v3771_v42 }
 0x4e6   : > { %1842 = vmatpush1.bf16.msra.mxu0 %v3775_v53  ;;  %1883 = vmatpush1.bf16.msra.mxu1 %v3779_v8 }
 0x4e7   : > { %1843 = vmatprep.subr.bf16.mxu0 %v3783_v10  ;;  %1884 = vmatprep.subr.bf16.mxu1 %v3787_v11 }
 0x4ea   : > { %1844 = vmatpush1.bf16.msra.mxu0 %v3791_v12  ;;  %1885 = vmatpush1.bf16.msra.mxu1 %v3795_v13 }
 0x4eb   : > { %1845 = vmatprep.subr.bf16.mxu0 %v3438_v38  ;;  %1886 = vmatprep.subr.bf16.mxu1 %v3441_v39  ;;  %v1704_v39 = vld [vmem:[%s1702_s29 + $0x8] sm:$0xff]  ;;  %s2065_s29 = scalar_lea.vmem %s3543_s7, %s2609_s25 [#allocation7] }
 0x4ee   : > { %1846 = vmatpush1.bf16.msra.mxu0 %v3446_v40  ;;  %1887 = vmatpush1.bf16.msra.mxu1 %v3449_v41 }
 0x4ef   : > { %1954 = vmatprep.subr.bf16.mxu0 %v3672_v6  ;;  %1995 = vmatprep.subr.bf16.mxu1 %v3676_v7 }
 0x5a4   : > { %v1741_v16 = vpop.f32.mrb[32].mxu0  ;;  %v1782_v38 = vpop.f32.mrb[32].mxu1 }
 0x5a5   : > { %v1742_v17 = vadd.f32 %v1741_v16, %v1703_v14  ;;  %v1743_v18 = vpop.f32.mrb[33].mxu0  ;;  %v1784_v40 = vpop.f32.mrb[33].mxu1  ;;  %v1783_v28 = vadd.f32 %v1782_v38, %v1705_v27  ;;  %v3848_v38 = vld [vmem:[%s3222_s15 + $0xec] ss:$16 sps:$4 sm:$0xff]  }
 0x5a6   : > { %v1744_v20 = vadd.f32 %v1743_v18, %v1704_v39  ;;  %v1745_v41 = vpop.f32.mrb[34].mxu0  ;;  %v1786_v21 = vpop.f32.mrb[34].mxu1  ;;  %v1785_v31 = vadd.f32 %v1784_v40, %v1706_v30  ;;  %v3856_v39 = vld [vmem:[%s3222_s15 + $0xe8] ss:$16 sps:$4 sm:$0xff]   ;;  %v1827_v18 = vld [vmem:[%s1826_s11] sm:$0xff] }
 0x5a7   : > { %v2593_v22 = vmul.f32 -1.442695, %v1742_v17  ;;  %v1746_v23 = vpop.f32.mrb[35].mxu0  ;;  %v1787_v24 = vpop.f32.mrb[35].mxu1  ;;  %v2595_v32 = vmul.f32 -1.442695, %v1783_v28 }
 0x5a8   : > { %v2594_v26 = vmul.f32 -1.442695, %v1744_v20  ;;  %v3852_v17 = vld [vmem:[%s3222_s15 + $0xe0] ss:$16 sps:$4 sm:$0xff]   ;;  %v1828_v21 = vld [vmem:[%s1826_s11 + $0x8] sm:$0xff] }
 0x5a9   : > { %2910 = vpow2.f32 %v2593_v22 }
 0x5aa   : > { %2912 = vpow2.f32 %v2594_v26 }
 0x5ab   : > { %2914 = vtanh.f32 %v1785_v31  ;;  %v1829_v31 = vld [vmem:[%s1826_s11 + $0x10] sm:$0xff] }
 0x5ac   : > { %2916 = vpow2.f32 %v2595_v32 }
 0x5b3   : > { %v2911_v33 = vpop.eup %2910 }
 0x5b4   : > { %v1798_v34 = vadd.f32 1.0, %v2911_v33  ;;  %v2913_v36 = vpop.eup %2912  ;;  %v1830_v33 = vld [vmem:[%s1826_s11 + $0x18] sm:$0xff] }
 0x5b5   : > { %v1799_v37 = vadd.f32 1.0, %v2913_v36  ;;  %v2915_v15 = vpop.eup %2914 }
 0x5b6   : > { %2918 = vrcp.f32 %v1798_v34  ;;  %v2917_v43 = vpop.eup %2916 }
 0x5b7   : > { %2920 = vrcp.f32 %v1799_v37  ;;  %v1800_v47 = vadd.f32 1.0, %v2917_v43 }
 0x5b9   : > { %2922 = vrcp.f32 %v1800_v47 }
 0x5c0   : > { %v2919_v44 = vpop.eup %2918 }
 0x5c1   : > { %v1810_v45 = vmul.f32 %v2919_v44, %v2915_v15  ;;  %v2921_v46 = vpop.eup %2920 }
 0x5c2   : > { %v1809_v3 = vmul.f32 %v2921_v46, %v3687_v48  ;;  %v3844_v48 = vld [vmem:[%s3222_s15 + $0xe4] ss:$16 sps:$4 sm:$0xff]   ;;  %s2603_s15 = sshll.u32 %s3863_s9, 2 }
 0x5c3   : > { %v2923_v4 = vpop.eup %2922  ;;  %s1942_s12 = scalar_lea.vmem %s3543_s7, %s2603_s15 [#allocation7] }
 0x5c4   : > { %v3810_v49 = vadd.f32 %v1810_v45, %v1809_v3 }
 0x5c6   : > { %2924 = vtanh.f32 %v3810_v49 }
 0x5d0   : > { %v2925_v54 = vpop.eup %2924 }
 0x5d1   : > { %v1813_v55 = vmul.f32 %v2925_v54, %v2923_v4 }
 0x5d3   : > { %v1814_v14 = vpack.c.bf16 %v1813_v55, %v1813_v55 }
 0x5d5   : > { %1819 = vst [vmem:[%s1818_s30] sm:$0xf] %v1814_v14  ;;  %1816 = vst [vmem:[#allocation2] sm:$0xf] %v1814_v14  ;;  %s2071_s30 = scalar_lea.vmem [#allocation4], %s2630_s8 }
 0x5dc   : > { %v1823_v16 = vld [vmem:[#allocation2] sm:$0xf] }
 0x5dd   : > { %1864 = vmatmul.mubr.bf16.vlgmr.msra.gmra.mrb[36].mxu0 %v1823_v16  ;;  %1905 = vmatmul.mubr.bf16.vlgmr.msra.gmra.mrb[36].mxu1 %v1823_v16 }
 0x5de   : > { %1955 = vmatpush1.bf16.msra.mxu0 %v3693_v56  ;;  %1996 = vmatpush1.bf16.msra.mxu1 %v3697_v57 }
 0x5df   : > { %1956 = vmatprep.subr.bf16.mxu0 %v3701_v58  ;;  %1997 = vmatprep.subr.bf16.mxu1 %v3705_v59 }
 0x5e0   : > { %1986 = vmatprep.mubr.bf16.mxu0 %v3091_v0  ;;  %2027 = vmatprep.mubr.bf16.mxu1 %v3091_v0 }
 0x5e2   : > { %1957 = vmatpush1.bf16.msra.mxu0 %v3711_v60  ;;  %1998 = vmatpush1.bf16.msra.mxu1 %v3715_v61 }
 0x5e3   : > { %1958 = vmatprep.subr.bf16.mxu0 %v3719_v62  ;;  %1999 = vmatprep.subr.bf16.mxu1 %v3723_v1 }
 0x5e6   : > { %1959 = vmatpush1.bf16.msra.mxu0 %v3727_v2  ;;  %2000 = vmatpush1.bf16.msra.mxu1 %v3731_v5 }
 0x5e7   : > { %1960 = vmatprep.subr.bf16.mxu0 %v3735_v9  ;;  %2001 = vmatprep.subr.bf16.mxu1 %v3739_v50 }
 0x5ea   : > { %1961 = vmatpush1.bf16.msra.mxu0 %v3743_v51  ;;  %2002 = vmatpush1.bf16.msra.mxu1 %v3747_v19 }
 0x5eb   : > { %1962 = vmatprep.subr.bf16.mxu0 %v3751_v25  ;;  %2003 = vmatprep.subr.bf16.mxu1 %v3755_v29 }
 0x5ee   : > { %1963 = vmatpush1.bf16.msra.mxu0 %v3759_v35  ;;  %2004 = vmatpush1.bf16.msra.mxu1 %v3763_v63 }
 0x5ef   : > { %1964 = vmatprep.subr.bf16.mxu0 %v3767_v52  ;;  %2005 = vmatprep.subr.bf16.mxu1 %v3771_v42 }
 0x5f2   : > { %1965 = vmatpush1.bf16.msra.mxu0 %v3775_v53  ;;  %2006 = vmatpush1.bf16.msra.mxu1 %v3779_v8 }
 0x5f3   : > { %1966 = vmatprep.subr.bf16.mxu0 %v3783_v10  ;;  %2007 = vmatprep.subr.bf16.mxu1 %v3787_v11 }
 0x5f6   : > { %1967 = vmatpush1.bf16.msra.mxu0 %v3791_v12  ;;  %2008 = vmatpush1.bf16.msra.mxu1 %v3795_v13 }
 0x5f7   : > { %1968 = vmatprep.subr.bf16.mxu0 %v3844_v48  ;;  %2009 = vmatprep.subr.bf16.mxu1 %v3848_v38 }
 0x5fa   : > { %1969 = vmatpush1.bf16.msra.mxu0 %v3852_v17  ;;  %2010 = vmatpush1.bf16.msra.mxu1 %v3856_v39 }
 0x5fb   : > { %2076 = vmatprep.subr.bf16.mxu0 %v3672_v6  ;;  %2117 = vmatprep.subr.bf16.mxu1 %v3676_v7 }
 0x6b0   : > { %v1865_v40 = vpop.f32.mrb[36].mxu0  ;;  %v1906_v20 = vpop.f32.mrb[36].mxu1 }
 0x6b1   : > { %v1866_v41 = vadd.f32 %v1865_v40, %v1827_v18  ;;  %v1867_v22 = vpop.f32.mrb[37].mxu0  ;;  %v1908_v23 = vpop.f32.mrb[37].mxu1  ;;  %v1907_v32 = vadd.f32 %v1906_v20, %v1829_v31 }
 0x6b2   : > { %v1868_v24 = vadd.f32 %v1867_v22, %v1828_v21  ;;  %v1869_v26 = vpop.f32.mrb[38].mxu0  ;;  %v1910_v27 = vpop.f32.mrb[38].mxu1  ;;  %v1909_v34 = vadd.f32 %v1908_v23, %v1830_v33 }
 0x6b3   : > { %v2600_v6 = vmul.f32 -1.442695, %v1866_v41  ;;  %v1870_v28 = vpop.f32.mrb[39].mxu0  ;;  %v1911_v7 = vpop.f32.mrb[39].mxu1  ;;  %v2602_v36 = vmul.f32 -1.442695, %v1907_v32 }
 0x6b4   : > { %v2601_v30 = vmul.f32 -1.442695, %v1868_v24  ;;  %v2072_v26 = vld [vmem:[%s2071_s30] sm:$0xff]  ;;  %v2073_v7 = vld [vmem:[%s2071_s30 + $0x8] sm:$0xff] }
 0x6b5   : > { %2926 = vpow2.f32 %v2600_v6 }
 0x6b6   : > { %2928 = vpow2.f32 %v2601_v30 }
 0x6b7   : > { %2930 = vtanh.f32 %v1909_v34 }
 0x6b8   : > { %2932 = vpow2.f32 %v2602_v36 }
 0x6bf   : > { %v2927_v37 = vpop.eup %2926 }
 0x6c0   : > { %v1922_v15 = vadd.f32 1.0, %v2927_v37  ;;  %v2929_v43 = vpop.eup %2928 }
 0x6c1   : > { %v1923_v44 = vadd.f32 1.0, %v2929_v43  ;;  %v2931_v45 = vpop.eup %2930 }
 0x6c2   : > { %2934 = vrcp.f32 %v1922_v15  ;;  %v2933_v46 = vpop.eup %2932 }
 0x6c3   : > { %2936 = vrcp.f32 %v1923_v44  ;;  %v1924_v54 = vadd.f32 1.0, %v2933_v46  ;;  %v2074_v44 = vld [vmem:[%s2071_s30 + $0x10] sm:$0xff]  ;;  %v2075_v46 = vld [vmem:[%s2071_s30 + $0x18] sm:$0xff] }
 0x6c5   : > { %2938 = vrcp.f32 %v1924_v54 }
 0x6cc   : > { %v2935_v47 = vpop.eup %2934 }
 0x6cd   : > { %v1934_v3 = vmul.f32 %v2935_v47, %v2931_v45  ;;  %v2937_v4 = vpop.eup %2936 }
 0x6ce   : > { %v1933_v55 = vmul.f32 %v2937_v4, %v3810_v49 }
 0x6cf   : > { %v2939_v16 = vpop.eup %2938 }
 0x6d0   : > { %v3867_v14 = vadd.f32 %v1934_v3, %v1933_v55 }
 0x6d2   : > { %2940 = vtanh.f32 %v3867_v14 }
 0x6dc   : > { %v2941_v18 = vpop.eup %2940 }
 0x6dd   : > { %v1937_v40 = vmul.f32 %v2941_v18, %v2939_v16 }
 0x6df   : > { %v1938_v20 = vpack.c.bf16 %v1937_v40, %v1937_v40 }
 0x6e1   : > { %1943 = vst [vmem:[%s1942_s12] sm:$0xf] %v1938_v20  ;;  %1940 = vst [vmem:[#allocation2] sm:$0xf] %v1938_v20 }
 0x6e8   : > { %v1946_v41 = vld [vmem:[#allocation2] sm:$0xf] }
 0x6e9   : > { %1987 = vmatmul.mubr.bf16.vlgmr.msra.gmra.mrb[40].mxu0 %v1946_v41  ;;  %2028 = vmatmul.mubr.bf16.vlgmr.msra.gmra.mrb[40].mxu1 %v1946_v41 }
 0x6ea   : > { %2077 = vmatpush1.bf16.msra.mxu0 %v3693_v56  ;;  %2118 = vmatpush1.bf16.msra.mxu1 %v3697_v57 }
 0x6eb   : > { %2078 = vmatprep.subr.bf16.mxu0 %v3701_v58  ;;  %2119 = vmatprep.subr.bf16.mxu1 %v3705_v59  ;;  %v1951_v59 = vld [vmem:[%s1949_s24 + $0x8] sm:$0xff] }
 0x6ec   : > { %2108 = vmatprep.mubr.bf16.mxu0 %v3091_v0  ;;  %2149 = vmatprep.mubr.bf16.mxu1 %v3091_v0  ;;  %v1950_v0 = vld [vmem:[%s1949_s24] sm:$0xff] }
 0x6ee   : > { %2079 = vmatpush1.bf16.msra.mxu0 %v3711_v60  ;;  %2120 = vmatpush1.bf16.msra.mxu1 %v3715_v61 }
 0x6ef   : > { %2080 = vmatprep.subr.bf16.mxu0 %v3719_v62  ;;  %2121 = vmatprep.subr.bf16.mxu1 %v3723_v1 }
 0x6f2   : > { %2081 = vmatpush1.bf16.msra.mxu0 %v3727_v2  ;;  %2122 = vmatpush1.bf16.msra.mxu1 %v3731_v5 }
 0x6f3   : > { %2082 = vmatprep.subr.bf16.mxu0 %v3735_v9  ;;  %2123 = vmatprep.subr.bf16.mxu1 %v3739_v50 }
 0x6f6   : > { %2083 = vmatpush1.bf16.msra.mxu0 %v3743_v51  ;;  %2124 = vmatpush1.bf16.msra.mxu1 %v3747_v19  ;;  %v1952_v19 = vld [vmem:[%s1949_s24 + $0x10] sm:$0xff] }
 0x6f7   : > { %2084 = vmatprep.subr.bf16.mxu0 %v3751_v25  ;;  %2125 = vmatprep.subr.bf16.mxu1 %v3755_v29  ;;  %v1953_v29 = vld [vmem:[%s1949_s24 + $0x18] sm:$0xff] }
 0x6fa   : > { %2085 = vmatpush1.bf16.msra.mxu0 %v3759_v35  ;;  %2126 = vmatpush1.bf16.msra.mxu1 %v3763_v63 }
 0x6fb   : > { %2086 = vmatprep.subr.bf16.mxu0 %v3767_v52  ;;  %2127 = vmatprep.subr.bf16.mxu1 %v3771_v42 }
 0x6fe   : > { %2087 = vmatpush1.bf16.msra.mxu0 %v3775_v53  ;;  %2128 = vmatpush1.bf16.msra.mxu1 %v3779_v8 }
 0x6ff   : > { %2088 = vmatprep.subr.bf16.mxu0 %v3783_v10  ;;  %2129 = vmatprep.subr.bf16.mxu1 %v3787_v11 }
 0x702   : > { %2089 = vmatpush1.bf16.msra.mxu0 %v3791_v12  ;;  %2130 = vmatpush1.bf16.msra.mxu1 %v3795_v13 }
 0x703   : > { %2090 = vmatprep.subr.bf16.mxu0 %v3844_v48  ;;  %2131 = vmatprep.subr.bf16.mxu1 %v3848_v38 }
 0x706   : > { %2091 = vmatpush1.bf16.msra.mxu0 %v3852_v17  ;;  %2132 = vmatpush1.bf16.msra.mxu1 %v3856_v39 }
 0x7bc   : > { %v1988_v56 = vpop.f32.mrb[40].mxu0  ;;  %v2029_v57 = vpop.f32.mrb[40].mxu1 }
 0x7bd   : > { %v1989_v58 = vadd.f32 %v1988_v56, %v1950_v0  ;;  %v1990_v60 = vpop.f32.mrb[41].mxu0  ;;  %v2031_v61 = vpop.f32.mrb[41].mxu1  ;;  %v2030_v25 = vadd.f32 %v2029_v57, %v1952_v19 }
 0x7be   : > { %v1991_v62 = vadd.f32 %v1990_v60, %v1951_v59  ;;  %v1992_v1 = vpop.f32.mrb[42].mxu0  ;;  %v2033_v2 = vpop.f32.mrb[42].mxu1  ;;  %v2032_v35 = vadd.f32 %v2031_v61, %v1953_v29 }
 0x7bf   : > { %v2606_v5 = vmul.f32 -1.442695, %v1989_v58  ;;  %v1993_v9 = vpop.f32.mrb[43].mxu0  ;;  %v2034_v50 = vpop.f32.mrb[43].mxu1  ;;  %v2608_v63 = vmul.f32 -1.442695, %v2030_v25 }
 0x7c0   : > { %v2607_v51 = vmul.f32 -1.442695, %v1991_v62 }
 0x7c1   : > { %2942 = vpow2.f32 %v2606_v5 }
 0x7c2   : > { %2944 = vpow2.f32 %v2607_v51 }
 0x7c3   : > { %2946 = vtanh.f32 %v2032_v35 }
 0x7c4   : > { %2948 = vpow2.f32 %v2608_v63 }
 0x7cb   : > { %v2943_v52 = vpop.eup %2942 }
 0x7cc   : > { %v2045_v42 = vadd.f32 1.0, %v2943_v52  ;;  %v2945_v53 = vpop.eup %2944 }
 0x7cd   : > { %v2046_v8 = vadd.f32 1.0, %v2945_v53  ;;  %v2947_v10 = vpop.eup %2946 }
 0x7ce   : > { %2950 = vrcp.f32 %v2045_v42  ;;  %v2949_v11 = vpop.eup %2948 }
 0x7cf   : > { %2952 = vrcp.f32 %v2046_v8  ;;  %v2047_v48 = vadd.f32 1.0, %v2949_v11 }
 0x7d1   : > { %2954 = vrcp.f32 %v2047_v48 }
 0x7d8   : > { %v2951_v12 = vpop.eup %2950 }
 0x7d9   : > { %v2057_v13 = vmul.f32 %v2951_v12, %v2947_v10  ;;  %v2953_v49 = vpop.eup %2952 }
 0x7da   : > { %v2056_v38 = vmul.f32 %v2953_v49, %v3867_v14 }
 0x7db   : > { %v2955_v39 = vpop.eup %2954 }
 0x7dc   : > { %v2058_v17 = vadd.f32 %v2057_v13, %v2056_v38 }
 0x7de   : > { %2956 = vtanh.f32 %v2058_v17 }
 0x7e8   : > { %v2957_v21 = vpop.eup %2956 }
 0x7e9   : > { %v2060_v22 = vmul.f32 %v2957_v21, %v2955_v39 }
 0x7eb   : > { %v2061_v23 = vpack.c.bf16 %v2060_v22, %v2060_v22 }
 0x7ed   : > { %2066 = vst [vmem:[%s2065_s29] sm:$0xf] %v2061_v23  ;;  %2063 = vst [vmem:[#allocation2] sm:$0xf] %v2061_v23 }
 0x7f4   : > { %v2068_v24 = vld [vmem:[#allocation2] sm:$0xf] }
 0x7f5   : > { %2109 = vmatmul.mubr.bf16.vlgmr.msra.gmra.mrb[44].mxu0 %v2068_v24  ;;  %2150 = vmatmul.mubr.bf16.vlgmr.msra.gmra.mrb[44].mxu1 %v2068_v24 }
 0x8c8   : > { %v2110_v27 = vpop.f32.mrb[44].mxu0  ;;  %v2151_v6 = vpop.f32.mrb[44].mxu1 }
 0x8c9   : > { %v2111_v28 = vadd.f32 %v2110_v27, %v2072_v26  ;;  %v2112_v30 = vpop.f32.mrb[45].mxu0  ;;  %v2153_v31 = vpop.f32.mrb[45].mxu1  ;;  %v2152_v45 = vadd.f32 %v2151_v6, %v2074_v44 }
 0x8ca   : > { %v2113_v32 = vadd.f32 %v2112_v30, %v2073_v7  ;;  %v2114_v33 = vpop.f32.mrb[46].mxu0  ;;  %v2155_v34 = vpop.f32.mrb[46].mxu1  ;;  %v2154_v47 = vadd.f32 %v2153_v31, %v2075_v46 }
 0x8cb   : > { %v2612_v36 = vmul.f32 -1.442695, %v2111_v28  ;;  %v2115_v37 = vpop.f32.mrb[47].mxu0  ;;  %v2156_v15 = vpop.f32.mrb[47].mxu1  ;;  %v2614_v3 = vmul.f32 -1.442695, %v2152_v45 }
 0x8cc   : > { %v2613_v43 = vmul.f32 -1.442695, %v2113_v32 }
 0x8cd   : > { %2958 = vpow2.f32 %v2612_v36 }
 0x8ce   : > { %2960 = vpow2.f32 %v2613_v43 }
 0x8cf   : > { %2962 = vtanh.f32 %v2154_v47 }
 0x8d0   : > { %2964 = vpow2.f32 %v2614_v3 }
 0x8d7   : > { %v2959_v4 = vpop.eup %2958 }
 0x8d8   : > { %v2167_v54 = vadd.f32 1.0, %v2959_v4  ;;  %v2961_v55 = vpop.eup %2960 }
 0x8d9   : > { %v2168_v14 = vadd.f32 1.0, %v2961_v55  ;;  %v2963_v16 = vpop.eup %2962 }
 0x8da   : > { %2966 = vrcp.f32 %v2167_v54  ;;  %v2965_v18 = vpop.eup %2964 }
 0x8db   : > { %2968 = vrcp.f32 %v2168_v14  ;;  %v2169_v0 = vadd.f32 1.0, %v2965_v18 }
 0x8dd   : > { %2970 = vrcp.f32 %v2169_v0 }
 0x8e4   : > { %v2967_v40 = vpop.eup %2966 }
 0x8e5   : > { %v2179_v20 = vmul.f32 %v2967_v40, %v2963_v16  ;;  %v2969_v41 = vpop.eup %2968 }
 0x8e6   : > { %v2178_v56 = vmul.f32 %v2969_v41, %v2058_v17 }
 0x8e7   : > { %v2971_v58 = vpop.eup %2970 }
 0x8e8   : > { %v2180_v57 = vadd.f32 %v2179_v20, %v2178_v56 }
 0x8ea   : > { %2972 = vtanh.f32 %v2180_v57 }
 0x8f3   : > { %2195 = sbr.rel (!%p3957_p8) target bundleno = 2310 (0x906), region = 48 }
 0x8f4   : > { %v2973_v59 = vpop.eup %2972 }
 0x8f5   : > { %v2182_v60 = vmul.f32 %v2973_v59, %v2971_v58 }
 0x8f7   : > { %v2183_v61 = vpack.c.bf16 %v2182_v60, %v2182_v60 }
 0x8f9   : > { %2185 = vst [vmem:[#allocation2] sm:$0xf] %v2183_v61  ;;  %2188 = vst [vmem:[%s2187_s6] sm:$0xf] %v2183_v61 }
 0x900   : > { %v2221_v62 = vld [vmem:[%s3543_s7] sm:$0xf]  ;;  %v2223_v1 = vld [vmem:[%s3543_s7 + $0x4] sm:$0xf]  ;;  %v2225_v2 = vld [vmem:[%s3543_s7 + $0x8] sm:$0xf] }
 0x901   : > { %2222 = vst [vmem:[%s2205_s14] sm:$0xf] %v2221_v62  ;;  %2224 = vst [vmem:[%s2205_s14 + $0x8] sm:$0xf] %v2223_v1  ;;  %v2227_v5 = vld [vmem:[%s3543_s7 + $0xc] sm:$0xf] }
 0x902   : > { %2226 = vst [vmem:[%s2205_s14 + $0x10] sm:$0xf] %v2225_v2  ;;  %v2229_v9 = vld [vmem:[%s3543_s7 + $0x10] sm:$0xf]  ;;  %v2231_v50 = vld [vmem:[%s3543_s7 + $0x14] sm:$0xf] }
 0x903   : > { %2228 = vst [vmem:[%s2205_s14 + $0x18] sm:$0xf] %v2227_v5  ;;  %2230 = vst [vmem:[%s2205_s14 + $0x20] sm:$0xf] %v2229_v9  ;;  %v2233_v51 = vld [vmem:[%s3543_s7 + $0x18] sm:$0xf] }
 0x904   : > { %2232 = vst [vmem:[%s2205_s14 + $0x28] sm:$0xf] %v2231_v50  ;;  %v2235_v19 = vld [vmem:[%s3543_s7 + $0x1c] sm:$0xf]  ;;  %2234 = vst [vmem:[%s2205_s14 + $0x30] sm:$0xf] %v2233_v51 }
 0x905   : > { %2236 = vst [vmem:[%s2205_s14 + $0x38] sm:$0xf] %v2235_v19 }
 0x906 PF: > { %s17_s20 = sadd.s32 1, %s3086_s20   ;;  %s3958_s15 = smov %s3070_s16 }
 0x907   : > { %p14_p11 = scmp.ge.s32.totalorder %s17_s20, 4   ;;  %s3959_s16 = smov %s3074_s17 }
 0x908   : > { %s3960_s17 = smov %s3165_s27  ;;  %s3961_s18 = smov %s3082_s19 }
 0x909   : > { %s3962_s19 = smov %s3964_s22  ;;  %16 = sbr.rel (!%p14_p11) target bundleno = 4 (0x4), region = 146 }
 0x910   :  { %2285 = vsyncpa [#allocation6], 1 }
 0x911   :  { %2287 = vsyncpa [#allocation6 + $0x1], 1 }

</bundles_post_ra>
